<compile_context>
chip_gen: v6e
topology: v6e:2x2x1
jax: 0.10.0
libtpu: 0.0.40
codegen_flags: <defaults>
</compile_context>

<pallas_src>
import functools

import jax
import jax.numpy as jnp
from jax import lax
from jax.experimental import pallas as pl
from jax.experimental.pallas import tpu as pltpu


def _round_up(x, m):
    return (x + m - 1) // m * m


def rcu_kernel(x_ref, halo_ref, w1_ref, b1_ref, w2_ref, b2_ref, o_ref,
               m1_ref, m2_ref, *, img_w):
    """One (batch-block, row-band) step of relu -> conv3x3 -> relu -> conv3x3 -> +x.

    Layout convention ("pad layout"): column c of every full-width buffer corresponds
    to padded column c of the conv, i.e. image column c-1; column 0 and columns > img_w
    are the horizontal "SAME" zero padding.
    """
    NB, Hb, Wp, Cp = x_ref.shape
    cdt = m1_ref.dtype            # MXU operand dtype (bf16 by default)
    acc_dt = jnp.float32

    def fill_im2col(m_ref, row0, v):
        # v: (NB, R, Wp, Cp) pad-layout activations.  Writes the three dx tap groups:
        #   m[:, :, c, dx*Cp:(dx+1)*Cp] = v[:, :, c-1+dx, :]
        # One aligned full-width store + two shifted-by-one-column stores; this is the
        # only tap realignment in the whole kernel (was 9 whole-image copies per conv).
        R = v.shape[1]
        rows = slice(row0, row0 + R)
        m_ref[:, rows, 1:Wp, 0:Cp] = v[:, :, 0:Wp - 1, :]             # dx = 0
        m_ref[:, rows, :, Cp:2 * Cp] = v                               # dx = 1 (aligned)
        m_ref[:, rows, 0:Wp - 1, 2 * Cp:3 * Cp] = v[:, :, 1:Wp, :]     # dx = 2
        # Column 0 of the dx=0 group / column Wp-1 of the dx=2 group are never written;
        # they only feed matmul rows whose outputs are discarded.

    def conv3x3(m_ref, w_ref, b_ref, rows_out):
        # 3 MXU matmuls with K = 3*Cp (one per dy), bf16 operands, f32 accumulation,
        # bias added once at the end.
        acc = None
        for dy in range(3):
            lhs = m_ref[:, dy:dy + rows_out, :, :].reshape(NB * rows_out * Wp, 3 * Cp)
            part = jnp.dot(lhs, w_ref[dy], preferred_element_type=acc_dt)
            acc = part if acc is None else acc + part
        return acc.reshape(NB, rows_out, Wp, Cp) + b_ref[...].astype(acc_dt)

    relu = lambda a: jnp.maximum(a, 0.0)

    # ---- stage 1: im2col of relu(x) for this band and its 2-row top/bottom halo ----
    # Horizontal/vertical zero padding is already baked into x / halo by the wrapper.
    halo = relu(halo_ref[...]).astype(cdt)                    # (NB, 4, Wp, Cp)
    fill_im2col(m1_ref, 0, halo[:, 0:2])                      # rows r0-2, r0-1
    fill_im2col(m1_ref, 2, relu(x_ref[...]).astype(cdt))      # rows r0 .. r0+Hb-1
    fill_im2col(m1_ref, Hb + 2, halo[:, 2:4])                 # rows r0+Hb, r0+Hb+1

    # ---- conv1 over rows r0-1 .. r0+Hb (Hb+2 rows) ----
    r1 = Hb + 2
    y1 = conv3x3(m1_ref, w1_ref, b1_ref, r1)

    # relu, then restore zero-padded layout before it becomes conv2's input: columns 0
    # and > img_w are conv2's horizontal "SAME" padding.
    c_idx = lax.broadcasted_iota(jnp.int32, (Wp, Cp), 0)
    col_ok = jnp.logical_and(c_idx >= 1, c_idx <= img_w)
    a1 = jnp.where(col_ok, relu(y1), 0.0).astype(cdt)
    fill_im2col(m2_ref, 0, a1)

    # Vertical "SAME" padding of conv2: the rows just above/below the image are zero.
    # Only the first/last band touch them, so this is two cheap conditional stores.
    band = pl.program_id(1)

    @pl.when(band == 0)
    def _():
        m2_ref[:, 0:1, :, :] = jnp.zeros((NB, 1, Wp, 3 * Cp), cdt)

    @pl.when(band == pl.num_programs(1) - 1)
    def _():
        m2_ref[:, r1 - 1:r1, :, :] = jnp.zeros((NB, 1, Wp, 3 * Cp), cdt)

    # ---- conv2 + residual (x_ref is re-read here; no long live range across convs) ----
    y2 = conv3x3(m2_ref, w2_ref, b2_ref, Hb)
    o_ref[...] = (y2 + x_ref[...].astype(acc_dt)).astype(o_ref.dtype)


def _choose_tiling(n, h, wp, cp, in_bytes, out_bytes, cdt_bytes, budget_bytes):
    """Pick (batch block NB, row-band height Hb).

    Footprint counts the im2col scratch, the f32 accumulator + one matmul temp,
    double-buffered input/halo/output blocks, double-buffered bf16 weights and the
    relu'd source temp (per review: be honest about temporaries)."""

    def footprint(nb, hb):
        m1 = nb * (hb + 4) * wp * 3 * cp * cdt_bytes
        m2 = nb * (hb + 2) * wp * 3 * cp * cdt_bytes
        acc = 2 * nb * (hb + 2) * wp * cp * 4
        xio = 2 * nb * hb * wp * cp * (in_bytes + out_bytes)
        halo = 2 * nb * 4 * wp * cp * in_bytes
        wts = 2 * 2 * 9 * cp * cp * cdt_bytes + 4 * 2 * cp * 4
        tmp = nb * (hb + 4) * wp * cp * max(cdt_bytes, in_bytes)
        return m1 + m2 + acc + xio + halo + wts + tmp

    h_divs = [d for d in range(1, h + 1) if h % d == 0]
    fitting = [d for d in h_divs if footprint(1, d) <= budget_bytes]
    if not fitting:
        hb = 1
    else:
        # Prefer >= 4 total grid steps (>= 2 per TensorCore on v7x) so BlockSpec
        # double-buffering and both cores actually have work; then the biggest band.
        pref = [d for d in fitting if n * (h // d) >= 4]
        hb = max(pref) if pref else max(fitting)

    nb = 1
    for d in sorted((d for d in range(1, n + 1) if n % d == 0), reverse=True):
        if d > 1 and footprint(d, hb) <= budget_bytes and (n // d) * (h // hb) >= 4:
            nb = d
            break
    return nb, hb


def residual_conv_unit(x_nchw, w1, b1, w2, b2, *, compute_dtype=jnp.bfloat16,
                       lane=128, vmem_budget_bytes=30 * 1024 * 1024,
                       vmem_limit_bytes=48 * 1024 * 1024):
    """x_nchw: (N, C, H, W); w*: (3, 3, C, C) HWIO; b*: (C,).  Returns NCHW."""
    N, C, H, W = x_nchw.shape
    dt = x_nchw.dtype
    Cp = _round_up(C, lane)
    # TODO(synk): padding tiny C (like the C=4 test) to 128 lanes is wasteful; a
    # production small-C path should pack spatial columns into lanes instead.
    Wp = _round_up(W + 2, 8)            # padded width: col 0 = left "SAME" zero column

    # NHWC, lane-dense channels, horizontal "SAME" zero padding baked into the width.
    x = jnp.transpose(x_nchw, (0, 2, 3, 1))
    x = jnp.pad(x, ((0, 0), (0, 0), (1, Wp - W - 1), (0, Cp - C)))

    in_b = jnp.dtype(dt).itemsize
    cdt_b = jnp.dtype(compute_dtype).itemsize
    NB, Hb = _choose_tiling(N, H, Wp, Cp, in_b, in_b, cdt_b, vmem_budget_bytes)
    n_bands = H // Hb

    # 2-row top/bottom halo per band (fused relu->conv->relu->conv has radius 2); rows
    # outside the image are zero, which is exactly the convs' vertical "SAME" padding.
    xr = jnp.pad(x, ((0, 0), (2, 2), (0, 0), (0, 0)))
    halo = jnp.stack(
        [jnp.concatenate([xr[:, b * Hb:b * Hb + 2],
                          xr[:, b * Hb + Hb + 2:b * Hb + Hb + 4]], axis=1)
         for b in range(n_bands)], axis=1)                 # (N, n_bands, 4, Wp, Cp)

    def prep_w(w):
        # HWIO -> pad channels -> concatenate the 3 dx taps along K -> (3, 3*Cp, Cp) bf16
        w = jnp.pad(w, ((0, 0), (0, 0), (0, Cp - C), (0, Cp - C)))
        return w.reshape(3, 3 * Cp, Cp).astype(compute_dtype)

    w1c, w2c = prep_w(w1), prep_w(w2)
    b1p = jnp.pad(b1, (0, Cp - C)).reshape(1, Cp).astype(jnp.float32)
    b2p = jnp.pad(b2, (0, Cp - C)).reshape(1, Cp).astype(jnp.float32)

    grid = (N // NB, n_bands)
    kernel = functools.partial(rcu_kernel, img_w=W)

    out = pl.pallas_call(
        kernel,
        out_shape=jax.ShapeDtypeStruct((N, H, Wp, Cp), dt),
        grid_spec=pltpu.PrefetchScalarGridSpec(
            num_scalar_prefetch=0,
            grid=grid,
            in_specs=[
                pl.BlockSpec((NB, Hb, Wp, Cp), lambda n, b: (n, b, 0, 0)),
                pl.BlockSpec((NB, None, 4, Wp, Cp), lambda n, b: (n, b, 0, 0, 0)),
                # TODO(synk): on newer jax, pipeline_mode=pl.Buffered(1) would single-
                # buffer these constant-index weight/bias blocks and save VMEM.
                pl.BlockSpec((3, 3 * Cp, Cp), lambda n, b: (0, 0, 0)),
                pl.BlockSpec((1, Cp), lambda n, b: (0, 0)),
                pl.BlockSpec((3, 3 * Cp, Cp), lambda n, b: (0, 0, 0)),
                pl.BlockSpec((1, Cp), lambda n, b: (0, 0)),
            ],
            out_specs=pl.BlockSpec((NB, Hb, Wp, Cp), lambda n, b: (n, b, 0, 0)),
            scratch_shapes=[
                pltpu.VMEM((NB, Hb + 4, Wp, 3 * Cp), compute_dtype),   # im2col for conv1
                pltpu.VMEM((NB, Hb + 2, Wp, 3 * Cp), compute_dtype),   # im2col for conv2
            ],
        ),
        compiler_params=pltpu.CompilerParams(
            # Both axes are independent -> shard across TensorCores on v7x.
            dimension_semantics=("parallel", "parallel"),
            vmem_limit_bytes=vmem_limit_bytes,
        ),
    )(x, halo, w1c, b1p, w2c, b2p)

    out = out[:, :, 1:W + 1, :C]                    # drop width / channel padding
    return jnp.transpose(out, (0, 3, 1, 2))         # -> NCHW


def reference_forward(x_nchw, w1, b1, w2, b2):
    """Pure-JAX f32 reference matching the PyTorch module."""
    x = jnp.transpose(x_nchw, (0, 2, 3, 1))

    def conv(a, w, b):
        y = lax.conv_general_dilated(a, w, (1, 1), "SAME",
                                     dimension_numbers=("NHWC", "HWIO", "NHWC"))
        return y + b

    out = conv(jax.nn.relu(x), w1, b1)
    out = conv(jax.nn.relu(out), w2, b2)
    return jnp.transpose(out + x, (0, 3, 1, 2))


def reference_forward_mixed(x_nchw, w1, b1, w2, b2, cdt=jnp.bfloat16):
    """Same op order, but bf16 conv operands with f32 accumulation (kernel numerics)."""
    x = jnp.transpose(x_nchw, (0, 2, 3, 1))

    def conv(a, w, b):
        y = lax.conv_general_dilated(a.astype(cdt), w.astype(cdt), (1, 1), "SAME",
                                     dimension_numbers=("NHWC", "HWIO", "NHWC"),
                                     preferred_element_type=jnp.float32)
        return y + b

    out = conv(jax.nn.relu(x), w1, b1)
    out = conv(jax.nn.relu(out), w2, b2)
    return jnp.transpose(out + x, (0, 3, 1, 2))


if __name__ == "__main__":
    features = 4
    N, H, W = 2, 16, 16

    key = jax.random.PRNGKey(0)
    kx, kw1, kb1, kw2, kb2 = jax.random.split(key, 5)

    x = jax.random.normal(kx, (N, features, H, W), dtype=jnp.float32)
    # Conv2d(features, features, 3) parameters, deterministic synthetic init (HWIO).
    w1 = 0.1 * jax.random.normal(kw1, (3, 3, features, features), dtype=jnp.float32)
    b1 = 0.1 * jax.random.normal(kb1, (features,), dtype=jnp.float32)
    w2 = 0.1 * jax.random.normal(kw2, (3, 3, features, features), dtype=jnp.float32)
    b2 = 0.1 * jax.random.normal(kb2, (features,), dtype=jnp.float32)

    out = jax.block_until_ready(residual_conv_unit(x, w1, b1, w2, b2))
    assert out.shape == (N, features, H, W)

    # Tight check against a reference that uses the kernel's bf16-operand numerics ...
    ref_mixed = jax.block_until_ready(reference_forward_mixed(x, w1, b1, w2, b2))
    assert jnp.allclose(out, ref_mixed, rtol=5e-3, atol=5e-3), \
        "mismatch vs bf16-operand reference"

    # ... and a looser check against the full-f32 module semantics.
    ref = jax.block_until_ready(reference_forward(x, w1, b1, w2, b2))
    assert jnp.allclose(out, ref, rtol=2e-2, atol=2e-2), "mismatch vs f32 reference"

    print("KERNEL_OK")
</pallas_src>

<mosaic_0001>
module attributes {stable_mosaic.version = 11 : i64} {
  func.func @rcu_kernel(%arg0: i32, %arg1: i32, %arg2: memref<1x8x24x128xf32, #tpu.memory_space<vmem>>, %arg3: memref<1x1x4x24x128xf32, #tpu.memory_space<vmem>>, %arg4: memref<3x384x128xbf16, #tpu.memory_space<vmem>>, %arg5: memref<1x128xf32, #tpu.memory_space<vmem>>, %arg6: memref<3x384x128xbf16, #tpu.memory_space<vmem>>, %arg7: memref<1x128xf32, #tpu.memory_space<vmem>>, %arg8: memref<1x8x24x128xf32, #tpu.memory_space<vmem>>, %arg9: memref<1x12x24x384xbf16, #tpu.memory_space<vmem>>, %arg10: memref<1x10x24x384xbf16, #tpu.memory_space<vmem>>) attributes {dimension_semantics = [#tpu.dimension_semantics<parallel>, #tpu.dimension_semantics<parallel>], iteration_bounds = array<i64: 2, 2>, scalar_prefetch = 0 : i64, scratch_operands = 2 : i64, tpu.core_type = #tpu.core_type<tc>, window_params = [{transform_indices = @transform_0, window_bounds = array<i64: 1, 8, 24, 128>}, {transform_indices = @transform_1, window_bounds = array<i64: 1, 1, 4, 24, 128>}, {pipeline_mode = #tpu.pipeline_mode<synchronous>, transform_indices = @transform_2, window_bounds = array<i64: 3, 384, 128>}, {pipeline_mode = #tpu.pipeline_mode<synchronous>, transform_indices = @transform_3, window_bounds = array<i64: 1, 128>}, {pipeline_mode = #tpu.pipeline_mode<synchronous>, transform_indices = @transform_4, window_bounds = array<i64: 3, 384, 128>}, {pipeline_mode = #tpu.pipeline_mode<synchronous>, transform_indices = @transform_5, window_bounds = array<i64: 1, 128>}, {transform_indices = @transform_6, window_bounds = array<i64: 1, 8, 24, 128>}]} {
    %c0 = arith.constant 0 : index
    %c0_0 = arith.constant 0 : index
    %c0_1 = arith.constant 0 : index
    %c0_2 = arith.constant 0 : index
    %c0_3 = arith.constant 0 : index
    %0 = vector.load %arg3[%c0, %c0_0, %c0_1, %c0_2, %c0_3] : memref<1x1x4x24x128xf32, #tpu.memory_space<vmem>>, vector<1x1x4x24x128xf32>
    %1 = vector.shape_cast %0 : vector<1x1x4x24x128xf32> to vector<1x4x24x128xf32>
    %cst = arith.constant 0.000000e+00 : f32
    %2 = vector.broadcast %cst : f32 to vector<1x4x24x128xf32>
    %3 = arith.maximumf %1, %2 : vector<1x4x24x128xf32>
    %4 = arith.truncf %3 : vector<1x4x24x128xf32> to vector<1x4x24x128xbf16>
    %5 = vector.extract_strided_slice %4 {offsets = [0, 0, 0, 0], sizes = [1, 2, 24, 128], strides = [1, 1, 1, 1]} : vector<1x4x24x128xbf16> to vector<1x2x24x128xbf16>
    %6 = vector.extract_strided_slice %5 {offsets = [0, 0, 0, 0], sizes = [1, 2, 23, 128], strides = [1, 1, 1, 1]} : vector<1x2x24x128xbf16> to vector<1x2x23x128xbf16>
    %c0_4 = arith.constant 0 : index
    %c0_5 = arith.constant 0 : index
    %c1 = arith.constant 1 : index
    %c0_6 = arith.constant 0 : index
    %7 = vector.load %arg9[%c0_4, %c0_5, %c1, %c0_6] : memref<1x12x24x384xbf16, #tpu.memory_space<vmem>>, vector<1x2x23x128xbf16>
    tpu.vector_store %arg9[%c0_4, %c0_5, %c1, %c0_6], %6 {strides = array<i32>} : memref<1x12x24x384xbf16, #tpu.memory_space<vmem>>, vector<1x2x23x128xbf16>,
    %c0_7 = arith.constant 0 : index
    %c0_8 = arith.constant 0 : index
    %c0_9 = arith.constant 0 : index
    %c128 = arith.constant 128 : index
    %8 = vector.load %arg9[%c0_7, %c0_8, %c0_9, %c128] : memref<1x12x24x384xbf16, #tpu.memory_space<vmem>>, vector<1x2x24x128xbf16>
    tpu.vector_store %arg9[%c0_7, %c0_8, %c0_9, %c128], %5 {strides = array<i32>} : memref<1x12x24x384xbf16, #tpu.memory_space<vmem>>, vector<1x2x24x128xbf16>,
    %9 = vector.extract_strided_slice %5 {offsets = [0, 0, 1, 0], sizes = [1, 2, 23, 128], strides = [1, 1, 1, 1]} : vector<1x2x24x128xbf16> to vector<1x2x23x128xbf16>
    %c0_10 = arith.constant 0 : index
    %c0_11 = arith.constant 0 : index
    %c0_12 = arith.constant 0 : index
    %c256 = arith.constant 256 : index
    %10 = vector.load %arg9[%c0_10, %c0_11, %c0_12, %c256] : memref<1x12x24x384xbf16, #tpu.memory_space<vmem>>, vector<1x2x23x128xbf16>
    tpu.vector_store %arg9[%c0_10, %c0_11, %c0_12, %c256], %9 {strides = array<i32>} : memref<1x12x24x384xbf16, #tpu.memory_space<vmem>>, vector<1x2x23x128xbf16>,
    %c0_13 = arith.constant 0 : index
    %c0_14 = arith.constant 0 : index
    %c0_15 = arith.constant 0 : index
    %c0_16 = arith.constant 0 : index
    %11 = vector.load %arg2[%c0_13, %c0_14, %c0_15, %c0_16] : memref<1x8x24x128xf32, #tpu.memory_space<vmem>>, vector<1x8x24x128xf32>
    %cst_17 = arith.constant 0.000000e+00 : f32
    %12 = vector.broadcast %cst_17 : f32 to vector<1x8x24x128xf32>
    %13 = arith.maximumf %11, %12 : vector<1x8x24x128xf32>
    %14 = arith.truncf %13 : vector<1x8x24x128xf32> to vector<1x8x24x128xbf16>
    %15 = vector.extract_strided_slice %14 {offsets = [0, 0, 0, 0], sizes = [1, 8, 23, 128], strides = [1, 1, 1, 1]} : vector<1x8x24x128xbf16> to vector<1x8x23x128xbf16>
    %c0_18 = arith.constant 0 : index
    %c2 = arith.constant 2 : index
    %c1_19 = arith.constant 1 : index
    %c0_20 = arith.constant 0 : index
    %16 = vector.load %arg9[%c0_18, %c2, %c1_19, %c0_20] : memref<1x12x24x384xbf16, #tpu.memory_space<vmem>>, vector<1x8x23x128xbf16>
    tpu.vector_store %arg9[%c0_18, %c2, %c1_19, %c0_20], %15 {strides = array<i32>} : memref<1x12x24x384xbf16, #tpu.memory_space<vmem>>, vector<1x8x23x128xbf16>,
    %c0_21 = arith.constant 0 : index
    %c2_22 = arith.constant 2 : index
    %c0_23 = arith.constant 0 : index
    %c128_24 = arith.constant 128 : index
    %17 = vector.load %arg9[%c0_21, %c2_22, %c0_23, %c128_24] : memref<1x12x24x384xbf16, #tpu.memory_space<vmem>>, vector<1x8x24x128xbf16>
    tpu.vector_store %arg9[%c0_21, %c2_22, %c0_23, %c128_24], %14 {strides = array<i32>} : memref<1x12x24x384xbf16, #tpu.memory_space<vmem>>, vector<1x8x24x128xbf16>,
    %18 = vector.extract_strided_slice %14 {offsets = [0, 0, 1, 0], sizes = [1, 8, 23, 128], strides = [1, 1, 1, 1]} : vector<1x8x24x128xbf16> to vector<1x8x23x128xbf16>
    %c0_25 = arith.constant 0 : index
    %c2_26 = arith.constant 2 : index
    %c0_27 = arith.constant 0 : index
    %c256_28 = arith.constant 256 : index
    %19 = vector.load %arg9[%c0_25, %c2_26, %c0_27, %c256_28] : memref<1x12x24x384xbf16, #tpu.memory_space<vmem>>, vector<1x8x23x128xbf16>
    tpu.vector_store %arg9[%c0_25, %c2_26, %c0_27, %c256_28], %18 {strides = array<i32>} : memref<1x12x24x384xbf16, #tpu.memory_space<vmem>>, vector<1x8x23x128xbf16>,
    %20 = vector.extract_strided_slice %4 {offsets = [0, 2, 0, 0], sizes = [1, 2, 24, 128], strides = [1, 1, 1, 1]} : vector<1x4x24x128xbf16> to vector<1x2x24x128xbf16>
    %21 = vector.extract_strided_slice %20 {offsets = [0, 0, 0, 0], sizes = [1, 2, 23, 128], strides = [1, 1, 1, 1]} : vector<1x2x24x128xbf16> to vector<1x2x23x128xbf16>
    %c0_29 = arith.constant 0 : index
    %c10 = arith.constant 10 : index
    %c1_30 = arith.constant 1 : index
    %c0_31 = arith.constant 0 : index
    %22 = vector.load %arg9[%c0_29, %c10, %c1_30, %c0_31] : memref<1x12x24x384xbf16, #tpu.memory_space<vmem>>, vector<1x2x23x128xbf16>
    tpu.vector_store %arg9[%c0_29, %c10, %c1_30, %c0_31], %21 {strides = array<i32>} : memref<1x12x24x384xbf16, #tpu.memory_space<vmem>>, vector<1x2x23x128xbf16>,
    %c0_32 = arith.constant 0 : index
    %c10_33 = arith.constant 10 : index
    %c0_34 = arith.constant 0 : index
    %c128_35 = arith.constant 128 : index
    %23 = vector.load %arg9[%c0_32, %c10_33, %c0_34, %c128_35] : memref<1x12x24x384xbf16, #tpu.memory_space<vmem>>, vector<1x2x24x128xbf16>
    tpu.vector_store %arg9[%c0_32, %c10_33, %c0_34, %c128_35], %20 {strides = array<i32>} : memref<1x12x24x384xbf16, #tpu.memory_space<vmem>>, vector<1x2x24x128xbf16>,
    %24 = vector.extract_strided_slice %20 {offsets = [0, 0, 1, 0], sizes = [1, 2, 23, 128], strides = [1, 1, 1, 1]} : vector<1x2x24x128xbf16> to vector<1x2x23x128xbf16>
    %c0_36 = arith.constant 0 : index
    %c10_37 = arith.constant 10 : index
    %c0_38 = arith.constant 0 : index
    %c256_39 = arith.constant 256 : index
    %25 = vector.load %arg9[%c0_36, %c10_37, %c0_38, %c256_39] : memref<1x12x24x384xbf16, #tpu.memory_space<vmem>>, vector<1x2x23x128xbf16>
    tpu.vector_store %arg9[%c0_36, %c10_37, %c0_38, %c256_39], %24 {strides = array<i32>} : memref<1x12x24x384xbf16, #tpu.memory_space<vmem>>, vector<1x2x23x128xbf16>,
    %c0_40 = arith.constant 0 : index
    %c0_41 = arith.constant 0 : index
    %c0_42 = arith.constant 0 : index
    %c0_43 = arith.constant 0 : index
    %26 = vector.load %arg9[%c0_40, %c0_41, %c0_42, %c0_43] : memref<1x12x24x384xbf16, #tpu.memory_space<vmem>>, vector<1x10x24x384xbf16>
    %27 = vector.shape_cast %26 : vector<1x10x24x384xbf16> to vector<240x384xbf16>
    %c0_44 = arith.constant 0 : index
    %c0_45 = arith.constant 0 : index
    %c0_46 = arith.constant 0 : index
    %28 = vector.load %arg4[%c0_44, %c0_45, %c0_46] : memref<3x384x128xbf16, #tpu.memory_space<vmem>>, vector<1x384x128xbf16>
    %29 = vector.shape_cast %28 : vector<1x384x128xbf16> to vector<384x128xbf16>
    %cst_47 = arith.constant dense<0.000000e+00> : vector<240x128xf32>
    %30 = tpu.matmul %27, %29, %cst_47 {dimension_numbers = #tpu.dot_dimension_numbers<[1], [0], [0], [1], [0, 0, 1, 1], [], []>} : vector<240x384xbf16>, vector<384x128xbf16>, vector<240x128xf32> -> vector<240x128xf32>
    %c0_48 = arith.constant 0 : index
    %c1_49 = arith.constant 1 : index
    %c0_50 = arith.constant 0 : index
    %c0_51 = arith.constant 0 : index
    %31 = vector.load %arg9[%c0_48, %c1_49, %c0_50, %c0_51] : memref<1x12x24x384xbf16, #tpu.memory_space<vmem>>, vector<1x10x24x384xbf16>
    %32 = vector.shape_cast %31 : vector<1x10x24x384xbf16> to vector<240x384xbf16>
    %c1_52 = arith.constant 1 : index
    %c0_53 = arith.constant 0 : index
    %c0_54 = arith.constant 0 : index
    %33 = vector.load %arg4[%c1_52, %c0_53, %c0_54] : memref<3x384x128xbf16, #tpu.memory_space<vmem>>, vector<1x384x128xbf16>
    %34 = vector.shape_cast %33 : vector<1x384x128xbf16> to vector<384x128xbf16>
    %cst_55 = arith.constant dense<0.000000e+00> : vector<240x128xf32>
    %35 = tpu.matmul %32, %34, %cst_55 {dimension_numbers = #tpu.dot_dimension_numbers<[1], [0], [0], [1], [0, 0, 1, 1], [], []>} : vector<240x384xbf16>, vector<384x128xbf16>, vector<240x128xf32> -> vector<240x128xf32>
    %36 = arith.addf %30, %35 : vector<240x128xf32>
    %c0_56 = arith.constant 0 : index
    %c2_57 = arith.constant 2 : index
    %c0_58 = arith.constant 0 : index
    %c0_59 = arith.constant 0 : index
    %37 = vector.load %arg9[%c0_56, %c2_57, %c0_58, %c0_59] : memref<1x12x24x384xbf16, #tpu.memory_space<vmem>>, vector<1x10x24x384xbf16>
    %38 = vector.shape_cast %37 : vector<1x10x24x384xbf16> to vector<240x384xbf16>
    %c2_60 = arith.constant 2 : index
    %c0_61 = arith.constant 0 : index
    %c0_62 = arith.constant 0 : index
    %39 = vector.load %arg4[%c2_60, %c0_61, %c0_62] : memref<3x384x128xbf16, #tpu.memory_space<vmem>>, vector<1x384x128xbf16>
    %40 = vector.shape_cast %39 : vector<1x384x128xbf16> to vector<384x128xbf16>
    %cst_63 = arith.constant dense<0.000000e+00> : vector<240x128xf32>
    %41 = tpu.matmul %38, %40, %cst_63 {dimension_numbers = #tpu.dot_dimension_numbers<[1], [0], [0], [1], [0, 0, 1, 1], [], []>} : vector<240x384xbf16>, vector<384x128xbf16>, vector<240x128xf32> -> vector<240x128xf32>
    %42 = arith.addf %36, %41 : vector<240x128xf32>
    %43 = vector.shape_cast %42 : vector<240x128xf32> to vector<1x10x24x128xf32>
    %c0_64 = arith.constant 0 : index
    %c0_65 = arith.constant 0 : index
    %44 = vector.load %arg5[%c0_64, %c0_65] : memref<1x128xf32, #tpu.memory_space<vmem>>, vector<1x128xf32>
    %45 = vector.shape_cast %44 : vector<1x128xf32> to vector<1x1x1x128xf32>
    %46 = vector.broadcast %45 : vector<1x1x1x128xf32> to vector<1x10x24x128xf32>
    %47 = arith.addf %43, %46 : vector<1x10x24x128xf32>
    %48 = tpu.iota {dimensions = array<i32: 0>} : vector<24x128xi32>
    %c1_i32 = arith.constant 1 : i32
    %49 = vector.broadcast %c1_i32 : i32 to vector<24x128xi32>
    %50 = arith.cmpi sge, %48, %49 : vector<24x128xi32>
    %c16_i32 = arith.constant 16 : i32
    %51 = vector.broadcast %c16_i32 : i32 to vector<24x128xi32>
    %52 = arith.cmpi sle, %48, %51 : vector<24x128xi32>
    %53 = arith.andi %50, %52 : vector<24x128xi1>
    %cst_66 = arith.constant 0.000000e+00 : f32
    %54 = vector.broadcast %cst_66 : f32 to vector<1x10x24x128xf32>
    %55 = arith.maximumf %47, %54 : vector<1x10x24x128xf32>
    %cst_67 = arith.constant 0.000000e+00 : f32
    %56 = vector.shape_cast %53 : vector<24x128xi1> to vector<1x1x24x128xi1>
    %57 = vector.broadcast %56 : vector<1x1x24x128xi1> to vector<1x10x24x128xi1>
    %58 = vector.broadcast %cst_67 : f32 to vector<1x10x24x128xf32>
    %59 = arith.select %57, %55, %58 : vector<1x10x24x128xi1>, vector<1x10x24x128xf32>
    %60 = arith.truncf %59 : vector<1x10x24x128xf32> to vector<1x10x24x128xbf16>
    %61 = vector.extract_strided_slice %60 {offsets = [0, 0, 0, 0], sizes = [1, 10, 23, 128], strides = [1, 1, 1, 1]} : vector<1x10x24x128xbf16> to vector<1x10x23x128xbf16>
    %c0_68 = arith.constant 0 : index
    %c0_69 = arith.constant 0 : index
    %c1_70 = arith.constant 1 : index
    %c0_71 = arith.constant 0 : index
    %62 = vector.load %arg10[%c0_68, %c0_69, %c1_70, %c0_71] : memref<1x10x24x384xbf16, #tpu.memory_space<vmem>>, vector<1x10x23x128xbf16>
    tpu.vector_store %arg10[%c0_68, %c0_69, %c1_70, %c0_71], %61 {strides = array<i32>} : memref<1x10x24x384xbf16, #tpu.memory_space<vmem>>, vector<1x10x23x128xbf16>,
    %c0_72 = arith.constant 0 : index
    %c0_73 = arith.constant 0 : index
    %c0_74 = arith.constant 0 : index
    %c128_75 = arith.constant 128 : index
    %63 = vector.load %arg10[%c0_72, %c0_73, %c0_74, %c128_75] : memref<1x10x24x384xbf16, #tpu.memory_space<vmem>>, vector<1x10x24x128xbf16>
    tpu.vector_store %arg10[%c0_72, %c0_73, %c0_74, %c128_75], %60 {strides = array<i32>} : memref<1x10x24x384xbf16, #tpu.memory_space<vmem>>, vector<1x10x24x128xbf16>,
    %64 = vector.extract_strided_slice %60 {offsets = [0, 0, 1, 0], sizes = [1, 10, 23, 128], strides = [1, 1, 1, 1]} : vector<1x10x24x128xbf16> to vector<1x10x23x128xbf16>
    %c0_76 = arith.constant 0 : index
    %c0_77 = arith.constant 0 : index
    %c0_78 = arith.constant 0 : index
    %c256_79 = arith.constant 256 : index
    %65 = vector.load %arg10[%c0_76, %c0_77, %c0_78, %c256_79] : memref<1x10x24x384xbf16, #tpu.memory_space<vmem>>, vector<1x10x23x128xbf16>
    tpu.vector_store %arg10[%c0_76, %c0_77, %c0_78, %c256_79], %64 {strides = array<i32>} : memref<1x10x24x384xbf16, #tpu.memory_space<vmem>>, vector<1x10x23x128xbf16>,
    %c0_i32 = arith.constant 0 : i32
    %66 = arith.cmpi eq, %arg1, %c0_i32 : i32
    %67 = arith.extui %66 : i1 to i32
    %c0_i32_80 = arith.constant 0 : i32
    %68 = arith.cmpi ne, %67, %c0_i32_80 : i32
    scf.if %68 {
      %cst_117 = arith.constant 0.000000e+00 : bf16
      %97 = vector.broadcast %cst_117 : bf16 to vector<1x1x24x384xbf16>
      %c0_118 = arith.constant 0 : index
      %c0_119 = arith.constant 0 : index
      %c0_120 = arith.constant 0 : index
      %c0_121 = arith.constant 0 : index
      %98 = vector.load %arg10[%c0_118, %c0_119, %c0_120, %c0_121] : memref<1x10x24x384xbf16, #tpu.memory_space<vmem>>, vector<1x1x24x384xbf16>
      tpu.vector_store %arg10[%c0_118, %c0_119, %c0_120, %c0_121], %97 {strides = array<i32>} : memref<1x10x24x384xbf16, #tpu.memory_space<vmem>>, vector<1x1x24x384xbf16>,
    } else {
    }
    %c1_i32_81 = arith.constant 1 : i32
    %69 = arith.cmpi eq, %arg1, %c1_i32_81 : i32
    %70 = arith.extui %69 : i1 to i32
    %c0_i32_82 = arith.constant 0 : i32
    %71 = arith.cmpi ne, %70, %c0_i32_82 : i32
    scf.if %71 {
      %cst_117 = arith.constant 0.000000e+00 : bf16
      %97 = vector.broadcast %cst_117 : bf16 to vector<1x1x24x384xbf16>
      %c0_118 = arith.constant 0 : index
      %c9 = arith.constant 9 : index
      %c0_119 = arith.constant 0 : index
      %c0_120 = arith.constant 0 : index
      %98 = vector.load %arg10[%c0_118, %c9, %c0_119, %c0_120] : memref<1x10x24x384xbf16, #tpu.memory_space<vmem>>, vector<1x1x24x384xbf16>
      tpu.vector_store %arg10[%c0_118, %c9, %c0_119, %c0_120], %97 {strides = array<i32>} : memref<1x10x24x384xbf16, #tpu.memory_space<vmem>>, vector<1x1x24x384xbf16>,
    } else {
    }
    %c0_83 = arith.constant 0 : index
    %c0_84 = arith.constant 0 : index
    %c0_85 = arith.constant 0 : index
    %c0_86 = arith.constant 0 : index
    %72 = vector.load %arg10[%c0_83, %c0_84, %c0_85, %c0_86] : memref<1x10x24x384xbf16, #tpu.memory_space<vmem>>, vector<1x8x24x384xbf16>
    %73 = vector.shape_cast %72 : vector<1x8x24x384xbf16> to vector<192x384xbf16>
    %c0_87 = arith.constant 0 : index
    %c0_88 = arith.constant 0 : index
    %c0_89 = arith.constant 0 : index
    %74 = vector.load %arg6[%c0_87, %c0_88, %c0_89] : memref<3x384x128xbf16, #tpu.memory_space<vmem>>, vector<1x384x128xbf16>
    %75 = vector.shape_cast %74 : vector<1x384x128xbf16> to vector<384x128xbf16>
    %cst_90 = arith.constant dense<0.000000e+00> : vector<192x128xf32>
    %76 = tpu.matmul %73, %75, %cst_90 {dimension_numbers = #tpu.dot_dimension_numbers<[1], [0], [0], [1], [0, 0, 1, 1], [], []>} : vector<192x384xbf16>, vector<384x128xbf16>, vector<192x128xf32> -> vector<192x128xf32>
    %c0_91 = arith.constant 0 : index
    %c1_92 = arith.constant 1 : index
    %c0_93 = arith.constant 0 : index
    %c0_94 = arith.constant 0 : index
    %77 = vector.load %arg10[%c0_91, %c1_92, %c0_93, %c0_94] : memref<1x10x24x384xbf16, #tpu.memory_space<vmem>>, vector<1x8x24x384xbf16>
    %78 = vector.shape_cast %77 : vector<1x8x24x384xbf16> to vector<192x384xbf16>
    %c1_95 = arith.constant 1 : index
    %c0_96 = arith.constant 0 : index
    %c0_97 = arith.constant 0 : index
    %79 = vector.load %arg6[%c1_95, %c0_96, %c0_97] : memref<3x384x128xbf16, #tpu.memory_space<vmem>>, vector<1x384x128xbf16>
    %80 = vector.shape_cast %79 : vector<1x384x128xbf16> to vector<384x128xbf16>
    %cst_98 = arith.constant dense<0.000000e+00> : vector<192x128xf32>
    %81 = tpu.matmul %78, %80, %cst_98 {dimension_numbers = #tpu.dot_dimension_numbers<[1], [0], [0], [1], [0, 0, 1, 1], [], []>} : vector<192x384xbf16>, vector<384x128xbf16>, vector<192x128xf32> -> vector<192x128xf32>
    %82 = arith.addf %76, %81 : vector<192x128xf32>
    %c0_99 = arith.constant 0 : index
    %c2_100 = arith.constant 2 : index
    %c0_101 = arith.constant 0 : index
    %c0_102 = arith.constant 0 : index
    %83 = vector.load %arg10[%c0_99, %c2_100, %c0_101, %c0_102] : memref<1x10x24x384xbf16, #tpu.memory_space<vmem>>, vector<1x8x24x384xbf16>
    %84 = vector.shape_cast %83 : vector<1x8x24x384xbf16> to vector<192x384xbf16>
    %c2_103 = arith.constant 2 : index
    %c0_104 = arith.constant 0 : index
    %c0_105 = arith.constant 0 : index
    %85 = vector.load %arg6[%c2_103, %c0_104, %c0_105] : memref<3x384x128xbf16, #tpu.memory_space<vmem>>, vector<1x384x128xbf16>
    %86 = vector.shape_cast %85 : vector<1x384x128xbf16> to vector<384x128xbf16>
    %cst_106 = arith.constant dense<0.000000e+00> : vector<192x128xf32>
    %87 = tpu.matmul %84, %86, %cst_106 {dimension_numbers = #tpu.dot_dimension_numbers<[1], [0], [0], [1], [0, 0, 1, 1], [], []>} : vector<192x384xbf16>, vector<384x128xbf16>, vector<192x128xf32> -> vector<192x128xf32>
    %88 = arith.addf %82, %87 : vector<192x128xf32>
    %89 = vector.shape_cast %88 : vector<192x128xf32> to vector<1x8x24x128xf32>
    %c0_107 = arith.constant 0 : index
    %c0_108 = arith.constant 0 : index
    %90 = vector.load %arg7[%c0_107, %c0_108] : memref<1x128xf32, #tpu.memory_space<vmem>>, vector<1x128xf32>
    %91 = vector.shape_cast %90 : vector<1x128xf32> to vector<1x1x1x128xf32>
    %92 = vector.broadcast %91 : vector<1x1x1x128xf32> to vector<1x8x24x128xf32>
    %93 = arith.addf %89, %92 : vector<1x8x24x128xf32>
    %c0_109 = arith.constant 0 : index
    %c0_110 = arith.constant 0 : index
    %c0_111 = arith.constant 0 : index
    %c0_112 = arith.constant 0 : index
    %94 = vector.load %arg2[%c0_109, %c0_110, %c0_111, %c0_112] : memref<1x8x24x128xf32, #tpu.memory_space<vmem>>, vector<1x8x24x128xf32>
    %95 = arith.addf %93, %94 : vector<1x8x24x128xf32>
    %c0_113 = arith.constant 0 : index
    %c0_114 = arith.constant 0 : index
    %c0_115 = arith.constant 0 : index
    %c0_116 = arith.constant 0 : index
    %96 = vector.load %arg8[%c0_113, %c0_114, %c0_115, %c0_116] : memref<1x8x24x128xf32, #tpu.memory_space<vmem>>, vector<1x8x24x128xf32>
    tpu.vector_store %arg8[%c0_113, %c0_114, %c0_115, %c0_116], %95 {strides = array<i32>} : memref<1x8x24x128xf32, #tpu.memory_space<vmem>>, vector<1x8x24x128xf32>,
    return
  }
  func.func @transform_0(%arg0: i32, %arg1: i32) -> (i32, i32, i32, i32) {
    %c0_i32 = arith.constant 0 : i32
    %c0_i32_0 = arith.constant 0 : i32
    %c0_i32_1 = arith.constant 0 : i32
    return %arg0, %arg1, %c0_i32, %c0_i32_0 : i32, i32, i32, i32
  }
  func.func @transform_1(%arg0: i32, %arg1: i32) -> (i32, i32, i32, i32, i32) {
    %c0_i32 = arith.constant 0 : i32
    %c0_i32_0 = arith.constant 0 : i32
    %c0_i32_1 = arith.constant 0 : i32
    %c0_i32_2 = arith.constant 0 : i32
    return %arg0, %arg1, %c0_i32, %c0_i32_0, %c0_i32_1 : i32, i32, i32, i32, i32
  }
  func.func @transform_2(%arg0: i32, %arg1: i32) -> (i32, i32, i32) {
    %c0_i32 = arith.constant 0 : i32
    %c0_i32_0 = arith.constant 0 : i32
    %c0_i32_1 = arith.constant 0 : i32
    %c0_i32_2 = arith.constant 0 : i32
    return %c0_i32, %c0_i32_0, %c0_i32_1 : i32, i32, i32
  }
  func.func @transform_3(%arg0: i32, %arg1: i32) -> (i32, i32) {
    %c0_i32 = arith.constant 0 : i32
    %c0_i32_0 = arith.constant 0 : i32
    %c0_i32_1 = arith.constant 0 : i32
    return %c0_i32, %c0_i32_0 : i32, i32
  }
  func.func @transform_4(%arg0: i32, %arg1: i32) -> (i32, i32, i32) {
    %c0_i32 = arith.constant 0 : i32
    %c0_i32_0 = arith.constant 0 : i32
    %c0_i32_1 = arith.constant 0 : i32
    %c0_i32_2 = arith.constant 0 : i32
    return %c0_i32, %c0_i32_0, %c0_i32_1 : i32, i32, i32
  }
  func.func @transform_5(%arg0: i32, %arg1: i32) -> (i32, i32) {
    %c0_i32 = arith.constant 0 : i32
    %c0_i32_0 = arith.constant 0 : i32
    %c0_i32_1 = arith.constant 0 : i32
    return %c0_i32, %c0_i32_0 : i32, i32
  }
  func.func @transform_6(%arg0: i32, %arg1: i32) -> (i32, i32, i32, i32) {
    %c0_i32 = arith.constant 0 : i32
    %c0_i32_0 = arith.constant 0 : i32
    %c0_i32_1 = arith.constant 0 : i32
    return %arg0, %arg1, %c0_i32, %c0_i32_0 : i32, i32, i32, i32
  }
}

</mosaic_0001>

<bundles_post_ra>
// kernel: tpu_custom_call.1
= control target key start
LH: loop header
LB: loop body
LE: loop exit
PB: predicated region body
PF: predicated region fallthrough
CT: control target
= control target key end

     0   :  { %s11063_s0 = inlined_call_operand.hbm [shape: f32[2,16,24,128], index: 0, kind: input, shape index: {}]   ;;  %s11064_s1 = inlined_call_operand.hbm [shape: f32[2,2,4,24,128], index: 1, kind: input, shape index: {}]   ;;  %s11065_s2 = inlined_call_operand.hbm [shape: bf16[3,384,128], index: 2, kind: input, shape index: {}]   ;;  %s11066_s3 = inlined_call_operand.vmem [shape: f32[1,128], index: 3, kind: input, shape index: {}]   ;;  %s11067_s4 = inlined_call_operand.hbm [shape: bf16[3,384,128], index: 4, kind: input, shape index: {}]   ;;  %s11068_s5 = inlined_call_operand.vmem [shape: f32[1,128], index: 5, kind: input, shape index: {}]   ;;  %s11069_s6 = inlined_call_operand.hbm [shape: f32[2,16,24,128], index: 6, kind: output, shape index: {}]  }
   0x1   :  { %11079 = sst [smem:[#allocation33_spill]] %s11063_s0 }
   0x2   :  { %11080 = sst [smem:[#allocation34_spill]] %s11065_s2 }
   0x3   :  { %11081 = sst [smem:[#allocation35_spill]] %s11067_s4 }
   0x4   :  { %11082 = sst [smem:[#allocation36_spill]] %s11069_s6 }
   0x5   :  { %11 = vsyncpa [#allocation5], 0 }
   0x6   :  { %13 = vsyncpa [#allocation5 + $0x1], 0 }
   0x7   :  { %14 = vsyncpa [#allocation8], 0 }
   0x8   :  { %16 = vsyncpa [#allocation8 + $0x1], 0 }
   0x9   :  { %17 = vsyncpa [#allocation11], 0 }
   0xa   :  { %18 = vsyncpa [#allocation6], 0 }
   0xb   :  { %20 = vsyncpa [#allocation6 + $0x1], 0  ;;  %s9297_s21 = smov 0   ;;  %s9299_s22 = smov 0  }
   0xc   :  { %s9301_s23 = smov 0   ;;  %s9303_s24 = smov 0  }
   0xd   :  { %s9305_s25 = smov 0   ;;  %s9307_s26 = smov 0  }
   0xe   :  { %s9309_s27 = smov 0   ;;  %s9311_s28 = smov 0  }
   0xf LB: > { %11083 = sst [smem:[#allocation18_spill]] %s9217_s21  ;;  %s9338_s29 = sadd.s32 4294967295, %s9245_s28   ;;  %s9245_s28 = sphi %s9311_s28, %s26_s28   ;;  %s9241_s27 = sphi %s9309_s27, %s11144_s27   ;;  %s9237_s26 = sphi %s9307_s26, %s11143_s26   ;;  %s9233_s25 = sphi %s9305_s25, %s11142_s25   ;;  %s9229_s24 = sphi %s9303_s24, %s11141_s24   ;;  %s9225_s23 = sphi %s9301_s23, %s11136_s23   ;;  %s9221_s22 = sphi %s9299_s22, %s11140_s22   ;;  %s9217_s21 = sphi %s9297_s21, %s11139_s21  }
  0x10   : > { %11084 = sst [smem:[#allocation19_spill]] %s9225_s23  ;;  %s6929_s30 = sadd.s32 4294967294, %s9245_s28  }
  0x11   : > { %11085 = sst [smem:[#allocation20_spill]] %s9233_s25  ;;  %p60_p0 = scmp.ne.s32.totalorder %s9221_s22, %s9217_s21 }
  0x12   : > { %p11070_p1 = scmp.eq.s32.totalorder %s9338_s29, 0  ;;  %p204_p3 = scmp.eq.s32.totalorder %s6929_s30, 3 }
  0x13   : > { %p6930_p5 = scmp.ge.s32.totalorder %s9245_s28, 1  ;;  %p211_p7 = scmp.lt.s32.totalorder %s9245_s28, 5 }
  0x14   : > { %p9347_p4 = por %p11070_p1, %p60_p0  ;;  %p9352_p6 = por %p204_p3, %p60_p0 }
  0x15   : > { %p9357_p8 = pnand %p6930_p5, %p211_p7  ;;  %s9247_s10 = smov [#allocation9]  }
  0x16   : > { %s11087_s8 = scalar_select %p9352_p6, 1, 0 }
  0x17   : > { %s223_s11 = sshll.u32 %s9247_s10, 4  ;;  %p8568_p9 = pneg %p9357_p8  ;;  %s224_s11 = int_to_ptr.vmem [resolvable:$true] %s223_s11 }
  0x18   : > { %11088 = sst [smem:[#allocation21_spill]] %s11087_s8  ;;  %s9248_s13 = smov [#allocation10]  }
  0x19   : > { %p9365_p10 = pnand %p8568_p9, %p11070_p1  ;;  %s239_s14 = sshll.u32 %s9248_s13, 4  ;;  %s240_s14 = int_to_ptr.vmem [resolvable:$true] %s239_s14 }
  0x1a   : > { %s9040_s15 = scalar_lea.vmem %s224_s11, 9216  ;;  %p9048_p3 = scmp.lt.s32.totalorder %s224_s11, %s224_s11 }
  0x1b   : > { %p9031_p11 = pneg %p9365_p10  ;;  %p9041_p12 = scmp.ne.s32.totalorder %s224_s11, %s9040_s15 }
  0x1c   : > { %p9049_p5 = scmp.lt.s32.totalorder %s9040_s15, %s9040_s15 }
  0x1d   : > { %p9043_p13 = pnand %p9041_p12, %p9031_p11 }
  0x1e   : > { %p9050_p7 = por %p9049_p5, %p9048_p3 }
  0x1f   : > { %p9044_p0 = pneg %p9043_p13 }
  0x21   : > { %p9051_p9 = pnand %p9050_p7, %p9044_p0 }
  0x23   : > { %9054 = shalt.err (!%p9051_p9)
}
  0x24   : > { %s9249_s16 = smov 64   ;;  %s9250_s17 = smov 4  }
  0x25   : > { %s11091_s2 = sld [smem:[#allocation34_spill]]  ;;  %s9066_s20 = scalar_lea.vmem %s240_s14, 9216 }
  0x26   : > { %p9067_p1 = scmp.ne.s32.totalorder %s240_s14, %s9066_s20  ;;  %p9074_p2 = scmp.lt.s32.totalorder %s240_s14, %s240_s14 }
  0x27   : > { %p9075_p6 = scmp.lt.s32.totalorder %s9066_s20, %s9066_s20 }
  0x28   : > { %p9069_p12 = pnand %p9067_p1, %p9031_p11 }
  0x29   : > { %p9076_p3 = por %p9075_p6, %p9074_p2 }
  0x2a   : > { %p9070_p13 = pneg %p9069_p12 }
  0x2b   : > { %8571 = dma.hbm_to_vmem [thread:$0]  (!%p9365_p10), %s11091_s2, 9216, %s224_s11, [#allocation8], %s9249_s16, %s9249_s16, %s9250_s17  }
  0x2c   : > { %p9077_p0 = pnand %p9076_p3, %p9070_p13 }
  0x2e   : > { %9080 = shalt.err (!%p9077_p0)
}
  0x2f   : > { %s11092_s4 = sld [smem:[#allocation35_spill]]  ;;  %s35_s11 = sadd.s32 1, %s9237_s26 }
  0x30   : > { %s38_s13 = sadd.s32 1, %s9241_s27  ;;  %p36_p1 = scmp.ge.s32.totalorder %s35_s11, 2 }
  0x31   : > { %s47_s12 = sadd.s32 1, %s9225_s23  ;;  %p54_p2 = scmp.ne.s32.totalorder %s9225_s23, %s9221_s22 }
  0x32   : > { %p55_p6 = scmp.eq.s32.totalorder %s9245_s28, 0  ;;  %s11146_s11 = smov (%p36_p1, %s35_s11), 0 }
  0x33   : > { %11093 = sst [smem:[#allocation22_spill]] %s11146_s11  ;;  %s11148_s13 = smov (!%p36_p1, %s38_s13), %s9241_s27 }
  0x34   : > { %s43_s15 = ssub.s32 %s9237_s26, %s11146_s11  ;;  %p9398_p11 = por %p55_p6, %p54_p2 }
  0x35   : > { %8574 = dma.hbm_to_vmem [thread:$0]  (!%p9365_p10), %s11092_s4, 9216, %s240_s14, [#allocation11], %s9249_s16, %s9249_s16, %s9250_s17  }
  0x36   : > { %p40_p10 = scmp.ge.s32.totalorder %s11148_s13, 2  ;;  %p11095_p5 = scmp.eq.s32.totalorder %s9338_s29, 3 }
  0x37   : > { %p8588_p9 = scmp.lt.s32.totalorder %s9245_s28, 4  ;;  %s9410_s16 = sand.u32 1, %s9225_s23  }
  0x38   : > { %p9404_p7 = por %p11095_p5, %p54_p2  ;;  %s11150_s13 = smov (%p40_p10, %s11148_s13), 0 }
  0x39   : > { %11098 = sst [smem:[#allocation24_spill]] %s11150_s13  ;;  %s8544_s17 = smul.u32 192, %s9410_s16 }
  0x3a   : > { %s11096_s14 = scalar_select %p9404_p7, 1, 0 }
  0x3b   : > { %s42_s19 = ssub.s32 %s9241_s27, %s11150_s13  ;;  %s8545_s20 = smul.u32 24, %s9237_s26 }
  0x3c   : > { %11097 = sst [smem:[#allocation23_spill]] %s11096_s14  ;;  %s44_s30 = sor.u32 %s43_s15, %s42_s19 }
  0x3d   : > { %p45_p12 = scmp.eq.s32.totalorder %s44_s30, 0  ;;  %s8546_s10 = smul.u32 48, %s9241_s27 }
  0x3e   : > { %s260_s2 = scalar_lea.vmem [#allocation4], %s8544_s17  ;;  %p9421_p13 = pnand %p8588_p9, %p9398_p11 }
  0x3f   : > { %s270_s4 = sshll.u32 %s260_s2, 4  ;;  %s267_s21 = sadd.s32 %s8546_s10, %s8545_s20  ;;  %s271_s4 = int_to_ptr.vmem [resolvable:$true] %s270_s4 }
  0x40   : > { %s9426_s8 = scalar_select %p45_p12, %s9225_s23, %s47_s12  }
  0x41   : > { %s6936_s6 = sshll.u32 %s267_s21, 7  ;;  %s11101_s0 = sld [smem:[#allocation33_spill]] }
  0x42   : > { %11100 = sst [smem:[#allocation25_spill]] %s9426_s8  ;;  %s257_s19 = scalar_lea.sflag [#allocation5], %s9410_s16 }
  0x43   : > { %p9083_p3 = pneg %p9421_p13  ;;  %s9094_s2 = scalar_lea.vmem %s271_s4, 3072 }
  0x44   : > { %p9095_p0 = scmp.ne.s32.totalorder %s271_s4, %s9094_s2  ;;  %s9251_s18 = smov [#allocation4]  }
  0x45   : > { %s9099_s17 = sshll.u32 %s9251_s18, 4  ;;  %s9100_s17 = int_to_ptr.vmem [resolvable:$false] %s9099_s17 }
  0x46   : > { %p9097_p1 = pnand %p9095_p0, %p9083_p3  ;;  %s9101_s12 = scalar_lea.vmem %s9100_s17, 6144 }
  0x47   : > { %s269_s15 = scalar_lea.hbm %s11101_s0, %s6936_s6  ;;  %p9102_p6 = scmp.lt.s32.totalorder %s271_s4, %s9100_s17 }
  0x48   : > { %p9098_p2 = pneg %p9097_p1  ;;  %p9103_p11 = scmp.lt.s32.totalorder %s9101_s12, %s9094_s2 }
  0x4a   : > { %p9104_p10 = por %p9103_p11, %p9102_p6 }
  0x4c   : > { %p9105_p5 = pnand %p9104_p10, %p9098_p2 }
  0x4e   : > { %9108 = shalt.err (!%p9105_p5)
}
  0x4f   : > { %s9252_s21 = smov 128   ;;  %s9253_s6 = smov 8  }
  0x50   : > { %8578 = dma.hbm_to_vmem [thread:$0]  (!%p9421_p13), %s269_s15, 3072, %s271_s4, %s257_s19, %s9252_s21, %s9252_s21, %s9253_s6  }
  0x51   : > { %s280_s13 = sand.u32 1, %s9245_s28   ;;  %s8547_s14 = smul.u32 96, %s9410_s16 }
  0x52   : > { %s8548_s20 = smul.u32 12, %s9237_s26  ;;  %s281_s23 = scalar_lea.sflag [#allocation8], %s280_s13 }
  0x53   : > { %s8549_s30 = smul.u32 24, %s9241_s27  ;;  %s284_s10 = scalar_lea.vmem [#allocation7], %s8547_s14 }
  0x54   : > { %s293_s2 = sshll.u32 %s284_s10, 4  ;;  %s9254_s4 = smov [#allocation7]   ;;  %s294_s2 = int_to_ptr.vmem [resolvable:$true] %s293_s2 }
  0x55   : > { %s290_s18 = sadd.s32 %s8549_s30, %s8548_s20  ;;  %s9122_s25 = scalar_lea.vmem %s294_s2, 1536 }
  0x56   : > { %s6937_s17 = sshll.u32 %s290_s18, 7  ;;  %p9123_p9 = scmp.ne.s32.totalorder %s294_s2, %s9122_s25 }
  0x57   : > { %s292_s8 = scalar_lea.hbm %s11064_s1, %s6937_s17  ;;  %s9127_s16 = sshll.u32 %s9254_s4, 4  ;;  %s9128_s16 = int_to_ptr.vmem [resolvable:$false] %s9127_s16 }
  0x58   : > { %p9125_p12 = pnand %p9123_p9, %p9083_p3  ;;  %s9129_s15 = scalar_lea.vmem %s9128_s16, 3072 }
  0x59   : > { %p9130_p1 = scmp.lt.s32.totalorder %s294_s2, %s9128_s16  ;;  %p9131_p2 = scmp.lt.s32.totalorder %s9129_s15, %s9122_s25 }
  0x5a   : > { %p9126_p0 = pneg %p9125_p12 }
  0x5b   : > { %p9132_p6 = por %p9131_p2, %p9130_p1 }
  0x5d   : > { %p9133_p11 = pnand %p9132_p6, %p9126_p0 }
  0x5f   : > { %9136 = shalt.err (!%p9133_p11)
}
  0x60   : > { %8581 = dma.hbm_to_vmem [thread:$0]  (!%p9421_p13), %s292_s8, 1536, %s294_s2, %s281_s23, %s9252_s21, %s9252_s21, %s9253_s6  }
  0x61   : > { %305 = sbr.rel (%p9357_p8) target bundleno = 1225 (0x4c9), region = 44 }
  0x66   : > { %s9460_s0 = sand.u32 1, %s9221_s22  }
  0x67   : > { %s8550_s25 = smul.u32 192, %s9460_s0  ;;  %s308_s19 = scalar_lea.sflag [#allocation5], %s9460_s0 }
  0x69   : > { %s9466_s13 = scalar_lea.vmem [#allocation4], %s8550_s25 }
  0x6a   : > { %9196 = dma.done.wait (%p9347_p4), %s308_s19, 3072  }
  0x6b   : > { %9198 = vsyncadd (%p9347_p4), %s308_s19, 4294964224  ;;  %s316_s23 = sand.u32 1, %s9338_s29   ;;  %s8551_s8 = smul.u32 96, %s9460_s0 }
  0x6c   : > { %s317_s9 = scalar_lea.sflag [#allocation8], %s316_s23 }
  0x6d   : > { %s9474_s11 = scalar_lea.vmem [#allocation7], %s8551_s8 }
  0x6e   : > { %9200 = dma.done.wait (%p9347_p4), %s317_s9, 1536  }
  0x6f   : > { %9202 = vsyncadd (%p9347_p4), %s317_s9, 4294965760  ;;  %p11102_p8 = scmp.eq.s32.totalorder %s9338_s29, 0 }
  0x71   : > { %9204 = dma.done.wait (%p11102_p8), [#allocation8], 9216   ;;  %p11103_p13 = pmov %p11102_p8 }
  0x72   : > { %p11104_p3 = pmov %p11102_p8 }
  0x73   : > { %9206 = vsyncadd (%p11103_p13), [#allocation8], 4294958080 }
  0x74   : > { %9208 = dma.done.wait (%p11104_p3), [#allocation11], 9216   ;;  %p11105_p10 = pmov %p11104_p3 }
  0x75   : > { %v9255_v0 = vmov 0.0   ;;  %vm9256_vm0 = vmmov 0   ;;  %v8668_v1 = vld [vmem:[#allocation9 + $0x138] sm:$0xff]   ;;  %v8671_v4 = vld [vmem:[#allocation9 + $0x130] sm:$0xff]   ;;  %v8674_v7 = vld [vmem:[#allocation9 + $0x128] sm:$0xff]   ;;  %vm472_vm3 = vcmask 1043456  }
  0x76   : > { %9210 = vsyncadd (%p11105_p10), [#allocation11], 4294958080  ;;  %8180 = vmatprep.subr.bf16.mxu1 %v9255_v0  ;;  %8196 = vmatprep.mubr.msk.bf16.mxu1 %vm9256_vm0, %v9255_v0  ;;  %v8669_v2 = vld [vmem:[#allocation9 + $0x178] sm:$0xff]   ;;  %v8672_v5 = vld [vmem:[#allocation9 + $0x170] sm:$0xff]   ;;  %vm413_vm1 = vsmask.f32 256 }
  0x77   : > { %7469 = vmatprep.subr.bf16.mxu0 %v8668_v1  ;;  %v8670_v3 = vld [vmem:[#allocation9 + $0xf8] sm:$0xff]   ;;  %8181 = vmatpush3.bf16.msra.mxu1 %v8669_v2  ;;  %v8673_v6 = vld [vmem:[#allocation9 + $0xf0] sm:$0xff]   ;;  %v8675_v8 = vld [vmem:[#allocation9 + $0x168] sm:$0xff]   ;;  %vm414_vm2 = vsmask.f32 4368  ;;  %s10407_s14 = scalar_lea.vmem [#allocation12], %s8550_s25 }
  0x78   : > { %7470 = vmatpush3.bf16.msra.mxu0 %v8670_v3  ;;  %8182 = vmatprep.subr.bf16.mxu1 %v9255_v0  ;;  %v8676_v9 = vld [vmem:[#allocation9 + $0xe8] sm:$0xff]   ;;  %v8677_v10 = vld [vmem:[#allocation9 + $0x120] sm:$0xff]   ;;  %v8680_v13 = vld [vmem:[#allocation9 + $0x118] sm:$0xff]   ;;  %vm473_vm4 = vsmask.f32 7938  ;;  %p7215_p4 = scmp.ne.s32.totalorder %s9229_s24, 0 }
  0x79   : > { %7471 = vmatprep.subr.bf16.mxu0 %v8671_v4  ;;  %v8678_v11 = vld [vmem:[#allocation9 + $0x160] sm:$0xff]   ;;  %v8681_v14 = vld [vmem:[#allocation9 + $0x158] sm:$0xff]   ;;  %v8683_v16 = vld [vmem:[#allocation9 + $0x110] sm:$0xff]   ;;  %vm497_vm5 = vsmask.f32 3328 }
  0x7a   : > { %v8679_v12 = vld [vmem:[#allocation9 + $0xe0] sm:$0xff]   ;;  %v8682_v15 = vld [vmem:[#allocation9 + $0xd8] sm:$0xff]   ;;  %v8684_v17 = vld [vmem:[#allocation9 + $0x150] sm:$0xff]   ;;  %vm498_vm6 = vsmask.f32 7440 }
  0x7b   : > { %8183 = vmatpush3.bf16.msra.mxu1 %v8672_v5  ;;  %v8685_v18 = vld [vmem:[#allocation9 + $0xd0] sm:$0xff]   ;;  %v8686_v19 = vld [vmem:[#allocation9 + $0x108] sm:$0xff]   ;;  %v368_v22 = vld [vmem:[%s9474_s11 + $0x18] sm:$0xff] }
  0x7c   : > { %7472 = vmatpush3.bf16.msra.mxu0 %v8673_v6  ;;  %8184 = vmatprep.subr.bf16.mxu1 %v9255_v0  ;;  %v8687_v20 = vld [vmem:[#allocation9 + $0x148] sm:$0xff]   ;;  %v369_v23 = vld [vmem:[%s9474_s11 + $0x20] sm:$0xff]  ;;  %v380_v25 = vmax.f32 %v368_v22, 0.0  ;;  %v8696_v39 = vld [vmem:[#allocation9 + $0x78] sm:$0xff]  }
  0x7d   : > { %7473 = vmatprep.subr.bf16.mxu0 %v8674_v7  ;;  %v8688_v21 = vld [vmem:[#allocation9 + $0xc8] sm:$0xff]   ;;  %v8689_v24 = vld [vmem:[#allocation9 + $0x100] sm:$0xff]   ;;  %v381_v26 = vmax.f32 %v369_v23, 0.0  ;;  %vm9504_vm7 = vmor %vm413_vm1, %vm414_vm2 }
  0x7e   : > { %v370_v27 = vld [vmem:[%s9474_s11 + $0x28] sm:$0xff]  ;;  %v8690_v28 = vld [vmem:[#allocation9 + $0x140] sm:$0xff]   ;;  %v7406_v30 = vpack.c.bf16 %v380_v25, %v380_v25  ;;  %vm9510_vm8 = vmand %vm472_vm3, %vm473_vm4 }
  0x7f   : > { %8185 = vmatpush3.bf16.msra.mxu1 %v8675_v8  ;;  %v382_v29 = vmax.f32 %v370_v27, 0.0  ;;  %v7407_v31 = vpack.c.bf16 %v381_v26, %v381_v26  ;;  %v8691_v32 = vld [vmem:[#allocation9 + $0xc0] sm:$0xff]   ;;  %v480_v47 = vld [vmem:[#allocation2 + $0x24] sm:$0xf]  ;;  %vm9516_vm9 = vmor %vm497_vm5, %vm498_vm6 }
  0x80   : > { %7474 = vmatpush3.bf16.msra.mxu0 %v8676_v9  ;;  %8186 = vmatprep.subr.bf16.mxu1 %v9255_v0  ;;  %v545_v34 = vld [vmem:[%s9466_s13] sm:$0xff]  ;;  %v442_v35 = vshrl.u32 %v7406_v30, 16  ;;  %v445_v36 = vshll.u32 %v7406_v30, 16  ;;  %494 = vst [vmem:[#allocation2 + $0x28] sm:$0xf] %v7406_v30  ;;  %v546_v59 = vld [vmem:[%s9466_s13 + $0x8] sm:$0xff]  ;;  %vm9535_vm10 = vmand %vm472_vm3, %vm497_vm5 }
  0x81   : > { %7475 = vmatprep.subr.bf16.mxu0 %v8677_v10  ;;  %v7408_v33 = vpack.c.bf16 %v382_v29, %v382_v29  ;;  %v450_v37 = vshrl.u32 %v7407_v31, 16  ;;  %v453_v38 = vshll.u32 %v7407_v31, 16  ;;  %495 = vst [vmem:[#allocation2 + $0x34] sm:$0xf] %v7407_v31  ;;  %v569_v43 = vmax.f32 %v545_v34, 0.0  ;;  %v547_v1 = vld [vmem:[%s9466_s13 + $0x10] sm:$0xff] }
  0x82   : > { %v444_v44 = vrot.slane %v442_v35, 7  ;;  %v514_v48 = vrot.slane %v442_v35, 4  ;;  %v515_v49 = vrot.slane %v445_v36, 5  ;;  %v548_v10 = vld [vmem:[%s9466_s13 + $0x18] sm:$0xff]  ;;  %v898_v22 = vld [vmem:[#allocation2 + $0x48] sm:$0xf] }
  0x83   : > { %8187 = vmatpush3.bf16.msra.mxu1 %v8678_v11  ;;  %v462_v41 = vshll.u32 %v7408_v33, 16  ;;  %496 = vst [vmem:[#allocation2 + $0x40] sm:$0xf] %v7408_v33  ;;  %v459_v42 = vshrl.u32 %v7408_v33, 16  ;;  %v452_v45 = vrot.slane %v450_v37, 7  ;;  %v520_v51 = vrot.slane %v450_v37, 4 }
  0x84   : > { %7476 = vmatpush3.bf16.msra.mxu0 %v8679_v12  ;;  %8188 = vmatprep.subr.bf16.mxu1 %v9255_v0  ;;  %v518_v52 = vrot.slane %v453_v38, 5  ;;  %v447_v55 = vor.u32 %v445_v36, %v444_v44  ;;  %v448_v56 = vrot.slane %v444_v44, 4  ;;  %v516_v58 = vor.u32 %v515_v49, %v514_v48  ;;  %v549_v11 = vld [vmem:[%s9466_s13 + $0x20] sm:$0xff]  ;;  %v8697_v35 = vld [vmem:[#allocation9 + $0x38] sm:$0xff]  }
  0x85   : > { %7477 = vmatprep.subr.bf16.mxu0 %v8680_v13  ;;  %v523_v53 = vrot.slane %v462_v41, 5  ;;  %v461_v54 = vrot.slane %v459_v42, 7  ;;  %v455_v57 = vor.u32 %v453_v38, %v452_v45  ;;  %v457_v61 = vrot.slane %v452_v45, 4 }
  0x86   : > { %v521_v60 = vor.u32 %v520_v51, %v518_v52  ;;  %v7409_v63 = vpack.c.bf16 %v569_v43, %v569_v43  ;;  %v481_v3 = vsel %vm9510_vm8, %v447_v55, %v480_v47  ;;  %v517_v4 = vrot.slane %v516_v58, 4  ;;  %v8698_v47 = vld [vmem:[#allocation9 + $0xb8] sm:$0xff]  }
  0x87   : > { %8189 = vmatpush3.bf16.msra.mxu1 %v8681_v14  ;;  %v464_v62 = vor.u32 %v462_v41, %v461_v54  ;;  %v456_v2 = vsel %vm9504_vm7, %v448_v56, %v455_v57  ;;  %v525_v5 = vrot.slane %v459_v42, 4  ;;  %482 = vst [vmem:[#allocation2 + $0x24] sm:$0xf] %v481_v3  ;;  %v570_v14 = vmax.f32 %v546_v59, 0.0  ;;  %v8705_v56 = vld [vmem:[#allocation9 + $0x70] sm:$0xff]   ;;  %v550_v57 = vld [vmem:[%s9466_s13 + $0x28] sm:$0xff] }
  0x88   : > { %7478 = vmatpush3.bf16.msra.mxu0 %v8682_v15  ;;  %8190 = vmatprep.subr.bf16.mxu1 %v9255_v0  ;;  %483 = vst [vmem:[#allocation2 + $0x30] sm:$0xf] %v456_v2  ;;  %v522_v6 = vrot.slane %v521_v60, 4  ;;  %v674_v8 = vshrl.u32 %v7409_v63, 16  ;;  %v677_v9 = vshll.u32 %v7409_v63, 16  ;;  %v519_v12 = vsel %vm9516_vm9, %v517_v4, %v518_v52  ;;  %v8707_v4 = vld [vmem:[#allocation9 + $0xb0] sm:$0xff]  }
  0x89   : > { %7479 = vmatprep.subr.bf16.mxu0 %v8683_v16  ;;  %v465_v7 = vsel %vm9504_vm7, %v457_v61, %v464_v62  ;;  %962 = vst [vmem:[#allocation2 + $0x4c] sm:$0xf] %v7409_v63  ;;  %v526_v13 = vor.u32 %v525_v5, %v523_v53  ;;  %v571_v15 = vmax.f32 %v547_v1, 0.0  ;;  %540 = vst [vmem:[#allocation2 + $0x2c] sm:$0xf] %v519_v12  ;;  %v572_v26 = vmax.f32 %v548_v10, 0.0 }
  0x8a   : > { %484 = vst [vmem:[#allocation2 + $0x3c] sm:$0xf] %v465_v7  ;;  %v573_v30 = vmax.f32 %v549_v11, 0.0  ;;  %v8694_v45 = vld [vmem:[#allocation2 + $0x28] ss:$12 sps:$4 sm:$0xff]  }
  0x8b   : > { %8191 = vmatpush3.bf16.msra.mxu1 %v8684_v17  ;;  %v524_v17 = vsel %vm9516_vm9, %v522_v6, %v523_v53  ;;  %v527_v23 = vrot.slane %v526_v13, 4  ;;  %v7411_v25 = vpack.c.bf16 %v571_v15, %v571_v15  ;;  %1935 = vmatprep.mubr.bf16.mxu0 %v8694_v45  ;;  %v1124_v61 = vld [vmem:[#allocation2 + $0x68] sm:$0xf]  ;;  %v903_v7 = vld [vmem:[#allocation2 + $0x6c] sm:$0xf]  ;;  %v574_v13 = vmax.f32 %v550_v57, 0.0 }
  0x8c   : > { %7480 = vmatpush3.bf16.msra.mxu0 %v8685_v18  ;;  %8192 = vmatprep.subr.bf16.mxu1 %v9255_v0  ;;  %v676_v18 = vrot.slane %v674_v8, 7  ;;  %541 = vst [vmem:[#allocation2 + $0x38] sm:$0xf] %v524_v17  ;;  %v9545_v44 = vpack.c.bf16 %v573_v30, %v573_v30  ;;  %v8706_v62 = vld [vmem:[#allocation9 + $0x30] sm:$0xff]   ;;  %v552_v30 = vld [vmem:[%s9466_s13 + $0x38] sm:$0xff] }
  0x8d   : > { %7481 = vmatprep.subr.bf16.mxu0 %v8686_v19  ;;  %v542_v19 = vld [vmem:[#allocation2 + $0x44] sm:$0xf]  ;;  %v691_v34 = vshrl.u32 %v7411_v25, 16  ;;  %964 = vst [vmem:[#allocation2 + $0x64] sm:$0xf] %v7411_v25  ;;  %v694_v38 = vshll.u32 %v7411_v25, 16  ;;  %v7414_v25 = vpack.c.bf16 %v574_v13, %v574_v13 }
  0x8e   : > { %v679_v27 = vor.u32 %v677_v9, %v676_v18  ;;  %v680_v29 = vrot.slane %v676_v18, 4  ;;  %v543_v31 = vsel %vm9535_vm10, %v527_v23, %v542_v19  ;;  %966 = vst [vmem:[#allocation2 + $0x7c] sm:$0xf] %v9545_v44  ;;  %v707_v5 = vshrl.u32 %v9545_v44, 16  ;;  %v554_v13 = vld [vmem:[%s9466_s13 + $0x48] sm:$0xff] }
  0x8f   : > { %8193 = vmatpush3.bf16.msra.mxu1 %v8687_v20  ;;  %v986_v20 = vrot.slane %v674_v8, 4  ;;  %544 = vst [vmem:[#allocation2 + $0x44] sm:$0xf] %v543_v31  ;;  %v8692_v41 = vld [vmem:[#allocation2 + $0x24] ss:$12 sps:$4 sm:$0xff]   ;;  %v693_v48 = vrot.slane %v691_v34, 7 }
  0x90   : > { %7482 = vmatpush3.bf16.msra.mxu0 %v8688_v21  ;;  %8194 = vmatprep.subr.bf16.mxu1 %v9255_v0  ;;  %v987_v21 = vrot.slane %v677_v9, 5  ;;  %v899_v36 = vsel %vm9510_vm8, %v679_v27, %v898_v22  ;;  %v995_v51 = vrot.slane %v694_v38, 5  ;;  %v997_v55 = vrot.slane %v691_v34, 4  ;;  %v8711_v8 = vld [vmem:[#allocation9 + $0x68] sm:$0xff]   ;;  %967 = vst [vmem:[#allocation2 + $0x88] sm:$0xf] %v7414_v25 }
  0x91   : > { %7483 = vmatprep.subr.bf16.mxu0 %v8689_v24  ;;  %v7410_v24 = vpack.c.bf16 %v570_v14, %v570_v14  ;;  %900 = vst [vmem:[#allocation2 + $0x48] sm:$0xf] %v899_v36  ;;  %v696_v59 = vor.u32 %v694_v38, %v693_v48  ;;  %v710_v6 = vshll.u32 %v9545_v44, 16  ;;  %v1414_v9 = vld [vmem:[#allocation2 + $0x3c] sm:$0xff]  ;;  %v551_v14 = vld [vmem:[%s9466_s13 + $0x30] sm:$0xff]  ;;  %v9560_v17 = vrot.slane %v707_v5, 7 }
  0x92   : > { %v998_v3 = vor.u32 %v997_v55, %v995_v51  ;;  %v1006_v34 = vrot.slane %v707_v5, 4  ;;  %v8716_v36 = vld [vmem:[#allocation9 + $0xa8] sm:$0xff]   ;;  %v8720_v48 = vld [vmem:[#allocation9 + $0x60] sm:$0xff]   ;;  %v908_v5 = vld [vmem:[#allocation2 + $0x90] sm:$0xf] }
  0x93   : > { %8195 = vmatpush3.bf16.msra.mxu1 %v8690_v28  ;;  %v988_v28 = vor.u32 %v987_v21, %v986_v20  ;;  %963 = vst [vmem:[#allocation2 + $0x58] sm:$0xf] %v7410_v24  ;;  %v682_v33 = vshrl.u32 %v7410_v24, 16  ;;  %v8695_v58 = vld [vmem:[#allocation2 + $0x2c] ss:$12 sps:$4 sm:$0xff]   ;;  %v714_v45 = vrot.slane %v9560_v17, 4 }
  0x94   : > { %7484 = vmatpush3.bf16.msra.mxu0 %v8691_v32  ;;  %8256 = vmatprep.subr.bf16.mxu1 %v9255_v0  ;;  %v685_v32 = vshll.u32 %v7410_v24, 16  ;;  %v999_v15 = vrot.slane %v998_v3, 4  ;;  %v8699_v21 = vld [vmem:[#allocation2 + $0x40] ss:$12 sps:$4 sm:$0xff]   ;;  %v8721_v55 = vld [vmem:[#allocation9 + $0x20] sm:$0xff]  }
  0x95   : > { %7598 = vmatprep.subr.bf16.mxu0 %v8696_v39  ;;  %v989_v37 = vrot.slane %v988_v28, 4  ;;  %v7412_v39 = vpack.c.bf16 %v572_v26, %v572_v26  ;;  %v684_v43 = vrot.slane %v682_v33, 7  ;;  %v992_v49 = vrot.slane %v682_v33, 4 }
  0x96   : > { %v990_v42 = vrot.slane %v685_v32, 5  ;;  %8197 = vmatmul.mubr.bf16.vlgmr.msra.gmra.mxu1 %v8695_v58  ;;  %v1125_v27 = vsel %vm9535_vm10, %v999_v15, %v1124_v61  ;;  %v712_v28 = vor.u32 %v710_v6, %v9560_v17  ;;  %v1004_v33 = vrot.slane %v710_v6, 5 }
  0x97   : > { %965 = vst [vmem:[#allocation2 + $0x70] sm:$0xf] %v7412_v39  ;;  %v687_v53 = vor.u32 %v685_v32, %v684_v43  ;;  %v689_v54 = vrot.slane %v684_v43, 4  ;;  %v699_v63 = vshrl.u32 %v7412_v39, 16  ;;  %v702_v1 = vshll.u32 %v7412_v39, 16  ;;  %1936 = vmatmul.mubr.bf16.vlgmr.msra.gmra.mxu0 %v8692_v41  ;;  %8257 = vmatpush3.bf16.msra.mxu1 %v8698_v47 }
  0x98   : > { %v991_v52 = vsel %vm9516_vm9, %v989_v37, %v990_v42  ;;  %v993_v60 = vor.u32 %v992_v49, %v990_v42  ;;  %7599 = vmatpush3.bf16.msra.mxu0 %v8697_v35  ;;  %8200 = vmatprep.mubr.msk.bf16.mxu1 %vm9256_vm0, %v9255_v0  ;;  %v1416_v20 = vld [vmem:[#allocation2 + $0x48] sm:$0xff]  ;;  %1126 = vst [vmem:[#allocation2 + $0x68] sm:$0xf] %v1125_v27  ;;  %v719_v32 = vshll.u32 %v7414_v25, 16  ;;  %v8715_v35 = vld [vmem:[#allocation9 + $0x28] sm:$0xff]   ;;  %v553_v37 = vld [vmem:[%s9466_s13 + $0x40] sm:$0xff] }
  0x99   : > { %1122 = vst [vmem:[#allocation2 + $0x50] sm:$0xf] %v991_v52  ;;  %v688_v2 = vsel %vm9504_vm7, %v680_v29, %v687_v53  ;;  %v697_v10 = vsel %vm9504_vm7, %v689_v54, %v696_v59  ;;  %v701_v12 = vrot.slane %v699_v63, 7  ;;  %v1000_v18 = vrot.slane %v699_v63, 4  ;;  %7600 = vmatprep.subr.bf16.mxu0 %v8705_v56  ;;  %8258 = vmatprep.subr.bf16.mxu1 %v9255_v0 }
  0x9a   : > { %901 = vst [vmem:[#allocation2 + $0x54] sm:$0xf] %v688_v2  ;;  %v994_v11 = vrot.slane %v993_v60, 4  ;;  %902 = vst [vmem:[#allocation2 + $0x60] sm:$0xf] %v697_v10  ;;  %v1001_v19 = vrot.slane %v702_v1, 5  ;;  %v6980_v26 = vcombine.low %v1414_v9, %v1416_v20  ;;  %1943 = vmatprep.mubr.bf16.mxu0 %v8699_v21  ;;  %v1007_v43 = vor.u32 %v1006_v34, %v1004_v33 }
  0x9b   : > { %v704_v23 = vor.u32 %v702_v1, %v701_v12  ;;  %v705_v24 = vrot.slane %v701_v12, 4  ;;  %8259 = vmatpush3.bf16.msra.mxu1 %v8707_v4  ;;  %v575_v42 = vmax.f32 %v551_v14, 0.0  ;;  %v1009_v44 = vrot.slane %v719_v32, 5  ;;  %v8702_v57 = vld [vmem:[#allocation2 + $0x58] ss:$12 sps:$4 sm:$0xff]   ;;  %v8729_v2 = vld [vmem:[#allocation9 + $0x58] sm:$0xff]  }
  0x9c   : > { %v996_v22 = vsel %vm9516_vm9, %v994_v11, %v995_v51  ;;  %v1002_v29 = vor.u32 %v1001_v19, %v1000_v18  ;;  %7601 = vmatpush3.bf16.msra.mxu0 %v8706_v62  ;;  %v716_v47 = vshrl.u32 %v7414_v25, 16  ;;  %8260 = vmatprep.subr.bf16.mxu1 %v9255_v0  ;;  %v576_v53 = vmax.f32 %v552_v30, 0.0  ;;  %v8725_v1 = vld [vmem:[#allocation9 + $0xa0] sm:$0xff]   ;;  %v8730_v30 = vld [vmem:[#allocation9 + $0x18] sm:$0xff]  }
  0x9d   : > { %1123 = vst [vmem:[#allocation2 + $0x5c] sm:$0xf] %v996_v22  ;;  %v904_v31 = vsel %vm9510_vm8, %v704_v23, %v903_v7  ;;  %v713_v39 = vsel %vm9504_vm7, %v705_v24, %v712_v28  ;;  %7602 = vmatprep.subr.bf16.mxu0 %v8711_v8  ;;  %v7415_v52 = vpack.c.bf16 %v575_v42, %v575_v42  ;;  %v577_v54 = vmax.f32 %v553_v37, 0.0  ;;  %v1129_v7 = vld [vmem:[#allocation2 + $0x8c] sm:$0xf] }
  0x9e   : > { %905 = vst [vmem:[#allocation2 + $0x6c] sm:$0xf] %v904_v31  ;;  %v1003_v41 = vrot.slane %v1002_v29, 4  ;;  %906 = vst [vmem:[#allocation2 + $0x78] sm:$0xf] %v713_v39  ;;  %v1008_v58 = vrot.slane %v1007_v43, 4  ;;  %v7416_v63 = vpack.c.bf16 %v576_v53, %v576_v53 }
  0x9f   : > { %1944 = vmatmul.mubr.bf16.gmra.mxu0 %v6980_v26  ;;  %v718_v59 = vrot.slane %v716_v47, 7  ;;  %v1011_v60 = vrot.slane %v716_v47, 4  ;;  %v724_v61 = vshrl.u32 %v7415_v52, 16  ;;  %v727_v62 = vshll.u32 %v7415_v52, 16  ;;  %968 = vst [vmem:[#allocation2 + $0x94] sm:$0xf] %v7415_v52  ;;  %8261 = vmatpush3.bf16.msra.mxu1 %v8716_v36 }
  0xa0   : > { %v8701_v38 = vld [vmem:[#allocation2 + $0x44] ss:$12 sps:$4 sm:$0xff]   ;;  %v1005_v51 = vsel %vm9516_vm9, %v1003_v41, %v1004_v33  ;;  %7603 = vmatpush3.bf16.msra.mxu0 %v8715_v35  ;;  %1951 = vmatprep.mubr.bf16.mxu0 %v8702_v57  ;;  %v1010_v3 = vsel %vm9516_vm9, %v1008_v58, %v1009_v44  ;;  %v7417_v8 = vpack.c.bf16 %v577_v54, %v577_v54  ;;  %v735_v12 = vshll.u32 %v7416_v63, 16  ;;  %v555_v35 = vld [vmem:[%s9466_s13 + $0x50] sm:$0xff]  ;;  %v557_v52 = vld [vmem:[%s9466_s13 + $0x60] sm:$0xff] }
  0xa1   : > { %v1418_v49 = vld [vmem:[#allocation2 + $0x54] sm:$0xff]  ;;  %8201 = vmatmul.mubr.bf16.gmra.mxu1 %v8701_v38  ;;  %v1420_v56 = vld [vmem:[#allocation2 + $0x60] sm:$0xff]  ;;  %1127 = vst [vmem:[#allocation2 + $0x74] sm:$0xf] %v1005_v51  ;;  %v721_v4 = vor.u32 %v719_v32, %v718_v59  ;;  %v1012_v6 = vor.u32 %v1011_v60, %v1009_v44  ;;  %1128 = vst [vmem:[#allocation2 + $0x80] sm:$0xf] %v1010_v3  ;;  %7604 = vmatprep.subr.bf16.mxu0 %v8720_v48 }
  0xa2   : > { %8204 = vmatprep.mubr.msk.bf16.mxu1 %vm9256_vm0, %v9255_v0  ;;  %v6983_v10 = vcombine.low %v1418_v49, %v1420_v56  ;;  %v726_v11 = vrot.slane %v724_v61, 7  ;;  %969 = vst [vmem:[#allocation2 + $0xa0] sm:$0xf] %v7416_v63  ;;  %8262 = vmatprep.subr.bf16.mxu1 %v9255_v0  ;;  %v1014_v18 = vrot.slane %v724_v61, 4  ;;  %v1015_v19 = vrot.slane %v727_v62, 5  ;;  %v556_v41 = vld [vmem:[%s9466_s13 + $0x58] sm:$0xff] }
  0xa3   : > { %v722_v15 = vsel %vm9504_vm7, %v714_v45, %v721_v4  ;;  %v1013_v17 = vrot.slane %v1012_v6, 4  ;;  %970 = vst [vmem:[#allocation2 + $0xac] sm:$0xf] %v7417_v8  ;;  %v8708_v21 = vld [vmem:[#allocation2 + $0x70] ss:$12 sps:$4 sm:$0xff]   ;;  %v1018_v23 = vrot.slane %v735_v12, 5  ;;  %8263 = vmatpush3.bf16.msra.mxu1 %v8725_v1 }
  0xa4   : > { %v8704_v9 = vld [vmem:[#allocation2 + $0x5c] ss:$12 sps:$4 sm:$0xff]   ;;  %7605 = vmatpush3.bf16.msra.mxu0 %v8721_v55  ;;  %v729_v22 = vor.u32 %v727_v62, %v726_v11  ;;  %907 = vst [vmem:[#allocation2 + $0x84] sm:$0xf] %v722_v15  ;;  %v730_v24 = vrot.slane %v726_v11, 4  ;;  %v732_v25 = vshrl.u32 %v7416_v63, 16  ;;  %v1016_v27 = vor.u32 %v1015_v19, %v1014_v18  ;;  %8264 = vmatprep.subr.bf16.mxu1 %v9255_v0 }
  0xa5   : > { %v9584_v14 = vld [vmem:[#allocation2 + $0x6c] sm:$0xff]  ;;  %v9588_v20 = vld [vmem:[#allocation2 + $0x78] sm:$0xff]  ;;  %7606 = vmatprep.subr.bf16.mxu0 %v8729_v2  ;;  %v1130_v28 = vsel %vm9535_vm10, %v1013_v17, %v1129_v7  ;;  %v741_v29 = vshrl.u32 %v7417_v8, 16  ;;  %v744_v33 = vshll.u32 %v7417_v8, 16  ;;  %v578_v39 = vmax.f32 %v554_v13, 0.0 }
  0xa6   : > { %v6986_v26 = vcombine.low %v9584_v14, %v9588_v20  ;;  %v909_v31 = vsel %vm9510_vm8, %v729_v22, %v908_v5  ;;  %1131 = vst [vmem:[#allocation2 + $0x8c] sm:$0xf] %v1130_v28  ;;  %v734_v32 = vrot.slane %v732_v25, 7  ;;  %v1020_v34 = vrot.slane %v732_v25, 4  ;;  %v8734_v53 = vld [vmem:[#allocation9 + $0x98] sm:$0xff]   ;;  %v8738_v7 = vld [vmem:[#allocation9 + $0x50] sm:$0xff]  }
  0xa7   : > { %1952 = vmatmul.mubr.bf16.gmra.mxu0 %v6983_v10  ;;  %910 = vst [vmem:[#allocation2 + $0x90] sm:$0xf] %v909_v31  ;;  %v1017_v36 = vrot.slane %v1016_v27, 4  ;;  %v743_v37 = vrot.slane %v741_v29, 7  ;;  %v1025_v38 = vrot.slane %v741_v29, 4  ;;  %v1023_v45 = vrot.slane %v744_v33, 5  ;;  %8265 = vmatpush3.bf16.msra.mxu1 %v8734_v53 }
  0xa8   : > { %1959 = vmatprep.mubr.bf16.mxu0 %v8708_v21  ;;  %v737_v42 = vor.u32 %v735_v12, %v734_v32  ;;  %v739_v43 = vrot.slane %v734_v32, 4  ;;  %v1021_v44 = vor.u32 %v1020_v34, %v1018_v23  ;;  %7607 = vmatpush3.bf16.msra.mxu0 %v8730_v30  ;;  %v579_v49 = vmax.f32 %v555_v35, 0.0  ;;  %v8710_v54 = vld [vmem:[#allocation2 + $0x74] ss:$12 sps:$4 sm:$0xff]   ;;  %v1134_v58 = vld [vmem:[#allocation2 + $0xb0] sm:$0xf] }
  0xa9   : > { %8205 = vmatmul.mubr.bf16.gmra.mxu1 %v8704_v9  ;;  %v1019_v47 = vsel %vm9516_vm9, %v1017_v36, %v1018_v23  ;;  %v746_v48 = vor.u32 %v744_v33, %v743_v37  ;;  %v7418_v51 = vpack.c.bf16 %v578_v39, %v578_v39  ;;  %v1026_v57 = vor.u32 %v1025_v38, %v1023_v45  ;;  %v913_v4 = vld [vmem:[#allocation2 + $0xb4] sm:$0xf]  ;;  %v8739_v8 = vld [vmem:[#allocation9 + $0x10] sm:$0xff]   ;;  %v558_v28 = vld [vmem:[%s9466_s13 + $0x68] sm:$0xff] }
  0xaa   : > { %8208 = vmatprep.mubr.msk.bf16.mxu1 %vm9256_vm0, %v9255_v0  ;;  %1132 = vst [vmem:[#allocation2 + $0x98] sm:$0xf] %v1019_v47  ;;  %v738_v55 = vsel %vm9504_vm7, %v730_v24, %v737_v42  ;;  %v1022_v56 = vrot.slane %v1021_v44, 4  ;;  %v580_v59 = vmax.f32 %v556_v41, 0.0  ;;  %v7419_v62 = vpack.c.bf16 %v579_v49, %v579_v49  ;;  %8266 = vmatprep.subr.bf16.mxu1 %v9255_v0  ;;  %v8712_v14 = vld [vmem:[#allocation2 + $0x88] ss:$12 sps:$4 sm:$0xff]  }
  0xab   : > { %v9606_v60 = vld [vmem:[#allocation2 + $0x84] sm:$0xff]  ;;  %v747_v61 = vsel %vm9504_vm7, %v739_v43, %v746_v48  ;;  %911 = vst [vmem:[#allocation2 + $0x9c] sm:$0xf] %v738_v55  ;;  %v749_v63 = vshrl.u32 %v7418_v51, 16  ;;  %v752_v1 = vshll.u32 %v7418_v51, 16  ;;  %v1027_v3 = vrot.slane %v1026_v57, 4  ;;  %7608 = vmatprep.subr.bf16.mxu0 %v8738_v7 }
  0xac   : > { %971 = vst [vmem:[#allocation2 + $0xb8] sm:$0xf] %v7418_v51  ;;  %912 = vst [vmem:[#allocation2 + $0xa8] sm:$0xf] %v747_v61  ;;  %v1024_v2 = vsel %vm9516_vm9, %v1022_v56, %v1023_v45  ;;  %v7420_v5 = vpack.c.bf16 %v580_v59, %v580_v59  ;;  %v581_v6 = vmax.f32 %v557_v52, 0.0  ;;  %v757_v10 = vshrl.u32 %v7419_v62, 16  ;;  %7609 = vmatpush3.bf16.msra.mxu0 %v8739_v8 }
  0xad   : > { %1133 = vst [vmem:[#allocation2 + $0xa4] sm:$0xf] %v1024_v2  ;;  %v751_v9 = vrot.slane %v749_v63, 7  ;;  %v760_v11 = vshll.u32 %v7419_v62, 16  ;;  %972 = vst [vmem:[#allocation2 + $0xc4] sm:$0xf] %v7419_v62  ;;  %v1135_v15 = vsel %vm9535_vm10, %v1027_v3, %v1134_v58 }
  0xae   : > { %v1028_v12 = vrot.slane %v749_v63, 4  ;;  %v1428_v13 = vld [vmem:[#allocation2 + $0x90] sm:$0xff]  ;;  %v769_v17 = vshll.u32 %v7420_v5, 16  ;;  %v1029_v18 = vrot.slane %v752_v1, 5  ;;  %973 = vst [vmem:[#allocation2 + $0xd0] sm:$0xf] %v7420_v5  ;;  %v7421_v19 = vpack.c.bf16 %v581_v6, %v581_v6 }
  0xaf   : > { %1960 = vmatmul.mubr.bf16.gmra.mxu0 %v6986_v26  ;;  %v6989_v20 = vcombine.low %v9606_v60, %v1428_v13  ;;  %1136 = vst [vmem:[#allocation2 + $0xb0] sm:$0xf] %v1135_v15  ;;  %v754_v21 = vor.u32 %v752_v1, %v751_v9  ;;  %v755_v22 = vrot.slane %v751_v9, 4  ;;  %v759_v23 = vrot.slane %v757_v10, 7  ;;  %v559_v33 = vld [vmem:[%s9466_s13 + $0x70] sm:$0xff]  ;;  %v560_v1 = vld [vmem:[%s9466_s13 + $0x78] sm:$0xff] }
  0xb0   : > { %1967 = vmatprep.mubr.bf16.mxu0 %v8712_v14  ;;  %v1030_v24 = vor.u32 %v1029_v18, %v1028_v12  ;;  %v1032_v25 = vrot.slane %v760_v11, 5  ;;  %v1034_v26 = vrot.slane %v757_v10, 4  ;;  %v1037_v27 = vrot.slane %v769_v17, 5  ;;  %974 = vst [vmem:[#allocation2 + $0xdc] sm:$0xf] %v7421_v19  ;;  %v8743_v59 = vld [vmem:[#allocation9 + $0x90] sm:$0xff]  }
  0xb1   : > { %8209 = vmatmul.mubr.bf16.gmra.mxu1 %v8710_v54  ;;  %v762_v29 = vor.u32 %v760_v11, %v759_v23  ;;  %v914_v30 = vsel %vm9510_vm8, %v754_v21, %v913_v4  ;;  %v764_v31 = vrot.slane %v759_v23, 4  ;;  %v766_v32 = vshrl.u32 %v7420_v5, 16  ;;  %v8714_v34 = vld [vmem:[#allocation2 + $0x8c] ss:$12 sps:$4 sm:$0xff]   ;;  %v1139_v58 = vld [vmem:[#allocation2 + $0xd4] sm:$0xf] }
  0xb2   : > { %8212 = vmatprep.mubr.msk.bf16.mxu1 %vm9256_vm0, %v9255_v0  ;;  %v9622_v35 = vld [vmem:[#allocation2 + $0x9c] sm:$0xff]  ;;  %915 = vst [vmem:[#allocation2 + $0xb4] sm:$0xf] %v914_v30  ;;  %v1031_v36 = vrot.slane %v1030_v24, 4  ;;  %v1035_v37 = vor.u32 %v1034_v26, %v1032_v25  ;;  %v774_v38 = vshrl.u32 %v7421_v19, 16  ;;  %v777_v39 = vshll.u32 %v7421_v19, 16  ;;  %8267 = vmatpush3.bf16.msra.mxu1 %v8743_v59 }
  0xb3   : > { %v9624_v41 = vld [vmem:[#allocation2 + $0xa8] sm:$0xff]  ;;  %v763_v43 = vsel %vm9504_vm7, %v755_v22, %v762_v29  ;;  %v768_v44 = vrot.slane %v766_v32, 7  ;;  %v918_v45 = vld [vmem:[#allocation2 + $0xd8] sm:$0xf]  ;;  %v582_v47 = vmax.f32 %v558_v28, 0.0  ;;  %v1039_v48 = vrot.slane %v766_v32, 4  ;;  %8268 = vmatprep.subr.bf16.mxu1 %v9255_v0 }
  0xb4   : > { %v8717_v42 = vld [vmem:[#allocation2 + $0xa0] ss:$12 sps:$4 sm:$0xff]   ;;  %v6992_v49 = vcombine.low %v9622_v35, %v9624_v41  ;;  %916 = vst [vmem:[#allocation2 + $0xc0] sm:$0xf] %v763_v43  ;;  %v1033_v51 = vsel %vm9516_vm9, %v1031_v36, %v1032_v25  ;;  %v1036_v52 = vrot.slane %v1035_v37, 4  ;;  %v9632_v53 = vrot.slane %v774_v38, 7 }
  0xb5   : > { %1137 = vst [vmem:[#allocation2 + $0xbc] sm:$0xf] %v1033_v51  ;;  %v771_v54 = vor.u32 %v769_v17, %v768_v44  ;;  %v7422_v55 = vpack.c.bf16 %v582_v47, %v582_v47  ;;  %v1040_v56 = vor.u32 %v1039_v48, %v1037_v27  ;;  %v1042_v57 = vrot.slane %v774_v38, 4  ;;  %v561_v2 = vld [vmem:[%s9466_s13 + $0x80] sm:$0xff]  ;;  %v562_v7 = vld [vmem:[%s9466_s13 + $0x88] sm:$0xff] }
  0xb6   : > { %v1038_v60 = vsel %vm9516_vm9, %v1036_v52, %v1037_v27  ;;  %v779_v61 = vor.u32 %v777_v39, %v9632_v53  ;;  %v1043_v62 = vrot.slane %v777_v39, 5  ;;  %v583_v63 = vmax.f32 %v559_v33, 0.0  ;;  %v8746_v8 = vld [vmem:[#allocation9 + $0x48] sm:$0xff]  }
  0xb7   : > { %1968 = vmatmul.mubr.bf16.gmra.mxu0 %v6989_v20  ;;  %1138 = vst [vmem:[#allocation2 + $0xc8] sm:$0xf] %v1038_v60  ;;  %v772_v3 = vsel %vm9504_vm7, %v764_v31, %v771_v54  ;;  %v785_v4 = vshll.u32 %v7422_v55, 16  ;;  %v1041_v5 = vrot.slane %v1040_v56, 4  ;;  %975 = vst [vmem:[#allocation2 + $0xe8] sm:$0xf] %v7422_v55  ;;  %7610 = vmatprep.subr.bf16.mxu0 %v8746_v8 }
  0xb8   : > { %1975 = vmatprep.mubr.bf16.mxu0 %v8717_v42  ;;  %v780_v6 = vrot.slane %v9632_v53, 4  ;;  %917 = vst [vmem:[#allocation2 + $0xcc] sm:$0xf] %v772_v3  ;;  %v919_v9 = vsel %vm9510_vm8, %v779_v61, %v918_v45  ;;  %v1044_v10 = vor.u32 %v1043_v62, %v1042_v57  ;;  %v7423_v11 = vpack.c.bf16 %v583_v63, %v583_v63  ;;  %v8747_v13 = vld [vmem:[#allocation9 + $0x8] sm:$0xff]   ;;  %v1144_v42 = vld [vmem:[#allocation2 + $0xf8] sm:$0xf] }
  0xb9   : > { %8213 = vmatmul.mubr.bf16.gmra.mxu1 %v8714_v34  ;;  %v782_v12 = vshrl.u32 %v7422_v55, 16  ;;  %920 = vst [vmem:[#allocation2 + $0xd8] sm:$0xf] %v919_v9  ;;  %v1046_v14 = vrot.slane %v785_v4, 5  ;;  %v1140_v15 = vsel %vm9535_vm10, %v1041_v5, %v1139_v58  ;;  %v584_v17 = vmax.f32 %v560_v1, 0.0  ;;  %7611 = vmatpush3.bf16.msra.mxu0 %v8747_v13  ;;  %v1434_v37 = vld [vmem:[#allocation2 + $0xb4] sm:$0xff] }
  0xba   : > { %8216 = vmatprep.mubr.msk.bf16.mxu1 %vm9256_vm0, %v9255_v0  ;;  %v585_v18 = vmax.f32 %v561_v2, 0.0  ;;  %v1045_v19 = vrot.slane %v1044_v10, 4  ;;  %1141 = vst [vmem:[#allocation2 + $0xd4] sm:$0xf] %v1140_v15  ;;  %v791_v21 = vshrl.u32 %v7423_v11, 16  ;;  %v794_v22 = vshll.u32 %v7423_v11, 16 }
  0xbb   : > { %v784_v20 = vrot.slane %v782_v12, 7  ;;  %976 = vst [vmem:[#allocation2 + $0xf4] sm:$0xf] %v7423_v11  ;;  %v8719_v23 = vld [vmem:[#allocation2 + $0xa4] ss:$12 sps:$4 sm:$0xff]   ;;  %v1048_v25 = vrot.slane %v782_v12, 4  ;;  %v7424_v26 = vpack.c.bf16 %v584_v17, %v584_v17 }
  0xbc   : > { %v8722_v24 = vld [vmem:[#allocation2 + $0xb8] ss:$12 sps:$4 sm:$0xff]   ;;  %v7425_v27 = vpack.c.bf16 %v585_v18, %v585_v18  ;;  %v586_v28 = vmax.f32 %v562_v7, 0.0  ;;  %v1047_v29 = vsel %vm9516_vm9, %v1045_v19, %v1046_v14  ;;  %v793_v32 = vrot.slane %v791_v21, 7  ;;  %v923_v53 = vld [vmem:[#allocation2 + $0xfc] sm:$0xf] }
  0xbd   : > { %v787_v30 = vor.u32 %v785_v4, %v784_v20  ;;  %v789_v31 = vrot.slane %v784_v20, 4  ;;  %1142 = vst [vmem:[#allocation2 + $0xe0] sm:$0xf] %v1047_v29  ;;  %v1049_v33 = vor.u32 %v1048_v25, %v1046_v14  ;;  %v1051_v34 = vrot.slane %v794_v22, 5  ;;  %977 = vst [vmem:[#allocation2 + $0x100] sm:$0xf] %v7424_v26 }
  0xbe   : > { %v1053_v36 = vrot.slane %v791_v21, 4  ;;  %978 = vst [vmem:[#allocation2 + $0x10c] sm:$0xf] %v7425_v27  ;;  %v1436_v38 = vld [vmem:[#allocation2 + $0xc0] sm:$0xff]  ;;  %v799_v43 = vshrl.u32 %v7424_v26, 16  ;;  %v802_v44 = vshll.u32 %v7424_v26, 16  ;;  %v9657_v45 = vpack.c.bf16 %v586_v28, %v586_v28 }
  0xbf   : > { %1976 = vmatmul.mubr.bf16.gmra.mxu0 %v6992_v49  ;;  %v788_v39 = vsel %vm9504_vm7, %v780_v6, %v787_v30  ;;  %v796_v47 = vor.u32 %v794_v22, %v793_v32  ;;  %v1050_v48 = vrot.slane %v1049_v33, 4  ;;  %v807_v35 = vshrl.u32 %v7425_v27, 16  ;;  %v8750_v41 = vld [vmem:[#allocation9 + $0x88] sm:$0xff]   ;;  %v563_v55 = vld [vmem:[%s9466_s13 + $0x90] sm:$0xff]  ;;  %v564_v61 = vld [vmem:[%s9466_s13 + $0x98] sm:$0xff] }
  0xc0   : > { %1983 = vmatprep.mubr.bf16.mxu0 %v8722_v24  ;;  %921 = vst [vmem:[#allocation2 + $0xe4] sm:$0xf] %v788_v39  ;;  %v1054_v51 = vor.u32 %v1053_v36, %v1051_v34  ;;  %v801_v49 = vrot.slane %v799_v43, 7  ;;  %v810_v52 = vshll.u32 %v7425_v27, 16  ;;  %v819_v54 = vshll.u32 %v9657_v45, 16  ;;  %8269 = vmatpush3.bf16.msra.mxu1 %v8750_v41  ;;  %v565_v4 = vld [vmem:[%s9466_s13 + $0xa0] sm:$0xff] }
  0xc1   : > { %8217 = vmatmul.mubr.bf16.gmra.mxu1 %v8719_v23  ;;  %979 = vst [vmem:[#allocation2 + $0x118] sm:$0xf] %v9657_v45  ;;  %v8724_v56 = vld [vmem:[#allocation2 + $0xbc] ss:$12 sps:$4 sm:$0xff]   ;;  %v6995_v57 = vcombine.low %v1434_v37, %v1436_v38  ;;  %v797_v58 = vsel %vm9504_vm7, %v789_v31, %v796_v47  ;;  %v1052_v59 = vsel %vm9516_vm9, %v1050_v48, %v1051_v34  ;;  %v9669_v2 = vrot.slane %v807_v35, 7  ;;  %v1438_v14 = vld [vmem:[#allocation2 + $0xcc] sm:$0xff] }
  0xc2   : > { %8220 = vmatprep.mubr.msk.bf16.mxu1 %vm9256_vm0, %v9255_v0  ;;  %v1055_v60 = vrot.slane %v1054_v51, 4  ;;  %v8726_v62 = vld [vmem:[#allocation2 + $0xd0] ss:$12 sps:$4 sm:$0xff]   ;;  %922 = vst [vmem:[#allocation2 + $0xf0] sm:$0xf] %v797_v58  ;;  %v804_v63 = vor.u32 %v802_v44, %v801_v49  ;;  %v805_v1 = vrot.slane %v801_v49, 4  ;;  %8270 = vmatprep.subr.bf16.mxu1 %v9255_v0 }
  0xc3   : > { %1143 = vst [vmem:[#allocation2 + $0xec] sm:$0xf] %v1052_v59  ;;  %v1056_v3 = vrot.slane %v799_v43, 4  ;;  %v1057_v6 = vrot.slane %v802_v44, 5  ;;  %v1060_v7 = vrot.slane %v810_v52, 5  ;;  %v1062_v8 = vrot.slane %v807_v35, 4 }
  0xc4   : > { %v1145_v5 = vsel %vm9535_vm10, %v1055_v60, %v1144_v42  ;;  %v8753_v9 = vld [vmem:[#allocation9 + $0x40] sm:$0xff]   ;;  %v812_v10 = vor.u32 %v810_v52, %v9669_v2  ;;  %v924_v11 = vsel %vm9510_vm8, %v804_v63, %v923_v53  ;;  %v1065_v12 = vrot.slane %v819_v54, 5  ;;  %v928_v39 = vld [vmem:[#allocation2 + $0x120] sm:$0xf]  ;;  %v8731_v41 = vld [vmem:[#allocation2 + $0xe8] ss:$12 sps:$4 sm:$0xff]  }
  0xc5   : > { %1146 = vst [vmem:[#allocation2 + $0xf8] sm:$0xf] %v1145_v5  ;;  %v587_v13 = vmax.f32 %v563_v55, 0.0  ;;  %925 = vst [vmem:[#allocation2 + $0xfc] sm:$0xf] %v924_v11  ;;  %v1058_v15 = vor.u32 %v1057_v6, %v1056_v3  ;;  %v1063_v17 = vor.u32 %v1062_v8, %v1060_v7  ;;  %v814_v18 = vrot.slane %v9669_v2, 4  ;;  %7612 = vmatprep.subr.bf16.mxu0 %v8753_v9 }
  0xc6   : > { %v816_v19 = vshrl.u32 %v9657_v45, 16  ;;  %v1440_v20 = vld [vmem:[#allocation2 + $0xd8] sm:$0xff]  ;;  %v813_v21 = vsel %vm9504_vm7, %v805_v1, %v812_v10  ;;  %v588_v23 = vmax.f32 %v564_v61, 0.0  ;;  %v589_v24 = vmax.f32 %v565_v4, 0.0  ;;  %v8728_v44 = vld [vmem:[#allocation2 + $0xd4] ss:$12 sps:$4 sm:$0xff]  }
  0xc7   : > { %1984 = vmatmul.mubr.bf16.gmra.mxu0 %v6995_v57  ;;  %v7427_v22 = vpack.c.bf16 %v587_v13, %v587_v13  ;;  %v8754_v25 = vld [vmem:[#allocation9] sm:$0xff]   ;;  %926 = vst [vmem:[#allocation2 + $0x108] sm:$0xf] %v813_v21  ;;  %v1059_v26 = vrot.slane %v1058_v15, 4  ;;  %v1064_v27 = vrot.slane %v1063_v17, 4  ;;  %v6998_v45 = vcombine.low %v1438_v14, %v1440_v20  ;;  %v566_v35 = vld [vmem:[%s9466_s13 + $0xa8] sm:$0xff] }
  0xc8   : > { %1991 = vmatprep.mubr.bf16.mxu0 %v8726_v62  ;;  %v818_v28 = vrot.slane %v816_v19, 7  ;;  %v1067_v29 = vrot.slane %v816_v19, 4  ;;  %v7428_v32 = vpack.c.bf16 %v588_v23, %v588_v23  ;;  %v7429_v33 = vpack.c.bf16 %v589_v24, %v589_v24  ;;  %7613 = vmatpush3.bf16.msra.mxu0 %v8754_v25  ;;  %v8755_v34 = vld [vmem:[#allocation9 + $0x80] sm:$0xff]   ;;  %v567_v62 = vld [vmem:[%s9466_s13 + $0xb0] sm:$0xff]  ;;  %v568_v6 = vld [vmem:[%s9466_s13 + $0xb8] sm:$0xff] }
  0xc9   : > { %8221 = vmatmul.mubr.bf16.gmra.mxu1 %v8724_v56  ;;  %v824_v30 = vshrl.u32 %v7427_v22, 16  ;;  %v827_v31 = vshll.u32 %v7427_v22, 16  ;;  %980 = vst [vmem:[#allocation2 + $0x124] sm:$0xf] %v7427_v22  ;;  %v1061_v36 = vsel %vm9516_vm9, %v1059_v26, %v1060_v7  ;;  %v1066_v37 = vsel %vm9516_vm9, %v1064_v27, %v1065_v12  ;;  %v1149_v43 = vld [vmem:[#allocation2 + $0x11c] sm:$0xf] }
  0xca   : > { %8224 = vmatprep.mubr.msk.bf16.mxu1 %vm9256_vm0, %v9255_v0  ;;  %v821_v38 = vor.u32 %v819_v54, %v818_v28  ;;  %v1068_v42 = vor.u32 %v1067_v29, %v1065_v12  ;;  %1147 = vst [vmem:[#allocation2 + $0x104] sm:$0xf] %v1061_v36  ;;  %1148 = vst [vmem:[#allocation2 + $0x110] sm:$0xf] %v1066_v37  ;;  %v835_v48 = vshll.u32 %v7428_v32, 16  ;;  %8271 = vmatpush3.bf16.msra.mxu1 %v8755_v34  ;;  %v1442_v63 = vld [vmem:[#allocation2 + $0xe4] sm:$0xff] }
  0xcb   : > { %v826_v47 = vrot.slane %v824_v30, 7  ;;  %v1070_v51 = vrot.slane %v824_v30, 4  ;;  %981 = vst [vmem:[#allocation2 + $0x130] sm:$0xf] %v7428_v32  ;;  %982 = vst [vmem:[#allocation2 + $0x13c] sm:$0xf] %v7429_v33  ;;  %8332 = vmatprep.subr.bf16.mxu1 %v9255_v0 }
  0xcc   : > { %v822_v49 = vsel %vm9504_vm7, %v814_v18, %v821_v38  ;;  %v1069_v52 = vrot.slane %v1068_v42, 4  ;;  %v1071_v53 = vrot.slane %v827_v31, 5  ;;  %v1074_v55 = vrot.slane %v835_v48, 5  ;;  %v1444_v1 = vld [vmem:[#allocation2 + $0xf0] sm:$0xff]  ;;  %v371_v10 = vld [vmem:[%s9474_s11 + $0x30] sm:$0xff] }
  0xcd   : > { %v829_v54 = vor.u32 %v827_v31, %v826_v47  ;;  %927 = vst [vmem:[#allocation2 + $0x114] sm:$0xf] %v822_v49  ;;  %v830_v56 = vrot.slane %v826_v47, 4  ;;  %v832_v57 = vshrl.u32 %v7428_v32, 16  ;;  %v841_v60 = vshrl.u32 %v7429_v33, 16  ;;  %v8763_v11 = vld [vmem:[#allocation9 + $0x1f8] sm:$0xff]  }
  0xce   : > { %v1072_v58 = vor.u32 %v1071_v53, %v1070_v51  ;;  %v1150_v59 = vsel %vm9535_vm10, %v1069_v52, %v1149_v43  ;;  %v844_v61 = vshll.u32 %v7429_v33, 16  ;;  %v590_v5 = vmax.f32 %v566_v35, 0.0  ;;  %v8733_v17 = vld [vmem:[#allocation2 + $0xec] ss:$12 sps:$4 sm:$0xff]   ;;  %v1154_v21 = vld [vmem:[#allocation2 + $0x140] sm:$0xf]  ;;  %7727 = vmatprep.subr.bf16.mxu0 %v8763_v11 }
  0xcf   : > { %1992 = vmatmul.mubr.bf16.gmra.mxu0 %v6998_v45  ;;  %v929_v2 = vsel %vm9510_vm8, %v829_v54, %v928_v39  ;;  %1151 = vst [vmem:[#allocation2 + $0x11c] sm:$0xf] %v1150_v59  ;;  %v834_v3 = vrot.slane %v832_v57, 7  ;;  %v1076_v4 = vrot.slane %v832_v57, 4  ;;  %v843_v8 = vrot.slane %v841_v60, 7  ;;  %v1446_v43 = vld [vmem:[#allocation2 + $0xfc] sm:$0xff] }
  0xd0   : > { %1999 = vmatprep.mubr.bf16.mxu0 %v8731_v41  ;;  %930 = vst [vmem:[#allocation2 + $0x120] sm:$0xf] %v929_v2  ;;  %v1073_v7 = vrot.slane %v1072_v58, 4  ;;  %v1079_v9 = vrot.slane %v844_v61, 5  ;;  %v1081_v15 = vrot.slane %v841_v60, 4  ;;  %v7001_v18 = vcombine.low %v1442_v63, %v1444_v1  ;;  %v372_v54 = vld [vmem:[%s9474_s11 + $0x38] sm:$0xff] }
  0xd1   : > { %8225 = vmatmul.mubr.bf16.gmra.mxu1 %v8728_v44  ;;  %v837_v12 = vor.u32 %v835_v48, %v834_v3  ;;  %v839_v13 = vrot.slane %v834_v3, 4  ;;  %v1077_v14 = vor.u32 %v1076_v4, %v1074_v55  ;;  %v846_v20 = vor.u32 %v844_v61, %v843_v8  ;;  %v8735_v23 = vld [vmem:[#allocation2 + $0x100] ss:$12 sps:$4 sm:$0xff]   ;;  %v933_v51 = vld [vmem:[#allocation2 + $0x144] sm:$0xf] }
  0xd2   : > { %8228 = vmatprep.mubr.msk.bf16.mxu1 %vm9256_vm0, %v9255_v0  ;;  %v1075_v19 = vsel %vm9516_vm9, %v1073_v7, %v1074_v55  ;;  %v7430_v22 = vpack.c.bf16 %v590_v5, %v590_v5  ;;  %v1082_v26 = vor.u32 %v1081_v15, %v1079_v9  ;;  %v591_v27 = vmax.f32 %v567_v62, 0.0  ;;  %v1448_v44 = vld [vmem:[#allocation2 + $0x108] sm:$0xff]  ;;  %v8737_v60 = vld [vmem:[#allocation2 + $0x104] ss:$12 sps:$4 sm:$0xff]  }
  0xd3   : > { %1152 = vst [vmem:[#allocation2 + $0x128] sm:$0xf] %v1075_v19  ;;  %v838_v24 = vsel %vm9504_vm7, %v830_v56, %v837_v12  ;;  %v1078_v25 = vrot.slane %v1077_v14, 4  ;;  %v847_v28 = vsel %vm9504_vm7, %v839_v13, %v846_v20  ;;  %v592_v31 = vmax.f32 %v568_v6, 0.0  ;;  %v8740_v62 = vld [vmem:[#allocation2 + $0x118] ss:$12 sps:$4 sm:$0xff]  }
  0xd4   : > { %931 = vst [vmem:[#allocation2 + $0x12c] sm:$0xf] %v838_v24  ;;  %v849_v29 = vshrl.u32 %v7430_v22, 16  ;;  %v852_v30 = vshll.u32 %v7430_v22, 16  ;;  %983 = vst [vmem:[#allocation2 + $0x148] sm:$0xf] %v7430_v22  ;;  %v7431_v34 = vpack.c.bf16 %v591_v27, %v591_v27  ;;  %v7004_v61 = vcombine.low %v1446_v43, %v1448_v44 }
  0xd5   : > { %932 = vst [vmem:[#allocation2 + $0x138] sm:$0xf] %v847_v28  ;;  %v1080_v32 = vsel %vm9516_vm9, %v1078_v25, %v1079_v9  ;;  %v1083_v33 = vrot.slane %v1082_v26, 4  ;;  %v383_v36 = vmax.f32 %v371_v10, 0.0  ;;  %v7432_v38 = vpack.c.bf16 %v592_v31, %v592_v31  ;;  %v9711_v41 = vld [vmem:[#allocation2 + $0x114] sm:$0xff] }
  0xd6   : > { %1153 = vst [vmem:[#allocation2 + $0x134] sm:$0xf] %v1080_v32  ;;  %v851_v37 = vrot.slane %v849_v29, 7  ;;  %v1084_v39 = vrot.slane %v849_v29, 4  ;;  %v1085_v42 = vrot.slane %v852_v30, 5  ;;  %v857_v47 = vshrl.u32 %v7431_v34, 16 }
  0xd7   : > { %2000 = vmatmul.mubr.bf16.gmra.mxu0 %v7001_v18  ;;  %v1155_v45 = vsel %vm9535_vm10, %v1083_v33, %v1154_v21  ;;  %v860_v48 = vshll.u32 %v7431_v34, 16  ;;  %984 = vst [vmem:[#allocation2 + $0x154] sm:$0xf] %v7431_v34  ;;  %v7433_v35 = vpack.c.bf16 %v383_v36, %v383_v36  ;;  %v869_v53 = vshll.u32 %v7432_v38, 16  ;;  %985 = vst [vmem:[#allocation2 + $0x160] sm:$0xf] %v7432_v38 }
  0xd8   : > { %2007 = vmatprep.mubr.bf16.mxu0 %v8735_v23  ;;  %1156 = vst [vmem:[#allocation2 + $0x140] sm:$0xf] %v1155_v45  ;;  %v854_v49 = vor.u32 %v852_v30, %v851_v37  ;;  %v855_v52 = vrot.slane %v851_v37, 4  ;;  %v9716_v55 = vld [vmem:[#allocation2 + $0x120] sm:$0xff]  ;;  %v859_v56 = vrot.slane %v857_v47, 7  ;;  %v1086_v57 = vor.u32 %v1085_v42, %v1084_v39  ;;  %v373_v18 = vld [vmem:[%s9474_s11 + $0x40] sm:$0xff] }
  0xd9   : > { %8229 = vmatmul.mubr.bf16.gmra.mxu1 %v8733_v17  ;;  %v1088_v58 = vrot.slane %v860_v48, 5  ;;  %v1090_v59 = vrot.slane %v857_v47, 4  ;;  %1251 = vst [vmem:[#allocation2 + $0x16c] sm:$0xf] %v7433_v35  ;;  %v1093_v1 = vrot.slane %v869_v53, 5  ;;  %v866_v2 = vshrl.u32 %v7432_v38, 16 }
  0xda   : > { %8232 = vmatprep.mubr.msk.bf16.mxu1 %vm9256_vm0, %v9255_v0  ;;  %v934_v63 = vsel %vm9510_vm8, %v854_v49, %v933_v51  ;;  %v862_v4 = vor.u32 %v860_v48, %v859_v56  ;;  %v1087_v5 = vrot.slane %v1086_v57, 4  ;;  %v864_v7 = vrot.slane %v859_v56, 4  ;;  %v1235_v17 = vld [vmem:[#allocation2 + $0x168] sm:$0xf]  ;;  %v365_v27 = vld [vmem:[%s9474_s11] sm:$0xff]  ;;  %v366_v33 = vld [vmem:[%s9474_s11 + $0x8] sm:$0xff] }
  0xdb   : > { %v9720_v3 = vld [vmem:[#allocation2 + $0x12c] sm:$0xff]  ;;  %935 = vst [vmem:[#allocation2 + $0x144] sm:$0xf] %v934_v63  ;;  %v1091_v6 = vor.u32 %v1090_v59, %v1088_v58  ;;  %v868_v9 = vrot.slane %v866_v2, 7  ;;  %v1179_v10 = vshrl.u32 %v7433_v35, 16  ;;  %v1182_v11 = vshll.u32 %v7433_v35, 16 }
  0xdc   : > { %v9722_v8 = vld [vmem:[#allocation2 + $0x138] sm:$0xff]  ;;  %v384_v12 = vmax.f32 %v372_v54, 0.0  ;;  %v7007_v13 = vcombine.low %v9711_v41, %v9716_v55  ;;  %v863_v14 = vsel %vm9504_vm7, %v855_v52, %v862_v4  ;;  %v1089_v15 = vsel %vm9516_vm9, %v1087_v5, %v1088_v58  ;;  %v1159_v31 = vld [vmem:[#allocation2 + $0x164] sm:$0xf] }
  0xdd   : > { %936 = vst [vmem:[#allocation2 + $0x150] sm:$0xf] %v863_v14  ;;  %v1092_v19 = vrot.slane %v1091_v6, 4  ;;  %1157 = vst [vmem:[#allocation2 + $0x14c] sm:$0xf] %v1089_v15  ;;  %v871_v20 = vor.u32 %v869_v53, %v868_v9  ;;  %v1181_v21 = vrot.slane %v1179_v10, 7  ;;  %v7011_v23 = vcombine.high %v9720_v3, %v9722_v8 }
  0xde   : > { %v1095_v22 = vrot.slane %v866_v2, 4  ;;  %v7434_v24 = vpack.c.bf16 %v384_v12, %v384_v12  ;;  %v1257_v25 = vrot.slane %v1179_v10, 4  ;;  %v1258_v26 = vrot.slane %v1182_v11, 5  ;;  %v8742_v45 = vld [vmem:[#allocation2 + $0x11c] ss:$12 sps:$4 sm:$0xff]  }
  0xdf   : > { %2008 = vmatmul.mubr.bf16.gmra.mxu0 %v7004_v61  ;;  %v1094_v28 = vsel %vm9516_vm9, %v1092_v19, %v1093_v1  ;;  %v872_v29 = vsel %vm9504_vm7, %v864_v7, %v871_v20  ;;  %v1184_v30 = vor.u32 %v1182_v11, %v1181_v21  ;;  %v385_v32 = vmax.f32 %v373_v18, 0.0  ;;  %v1293_v11 = vld [vmem:[#allocation2 + $0x188] sm:$0xf]  ;;  %v475_v12 = vld [vmem:[#allocation2] sm:$0xf] }
  0xe0   : > { %2015 = vmatprep.mubr.bf16.mxu0 %v8740_v62  ;;  %1158 = vst [vmem:[#allocation2 + $0x158] sm:$0xf] %v1094_v28  ;;  %937 = vst [vmem:[#allocation2 + $0x15c] sm:$0xf] %v872_v29  ;;  %v1096_v34 = vor.u32 %v1095_v22, %v1093_v1  ;;  %v1190_v36 = vshll.u32 %v7434_v24, 16  ;;  %v1259_v37 = vor.u32 %v1258_v26, %v1257_v25  ;;  %v1185_v38 = vrot.slane %v1181_v21, 4 }
  0xe1   : > { %8233 = vmatmul.mubr.bf16.gmra.mxu1 %v8737_v60  ;;  %1252 = vst [vmem:[#allocation2 + $0x178] sm:$0xf] %v7434_v24  ;;  %v1236_v39 = vsel %vm9510_vm8, %v1184_v30, %v1235_v17  ;;  %v7435_v42 = vpack.c.bf16 %v385_v32, %v385_v32  ;;  %v1187_v43 = vshrl.u32 %v7434_v24, 16  ;;  %v377_v44 = vmax.f32 %v365_v27, 0.0  ;;  %v367_v19 = vld [vmem:[%s9474_s11 + $0x10] sm:$0xff] }
  0xe2   : > { %8236 = vmatprep.mubr.msk.bf16.mxu1 %vm9256_vm0, %v9255_v0  ;;  %1237 = vst [vmem:[#allocation2 + $0x168] sm:$0xf] %v1236_v39  ;;  %v1097_v47 = vrot.slane %v1096_v34, 4  ;;  %v1260_v48 = vrot.slane %v1259_v37, 4  ;;  %v1261_v51 = vrot.slane %v1190_v36, 5  ;;  %v378_v35 = vmax.f32 %v366_v33, 0.0 }
  0xe3   : > { %v1189_v41 = vrot.slane %v1187_v43, 7  ;;  %v1196_v49 = vshrl.u32 %v7435_v42, 16  ;;  %v1199_v52 = vshll.u32 %v7435_v42, 16  ;;  %1253 = vst [vmem:[#allocation2 + $0x184] sm:$0xf] %v7435_v42  ;;  %v1263_v53 = vrot.slane %v1187_v43, 4 }
  0xe4   : > { %v1160_v54 = vsel %vm9535_vm10, %v1097_v47, %v1159_v31  ;;  %v1262_v55 = vsel %vm9516_vm9, %v1260_v48, %v1261_v51  ;;  %v7403_v56 = vpack.c.bf16 %v377_v44, %v377_v44  ;;  %v7404_v57 = vpack.c.bf16 %v378_v35, %v378_v35  ;;  %v9747_v58 = vld [vmem:[#allocation2 + $0x144] sm:$0xff]  ;;  %v9749_v61 = vld [vmem:[#allocation2 + $0x150] sm:$0xff] }
  0xe5   : > { %1161 = vst [vmem:[#allocation2 + $0x164] sm:$0xf] %v1160_v54  ;;  %1291 = vst [vmem:[#allocation2 + $0x170] sm:$0xf] %v1262_v55  ;;  %v1192_v59 = vor.u32 %v1190_v36, %v1189_v41  ;;  %v1194_v60 = vrot.slane %v1189_v41, 4  ;;  %v1198_v62 = vrot.slane %v1196_v49, 7  ;;  %v1264_v63 = vor.u32 %v1263_v53, %v1261_v51 }
  0xe6   : > { %v1266_v1 = vrot.slane %v1199_v52, 5  ;;  %v1268_v2 = vrot.slane %v1196_v49, 4  ;;  %491 = vst [vmem:[#allocation2 + $0x4] sm:$0xf] %v7403_v56  ;;  %492 = vst [vmem:[#allocation2 + $0x10] sm:$0xf] %v7404_v57  ;;  %v7010_v6 = vcombine.low %v9720_v3, %v9722_v8  ;;  %v7014_v14 = vcombine.high %v9747_v58, %v9749_v61 }
  0xe7   : > { %2016 = vmatmul.mubr.bf16.gmra.mxu0 %v7007_v13  ;;  %v1193_v4 = vsel %vm9504_vm7, %v1185_v38, %v1192_v59  ;;  %v417_v5 = vshrl.u32 %v7403_v56, 16  ;;  %v1201_v7 = vor.u32 %v1199_v52, %v1198_v62  ;;  %v1265_v9 = vrot.slane %v1264_v63, 4  ;;  %v8745_v13 = vld [vmem:[#allocation2 + $0x134] ss:$12 sps:$4 sm:$0xff]   ;;  %v8749_v44 = vld [vmem:[#allocation2 + $0x14c] ss:$12 sps:$4 sm:$0xff]  }
  0xe8   : > { %2023 = vmatprep.mubr.bf16.mxu0 %v7011_v23  ;;  %1238 = vst [vmem:[#allocation2 + $0x174] sm:$0xf] %v1193_v4  ;;  %v1269_v10 = vor.u32 %v1268_v2, %v1266_v1  ;;  %v420_v17 = vshll.u32 %v7403_v56, 16  ;;  %v425_v18 = vshrl.u32 %v7404_v57, 16  ;;  %v428_v21 = vshll.u32 %v7404_v57, 16  ;;  %v9768_v34 = vld [vmem:[#allocation2 + $0x15c] sm:$0xff] }
  0xe9   : > { %8237 = vmatmul.mubr.bf16.gmra.mxu1 %v8742_v45  ;;  %v419_v15 = vrot.slane %v417_v5, 7  ;;  %v1202_v20 = vsel %vm9504_vm7, %v1194_v60, %v1201_v7  ;;  %v1267_v8 = vsel %vm9516_vm9, %v1265_v9, %v1266_v1  ;;  %v500_v22 = vrot.slane %v417_v5, 4  ;;  %v1464_v38 = vld [vmem:[#allocation2 + $0x168] sm:$0xff]  ;;  %v537_v59 = vld [vmem:[#allocation2 + $0x20] sm:$0xf] }
  0xea   : > { %8240 = vmatprep.mubr.msk.bf16.mxu1 %vm9256_vm0, %v9255_v0  ;;  %1239 = vst [vmem:[#allocation2 + $0x180] sm:$0xf] %v1202_v20  ;;  %v1270_v23 = vrot.slane %v1269_v10, 4  ;;  %1292 = vst [vmem:[#allocation2 + $0x17c] sm:$0xf] %v1267_v8  ;;  %v427_v26 = vrot.slane %v425_v18, 7  ;;  %v7013_v45 = vcombine.low %v9747_v58, %v9749_v61  ;;  %v7017_v48 = vcombine.high %v9768_v34, %v1464_v38 }
  0xeb   : > { %v422_v24 = vor.u32 %v420_v17, %v419_v15  ;;  %v423_v25 = vrot.slane %v419_v15, 4  ;;  %v501_v30 = vrot.slane %v420_v17, 5  ;;  %v504_v31 = vrot.slane %v428_v21, 5  ;;  %v8756_v63 = vld [vmem:[#allocation2 + $0x178] ss:$12 sps:$4 sm:$0xff]   ;;  %v8765_v15 = vld [vmem:[#allocation9 + $0x238] sm:$0xff]  }
  0xec   : > { %v1294_v27 = vsel %vm9535_vm10, %v1270_v23, %v1293_v11  ;;  %v430_v28 = vor.u32 %v428_v21, %v427_v26  ;;  %v506_v32 = vrot.slane %v425_v18, 4  ;;  %v379_v33 = vmax.f32 %v367_v19, 0.0  ;;  %v8752_v60 = vld [vmem:[#allocation2 + $0x164] ss:$12 sps:$4 sm:$0xff]   ;;  %v8772_v18 = vld [vmem:[#allocation9 + $0x1f0] sm:$0xff]  }
  0xed   : > { %v476_v29 = vsel %vm9510_vm8, %v422_v24, %v475_v12  ;;  %1295 = vst [vmem:[#allocation2 + $0x188] sm:$0xf] %v1294_v27  ;;  %v502_v37 = vor.u32 %v501_v30, %v500_v22  ;;  %v432_v52 = vrot.slane %v427_v26, 4  ;;  %v7016_v62 = vcombine.low %v9768_v34, %v1464_v38  ;;  %v8761_v12 = vld [vmem:[#allocation2 + $0x4] ss:$12 sps:$4 sm:$0xff]   ;;  %v8774_v8 = vld [vmem:[#allocation9 + $0x1b0] sm:$0xff]  }
  0xee   : > { %477 = vst [vmem:[#allocation2] sm:$0xf] %v476_v29  ;;  %v431_v36 = vsel %vm9504_vm7, %v423_v25, %v430_v28  ;;  %v507_v39 = vor.u32 %v506_v32, %v504_v31  ;;  %v7405_v42 = vpack.c.bf16 %v379_v33, %v379_v33  ;;  %v7089_v5 = vcombine.high %v9749_v61, %v9768_v34  ;;  %v1307_v19 = vld [vmem:[#allocation2 + $0x24] sm:$0xff]  ;;  %v8769_v25 = vld [vmem:[#allocation2 + $0x34] ss:$12 sps:$4 sm:$0xff]   ;;  %v8791_v29 = vld [vmem:[#allocation9 + $0x1e0] sm:$0xff]  }
  0xef   : > { %2024 = vmatmul.mubr.bf16.gmra.mxu0 %v7010_v6  ;;  %478 = vst [vmem:[#allocation2 + $0xc] sm:$0xf] %v431_v36  ;;  %v503_v43 = vrot.slane %v502_v37, 4  ;;  %v1466_v6 = vld [vmem:[#allocation2 + $0x174] sm:$0xff]  ;;  %v7088_v7 = vcombine.low %v9749_v61, %v9768_v34  ;;  %v8775_v21 = vld [vmem:[#allocation9 + $0x230] sm:$0xff]   ;;  %v8780_v23 = vld [vmem:[#allocation9 + $0x1e8] sm:$0xff]  }
  0xf0   : > { %2031 = vmatprep.mubr.bf16.mxu0 %v7014_v14  ;;  %v508_v47 = vrot.slane %v507_v39, 4  ;;  %493 = vst [vmem:[#allocation2 + $0x1c] sm:$0xf] %v7405_v42  ;;  %v437_v51 = vshll.u32 %v7405_v42, 16  ;;  %v434_v41 = vshrl.u32 %v7405_v42, 16  ;;  %v8784_v26 = vld [vmem:[#allocation9 + $0x1a8] sm:$0xff]  }
  0xf1   : > { %8241 = vmatmul.mubr.bf16.gmra.mxu1 %v8745_v13  ;;  %v505_v35 = vsel %vm9516_vm9, %v503_v43, %v504_v31  ;;  %v1468_v9 = vld [vmem:[#allocation2 + $0x180] sm:$0xff]  ;;  %v8764_v13 = vld [vmem:[#allocation9 + $0x1b8] sm:$0xff]   ;;  %v8792_v30 = vld [vmem:[#allocation9 + $0x1a0] sm:$0xff]  }
  0xf2   : > { %8244 = vmatprep.mubr.msk.bf16.mxu1 %vm9256_vm0, %v9255_v0  ;;  %534 = vst [vmem:[#allocation2 + $0x8] sm:$0xf] %v505_v35  ;;  %v509_v49 = vrot.slane %v437_v51, 5  ;;  %v436_v53 = vrot.slane %v434_v41, 7  ;;  %v511_v54 = vrot.slane %v434_v41, 4  ;;  %v7019_v11 = vcombine.low %v1466_v6, %v1468_v9  ;;  %v8786_v28 = vld [vmem:[#allocation9 + $0x228] sm:$0xff]  }
  0xf3   : > { %v8773_v31 = vld [vmem:[#allocation2 + $0x30] ss:$12 sps:$4 sm:$0xff]   ;;  %v8771_v33 = vld [vmem:[#allocation2 + $0x38] ss:$12 sps:$4 sm:$0xff]   ;;  %v8813_v42 = vld [vmem:[#allocation9 + $0x1d0] sm:$0xff]  }
  0xf4   : > { %v510_v55 = vsel %vm9516_vm9, %v508_v47, %v509_v49  ;;  %v439_v56 = vor.u32 %v437_v51, %v436_v53  ;;  %v512_v57 = vor.u32 %v511_v54, %v509_v49  ;;  %v8758_v10 = vld [vmem:[#allocation2 + $0x17c] ss:$12 sps:$4 sm:$0xff]   ;;  %v9802_v36 = vld [vmem:[#allocation2 + $0x4c] ss:$12 sps:$4 sm:$0xff]   ;;  %v8802_v37 = vld [vmem:[#allocation9 + $0x1d8] sm:$0xff]  }
  0xf5   : > { %535 = vst [vmem:[#allocation2 + $0x14] sm:$0xf] %v510_v55  ;;  %v8797_v32 = vld [vmem:[#allocation9 + $0x220] sm:$0xff]   ;;  %v8803_v38 = vld [vmem:[#allocation9 + $0x198] sm:$0xff]   ;;  %v8814_v43 = vld [vmem:[#allocation9 + $0x190] sm:$0xff]  }
  0xf6   : > { %v440_v1 = vsel %vm9504_vm7, %v432_v52, %v439_v56  ;;  %v513_v2 = vrot.slane %v512_v57, 4  ;;  %v8759_v14 = vld [vmem:[#allocation2] ss:$12 sps:$4 sm:$0xff]   ;;  %v8808_v39 = vld [vmem:[#allocation9 + $0x218] sm:$0xff]   ;;  %v8829_v49 = vld [vmem:[#allocation9 + $0x1c0] sm:$0xff]  }
  0xf7   : > { %2032 = vmatmul.mubr.bf16.gmra.mxu0 %v7013_v45  ;;  %479 = vst [vmem:[#allocation2 + $0x18] sm:$0xf] %v440_v1  ;;  %v8766_v20 = vld [vmem:[#allocation2 + $0x1c] ss:$12 sps:$4 sm:$0xff]   ;;  %v8824_v45 = vld [vmem:[#allocation9 + $0x1c8] sm:$0xff]  }
  0xf8   : > { %2039 = vmatprep.mubr.bf16.mxu0 %v7017_v48  ;;  %v538_v4 = vsel %vm9535_vm10, %v513_v2, %v537_v59  ;;  %v9809_v47 = vld [vmem:[#allocation2 + $0x48] ss:$12 sps:$4 sm:$0xff]   ;;  %v8778_v48 = vld [vmem:[#allocation2 + $0x50] ss:$12 sps:$4 sm:$0xff]   ;;  %v8825_v35 = vld [vmem:[#allocation9 + $0x188] sm:$0xff]  }
  0xf9   : > { %8245 = vmatmul.mubr.bf16.gmra.mxu1 %v8749_v44  ;;  %539 = vst [vmem:[#allocation2 + $0x20] sm:$0xf] %v538_v4  ;;  %v8819_v44 = vld [vmem:[#allocation9 + $0x210] sm:$0xff]   ;;  %v9812_v51 = vld [vmem:[#allocation2 + $0x64] ss:$12 sps:$4 sm:$0xff]   ;;  %v8830_v52 = vld [vmem:[#allocation9 + $0x180] sm:$0xff]  }
  0xfa   : > { %8248 = vmatprep.mubr.msk.bf16.mxu1 %vm9256_vm0, %v9255_v0  ;;  %v8827_v41 = vld [vmem:[#allocation9 + $0x208] sm:$0xff]   ;;  %v8831_v53 = vld [vmem:[#allocation9 + $0x200] sm:$0xff]   ;;  %v8783_v55 = vld [vmem:[#allocation2 + $0x68] ss:$12 sps:$4 sm:$0xff]  }
  0xfb   : > { %v9819_v54 = vld [vmem:[#allocation2 + $0x60] ss:$12 sps:$4 sm:$0xff]   ;;  %v9822_v56 = vld [vmem:[#allocation2 + $0x7c] ss:$12 sps:$4 sm:$0xff]   ;;  %v9828_v57 = vld [vmem:[#allocation2 + $0x78] ss:$12 sps:$4 sm:$0xff]  }
  0xfc   : > { %v8762_v17 = vld [vmem:[#allocation2 + $0x8] ss:$12 sps:$4 sm:$0xff]   ;;  %v8789_v59 = vld [vmem:[#allocation2 + $0x80] ss:$12 sps:$4 sm:$0xff]   ;;  %v8800_v4 = vld [vmem:[#allocation2 + $0xb0] ss:$12 sps:$4 sm:$0xff]  }
  0xfd   : > { %v9838_v1 = vld [vmem:[#allocation2 + $0xac] ss:$12 sps:$4 sm:$0xff]   ;;  %v9844_v2 = vld [vmem:[#allocation2 + $0xa8] ss:$12 sps:$4 sm:$0xff]   ;;  %v9846_v6 = vld [vmem:[#allocation2 + $0xc4] ss:$12 sps:$4 sm:$0xff]  }
  0xfe   : > { %v1305_v22 = vld [vmem:[#allocation2 + $0x18] sm:$0xff]  ;;  %v9852_v9 = vld [vmem:[#allocation2 + $0xc0] ss:$12 sps:$4 sm:$0xff]  }
  0xff   : > { %2040 = vmatmul.mubr.bf16.gmra.mxu0 %v7016_v62  ;;  %v7049_v24 = vcombine.low %v1305_v22, %v1307_v19  ;;  %v9836_v62 = vld [vmem:[#allocation2 + $0x90] ss:$12 sps:$4 sm:$0xff]   ;;  %v374_v19 = vld [vmem:[%s9474_s11 + $0x48] sm:$0xff] }
 0x100   : > { %2047 = vmatprep.mubr.bf16.mxu0 %v8756_v63  ;;  %v8768_v27 = vld [vmem:[#allocation2 + $0x20] ss:$12 sps:$4 sm:$0xff]   ;;  %v8795_v63 = vld [vmem:[#allocation2 + $0x98] ss:$12 sps:$4 sm:$0xff]  }
 0x101   : > { %8249 = vmatmul.mubr.bf16.gmra.mxu1 %v8752_v60  ;;  %v9830_v60 = vld [vmem:[#allocation2 + $0x94] ss:$12 sps:$4 sm:$0xff]  }
 0x102   : > { %8252 = vmatprep.mubr.msk.bf16.mxu1 %vm9256_vm0, %v9255_v0 }
 0x107   : > { %2048 = vmatmul.mubr.bf16.gmra.mxu0 %v7019_v11  ;;  %v9854_v11 = vld [vmem:[#allocation2 + $0xdc] ss:$12 sps:$4 sm:$0xff]  }
 0x108   : > { %2625 = vmatprep.mubr.bf16.mxu0 %v8761_v12  ;;  %v9860_v12 = vld [vmem:[#allocation2 + $0xd8] ss:$12 sps:$4 sm:$0xff]  }
 0x109   : > { %8253 = vmatmul.mubr.bf16.gmra.mxu1 %v8758_v10  ;;  %v8806_v10 = vld [vmem:[#allocation2 + $0xc8] ss:$12 sps:$4 sm:$0xff]  }
 0x10a   : > { %8272 = vmatprep.mubr.msk.bf16.mxu1 %vm9256_vm0, %v9255_v0 }
 0x10f   : > { %2626 = vmatmul.mubr.bf16.vlgmr.msra.gmra.mxu0 %v8759_v14  ;;  %v9862_v14 = vld [vmem:[#allocation2 + $0xf4] ss:$12 sps:$4 sm:$0xff]  }
 0x110   : > { %7728 = vmatpush3.bf16.msra.mxu0 %v8764_v13  ;;  %2633 = vmatprep.mubr.bf16.mxu0 %v8766_v20  ;;  %v8811_v13 = vld [vmem:[#allocation2 + $0xe0] ss:$12 sps:$4 sm:$0xff]  }
 0x111   : > { %8273 = vmatmul.mubr.bf16.vlgmr.msra.gmra.mxu1 %v8762_v17  ;;  %7729 = vmatprep.subr.bf16.mxu0 %v8772_v18 }
 0x112   : > { %8333 = vmatpush3.bf16.msra.mxu1 %v8765_v15  ;;  %8276 = vmatprep.mubr.msk.bf16.mxu1 %vm9256_vm0, %v9255_v0 }
 0x113   : > { %8334 = vmatprep.subr.bf16.mxu1 %v9255_v0 }
 0x114   : > { %7730 = vmatpush3.bf16.msra.mxu0 %v8774_v8 }
 0x115   : > { %7731 = vmatprep.subr.bf16.mxu0 %v8780_v23  ;;  %v9869_v23 = vld [vmem:[#allocation2 + $0xf0] ss:$12 sps:$4 sm:$0xff]  }
 0x116   : > { %8335 = vmatpush3.bf16.msra.mxu1 %v8775_v21  ;;  %v386_v21 = vmax.f32 %v374_v19, 0.0  ;;  %v8822_v19 = vld [vmem:[#allocation2 + $0x110] ss:$12 sps:$4 sm:$0xff]  }
 0x117   : > { %8336 = vmatprep.subr.bf16.mxu1 %v9255_v0  ;;  %2634 = vmatmul.mubr.bf16.gmra.mxu0 %v7049_v24 }
 0x118   : > { %2641 = vmatprep.mubr.bf16.mxu0 %v8769_v25  ;;  %7732 = vmatpush3.bf16.msra.mxu0 %v8784_v26  ;;  %v8817_v26 = vld [vmem:[#allocation2 + $0xf8] ss:$12 sps:$4 sm:$0xff]  }
 0x119   : > { %8277 = vmatmul.mubr.bf16.gmra.mxu1 %v8768_v27  ;;  %7733 = vmatprep.subr.bf16.mxu0 %v8791_v29  ;;  %v9873_v27 = vld [vmem:[#allocation2 + $0x10c] ss:$12 sps:$4 sm:$0xff]  }
 0x11a   : > { %8280 = vmatprep.mubr.msk.bf16.mxu1 %vm9256_vm0, %v9255_v0  ;;  %8337 = vmatpush3.bf16.msra.mxu1 %v8786_v28  ;;  %v7436_v28 = vpack.c.bf16 %v386_v21, %v386_v21 }
 0x11b   : > { %8338 = vmatprep.subr.bf16.mxu1 %v9255_v0 }
 0x11c   : > { %7734 = vmatpush3.bf16.msra.mxu0 %v8792_v30  ;;  %v375_v30 = vld [vmem:[%s9474_s11 + $0x50] sm:$0xff]  ;;  %1254 = vst [vmem:[#allocation2 + $0x190] sm:$0xf] %v7436_v28 }
 0x11d   : > { %7735 = vmatprep.subr.bf16.mxu0 %v8802_v37  ;;  %v1207_v37 = vshll.u32 %v7436_v28, 16 }
 0x11e   : > { %8339 = vmatpush3.bf16.msra.mxu1 %v8797_v32 }
 0x11f   : > { %2642 = vmatmul.mubr.bf16.gmra.mxu0 %v8773_v31  ;;  %8340 = vmatprep.subr.bf16.mxu1 %v9255_v0 }
 0x120   : > { %2649 = vmatprep.mubr.bf16.mxu0 %v9802_v36  ;;  %7736 = vmatpush3.bf16.msra.mxu0 %v8803_v38 }
 0x121   : > { %8281 = vmatmul.mubr.bf16.gmra.mxu1 %v8771_v33  ;;  %7737 = vmatprep.subr.bf16.mxu0 %v8813_v42  ;;  %v1204_v33 = vshrl.u32 %v7436_v28, 16 }
 0x122   : > { %8284 = vmatprep.mubr.msk.bf16.mxu1 %vm9256_vm0, %v9255_v0  ;;  %8341 = vmatpush3.bf16.msra.mxu1 %v8808_v39  ;;  %v387_v39 = vmax.f32 %v375_v30, 0.0 }
 0x123   : > { %8342 = vmatprep.subr.bf16.mxu1 %v9255_v0 }
 0x124   : > { %7738 = vmatpush3.bf16.msra.mxu0 %v8814_v43 }
 0x125   : > { %7739 = vmatprep.subr.bf16.mxu0 %v8824_v45  ;;  %v1271_v45 = vrot.slane %v1204_v33, 4 }
 0x126   : > { %8343 = vmatpush3.bf16.msra.mxu1 %v8819_v44  ;;  %v9880_v44 = vld [vmem:[#allocation2 + $0x120] sm:$0xff] }
 0x127   : > { %2650 = vmatmul.mubr.bf16.gmra.mxu0 %v9809_v47  ;;  %8344 = vmatprep.subr.bf16.mxu1 %v9255_v0 }
 0x128   : > { %2657 = vmatprep.mubr.bf16.mxu0 %v9812_v51  ;;  %7740 = vmatpush3.bf16.msra.mxu0 %v8825_v35 }
 0x129   : > { %8285 = vmatmul.mubr.bf16.gmra.mxu1 %v8778_v48  ;;  %7741 = vmatprep.subr.bf16.mxu0 %v8829_v49  ;;  %v1272_v48 = vrot.slane %v1207_v37, 5  ;;  %v376_v49 = vld [vmem:[%s9474_s11 + $0x58] sm:$0xff] }
 0x12a   : > { %8288 = vmatprep.mubr.msk.bf16.mxu1 %vm9256_vm0, %v9255_v0  ;;  %8345 = vmatpush3.bf16.msra.mxu1 %v8827_v41  ;;  %v7437_v41 = vpack.c.bf16 %v387_v39, %v387_v39 }
 0x12b   : > { %8346 = vmatprep.subr.bf16.mxu1 %v9255_v0 }
 0x12c   : > { %7742 = vmatpush3.bf16.msra.mxu0 %v8830_v52  ;;  %1255 = vst [vmem:[#allocation2 + $0x19c] sm:$0xf] %v7437_v41 }
 0x12e   : > { %8347 = vmatpush3.bf16.msra.mxu1 %v8831_v53 }
 0x12f   : > { %2658 = vmatmul.mubr.bf16.gmra.mxu0 %v9819_v54 }
 0x130   : > { %2665 = vmatprep.mubr.bf16.mxu0 %v9822_v56 }
 0x131   : > { %8289 = vmatmul.mubr.bf16.gmra.mxu1 %v8783_v55  ;;  %v9885_v55 = vrot.slane %v1204_v33, 7 }
 0x132   : > { %8292 = vmatprep.mubr.msk.bf16.mxu1 %vm9256_vm0, %v9255_v0 }
 0x137   : > { %2666 = vmatmul.mubr.bf16.gmra.mxu0 %v9828_v57 }
 0x138   : > { %2673 = vmatprep.mubr.bf16.mxu0 %v9830_v60 }
 0x139   : > { %8293 = vmatmul.mubr.bf16.gmra.mxu1 %v8789_v59  ;;  %v1273_v59 = vor.u32 %v1272_v48, %v1271_v45  ;;  %v9901_v45 = vld [vmem:[#allocation2 + $0x138] sm:$0xff] }
 0x13a   : > { %8296 = vmatprep.mubr.msk.bf16.mxu1 %vm9256_vm0, %v9255_v0 }
 0x13f   : > { %2674 = vmatmul.mubr.bf16.gmra.mxu0 %v9836_v62 }
 0x140   : > { %2681 = vmatprep.mubr.bf16.mxu0 %v9838_v1 }
 0x141   : > { %8297 = vmatmul.mubr.bf16.gmra.mxu1 %v8795_v63  ;;  %v388_v63 = vmax.f32 %v376_v49, 0.0 }
 0x142   : > { %8300 = vmatprep.mubr.msk.bf16.mxu1 %vm9256_vm0, %v9255_v0 }
 0x143   : > { %v7438_v21 = vpack.c.bf16 %v388_v63, %v388_v63 }
 0x145   : > { %1256 = vst [vmem:[#allocation2 + $0x1a8] sm:$0xf] %v7438_v21 }
 0x147   : > { %2682 = vmatmul.mubr.bf16.gmra.mxu0 %v9844_v2 }
 0x148   : > { %2689 = vmatprep.mubr.bf16.mxu0 %v9846_v6 }
 0x149   : > { %8301 = vmatmul.mubr.bf16.gmra.mxu1 %v8800_v4 }
 0x14a   : > { %8304 = vmatprep.mubr.msk.bf16.mxu1 %vm9256_vm0, %v9255_v0 }
 0x14f   : > { %2690 = vmatmul.mubr.bf16.gmra.mxu0 %v9852_v9 }
 0x150   : > { %2697 = vmatprep.mubr.bf16.mxu0 %v9854_v11 }
 0x151   : > { %8305 = vmatmul.mubr.bf16.gmra.mxu1 %v8806_v10  ;;  %v9887_v10 = vld [vmem:[#allocation2 + $0x108] ss:$12 sps:$4 sm:$0xff]  }
 0x152   : > { %8308 = vmatprep.mubr.msk.bf16.mxu1 %vm9256_vm0, %v9255_v0 }
 0x156   : > { %v2090_v17 = vpop.f32.mrf.mxu1 }
 0x157   : > { %v7485_v15 = vpop.f32.mrf.mxu0  ;;  %2698 = vmatmul.mubr.bf16.gmra.mxu0 %v9860_v12 }
 0x158   : > { %2705 = vmatprep.mubr.bf16.mxu0 %v9862_v14  ;;  %v8198_v20 = vpop.f32.mrf.mxu1 }
 0x159   : > { %8309 = vmatmul.mubr.bf16.gmra.mxu1 %v8811_v13  ;;  %v7486_v18 = vpop.f32.mrf.mxu0  ;;  %v7083_v13 = vcombine.high %v9880_v44, %v9720_v3  ;;  %v1209_v20 = vor.u32 %v1207_v37, %v9885_v55 }
 0x15a   : > { %8312 = vmatprep.mubr.msk.bf16.mxu1 %vm9256_vm0, %v9255_v0  ;;  %v7487_v8 = vadd.f32 %v7486_v18, %v7485_v15  ;;  %v2093_v25 = vpop.f32.mrf.mxu1  ;;  %v1215_v15 = vshll.u32 %v7437_v41, 16 }
 0x15b   : > { %v7488_v22 = vpop.f32.mrf.mxu0 }
 0x15c   : > { %v9871_v24 = vadd.f32 %v7487_v8, %v2090_v17  ;;  %v8199_v31 = vpop.f32.mrf.mxu1  ;;  %v1274_v8 = vrot.slane %v1273_v59, 4 }
 0x15d   : > { %v7489_v29 = vpop.f32.mrf.mxu0  ;;  %v1212_v31 = vshrl.u32 %v7437_v41, 16 }
 0x15e   : > { %v7490_v32 = vadd.f32 %v7489_v29, %v7488_v22 }
 0x15f   : > { %v7491_v38 = vpop.f32.mrf.mxu0  ;;  %2706 = vmatmul.mubr.bf16.gmra.mxu0 %v9869_v23  ;;  %v1214_v59 = vrot.slane %v1212_v31, 7 }
 0x160   : > { %v9877_v42 = vadd.f32 %v7490_v32, %v2093_v25  ;;  %2713 = vmatprep.mubr.bf16.mxu0 %v9873_v27  ;;  %v1240_v25 = vld [vmem:[#allocation2 + $0x18c] sm:$0xf]  ;;  %v1221_v32 = vshrl.u32 %v7438_v21, 16 }
 0x161   : > { %v2098_v43 = vpop.f32.mrf.mxu1  ;;  %8313 = vmatmul.mubr.bf16.gmra.mxu1 %v8817_v26  ;;  %v7492_v35 = vpop.f32.mrf.mxu0  ;;  %v1275_v26 = vrot.slane %v1215_v15, 5  ;;  %v1241_v30 = vsel %vm9510_vm8, %v1209_v20, %v1240_v25  ;;  %v1210_v25 = vrot.slane %v9885_v55, 4 }
 0x162   : > { %8316 = vmatprep.mubr.msk.bf16.mxu1 %vm9256_vm0, %v9255_v0  ;;  %v7493_v53 = vadd.f32 %v7492_v35, %v7491_v38  ;;  %1242 = vst [vmem:[#allocation2 + $0x18c] sm:$0xf] %v1241_v30  ;;  %v1224_v38 = vshll.u32 %v7438_v21, 16  ;;  %v1282_v48 = vrot.slane %v1221_v32, 4  ;;  %v1277_v35 = vrot.slane %v1212_v31, 4 }
 0x163   : > { %v8202_v52 = vpop.f32.mrf.mxu1  ;;  %v7494_v4 = vpop.f32.mrf.mxu0  ;;  %v1276_v37 = vsel %vm9516_vm9, %v1274_v8, %v1275_v26  ;;  %v1223_v63 = vrot.slane %v1221_v32, 7 }
 0x164   : > { %v9891_v17 = vadd.f32 %v7493_v53, %v2098_v43  ;;  %1296 = vst [vmem:[#allocation2 + $0x194] sm:$0xf] %v1276_v37  ;;  %v1280_v49 = vrot.slane %v1224_v38, 5 }
 0x165   : > { %v2101_v18 = vpop.f32.mrf.mxu1  ;;  %v7495_v22 = vpop.f32.mrf.mxu0  ;;  %v1226_v31 = vor.u32 %v1224_v38, %v1223_v63 }
 0x166   : > { %v7496_v29 = vadd.f32 %v7495_v22, %v7494_v4  ;;  %v1278_v4 = vor.u32 %v1277_v35, %v1275_v26  ;;  %v1283_v20 = vor.u32 %v1282_v48, %v1280_v49  ;;  %v8826_v22 = vld [vmem:[#allocation2 + $0x128] ss:$12 sps:$4 sm:$0xff]  }
 0x167   : > { %v8203_v28 = vpop.f32.mrf.mxu1  ;;  %v7497_v33 = vpop.f32.mrf.mxu0  ;;  %2714 = vmatmul.mubr.bf16.gmra.mxu0 %v9887_v10 }
 0x168   : > { %v9899_v39 = vadd.f32 %v7496_v29, %v2101_v18  ;;  %2721 = vmatprep.mubr.bf16.mxu0 %v7083_v13  ;;  %v7086_v13 = vcombine.high %v9901_v45, %v9747_v58  ;;  %v1217_v28 = vor.u32 %v1215_v15, %v1214_v59  ;;  %v1219_v29 = vrot.slane %v1214_v59, 4 }
 0x169   : > { %v2106_v43 = vpop.f32.mrf.mxu1  ;;  %8317 = vmatmul.mubr.bf16.gmra.mxu1 %v8822_v19  ;;  %v7498_v41 = vpop.f32.mrf.mxu0  ;;  %v7082_v19 = vcombine.low %v9880_v44, %v9720_v3  ;;  %v1279_v32 = vrot.slane %v1278_v4, 4  ;;  %v1284_v26 = vrot.slane %v1283_v20, 4 }
 0x16a   : > { %8320 = vmatprep.mubr.msk.bf16.mxu1 %vm9256_vm0, %v9255_v0  ;;  %v7499_v53 = vadd.f32 %v7498_v41, %v7497_v33  ;;  %v1298_v33 = vld [vmem:[#allocation2 + $0x1ac] sm:$0xf]  ;;  %v1218_v3 = vsel %vm9504_vm7, %v1210_v25, %v1217_v28 }
 0x16b   : > { %v8206_v52 = vpop.f32.mrf.mxu1  ;;  %v7500_v18 = vpop.f32.mrf.mxu0  ;;  %1243 = vst [vmem:[#allocation2 + $0x198] sm:$0xf] %v1218_v3  ;;  %v1281_v55 = vsel %vm9516_vm9, %v1279_v32, %v1280_v49  ;;  %v1299_v15 = vsel %vm9535_vm10, %v1284_v26, %v1298_v33  ;;  %v7085_v49 = vcombine.low %v9901_v45, %v9747_v58  ;;  %v8832_v33 = vld [vmem:[#allocation2 + $0x158] ss:$12 sps:$4 sm:$0xff]  }
 0x16c   : > { %v9909_v8 = vadd.f32 %v7499_v53, %v2106_v43  ;;  %v1227_v43 = vsel %vm9504_vm7, %v1219_v29, %v1226_v31  ;;  %1297 = vst [vmem:[#allocation2 + $0x1a0] sm:$0xf] %v1281_v55  ;;  %1300 = vst [vmem:[#allocation2 + $0x1ac] sm:$0xf] %v1299_v15 }
 0x16d   : > { %v2109_v21 = vpop.f32.mrf.mxu1  ;;  %v7501_v30 = vpop.f32.mrf.mxu0  ;;  %1244 = vst [vmem:[#allocation2 + $0x1a4] sm:$0xf] %v1227_v43 }
 0x16e   : > { %v7502_v35 = vadd.f32 %v7501_v30, %v7500_v18 }
 0x16f   : > { %v8207_v37 = vpop.f32.mrf.mxu1  ;;  %v7503_v41 = vpop.f32.mrf.mxu0  ;;  %2722 = vmatmul.mubr.bf16.gmra.mxu0 %v7082_v19  ;;  %v8828_v19 = vld [vmem:[#allocation2 + $0x140] ss:$12 sps:$4 sm:$0xff]  }
 0x170   : > { %v9920_v38 = vadd.f32 %v7502_v35, %v2109_v21  ;;  %2729 = vmatprep.mubr.bf16.mxu0 %v7086_v13 }
 0x171   : > { %v2114_v48 = vpop.f32.mrf.mxu1  ;;  %8321 = vmatmul.mubr.bf16.gmra.mxu1 %v8826_v22  ;;  %v7504_v52 = vpop.f32.mrf.mxu0 }
 0x172   : > { %8324 = vmatprep.mubr.msk.bf16.mxu1 %vm9256_vm0, %v9255_v0  ;;  %v7505_v59 = vadd.f32 %v7504_v52, %v7503_v41 }
 0x173   : > { %v8210_v53 = vpop.f32.mrf.mxu1  ;;  %v7506_v63 = vpop.f32.mrf.mxu0 }
 0x174   : > { %v9926_v4 = vadd.f32 %v7505_v59, %v2114_v48 }
 0x175   : > { %v2117_v18 = vpop.f32.mrf.mxu1  ;;  %v7507_v20 = vpop.f32.mrf.mxu0 }
 0x176   : > { %v7508_v13 = vadd.f32 %v7507_v20, %v7506_v63  ;;  %v8833_v63 = vld [vmem:[#allocation2 + $0x50] ss:$12 sps:$4 sm:$0xff]  }
 0x177   : > { %v8211_v21 = vpop.f32.mrf.mxu1  ;;  %v7509_v22 = vpop.f32.mrf.mxu0  ;;  %2730 = vmatmul.mubr.bf16.gmra.mxu0 %v7085_v49 }
 0x178   : > { %v9928_v25 = vadd.f32 %v7508_v13, %v2117_v18  ;;  %2737 = vmatprep.mubr.bf16.mxu0 %v7089_v5 }
 0x179   : > { %v2122_v28 = vpop.f32.mrf.mxu1  ;;  %8325 = vmatmul.mubr.bf16.gmra.mxu1 %v8828_v19  ;;  %v7510_v29 = vpop.f32.mrf.mxu0 }
 0x17a   : > { %8328 = vmatprep.mubr.msk.bf16.mxu1 %vm9256_vm0, %v9255_v0  ;;  %v7511_v30 = vadd.f32 %v7510_v29, %v7509_v22  ;;  %v8834_v29 = vld [vmem:[#allocation2 + $0x68] ss:$12 sps:$4 sm:$0xff]  }
 0x17b   : > { %v8214_v58 = vpop.f32.mrf.mxu1  ;;  %v7512_v31 = vpop.f32.mrf.mxu0 }
 0x17c   : > { %v9935_v32 = vadd.f32 %v7511_v30, %v2122_v28 }
 0x17d   : > { %v2125_v26 = vpop.f32.mrf.mxu1  ;;  %v7513_v37 = vpop.f32.mrf.mxu0 }
 0x17e   : > { %v7514_v3 = vadd.f32 %v7513_v37, %v7512_v31 }
 0x17f   : > { %v8215_v35 = vpop.f32.mrf.mxu1  ;;  %v7515_v41 = vpop.f32.mrf.mxu0  ;;  %2738 = vmatmul.mubr.bf16.gmra.mxu0 %v7088_v7 }
 0x180   : > { %v9940_v5 = vadd.f32 %v7514_v3, %v2125_v26  ;;  %3424 = vmatprep.mubr.bf16.mxu0 %v9802_v36 }
 0x181   : > { %v2130_v43 = vpop.f32.mrf.mxu1  ;;  %8329 = vmatmul.mubr.bf16.gmra.mxu1 %v8832_v33  ;;  %v7516_v55 = vpop.f32.mrf.mxu0 }
 0x182   : > { %8348 = vmatprep.mubr.msk.bf16.mxu1 %vm9256_vm0, %v9255_v0  ;;  %v7517_v48 = vadd.f32 %v7516_v55, %v7515_v41  ;;  %v8835_v55 = vld [vmem:[#allocation2 + $0x80] ss:$12 sps:$4 sm:$0xff]  }
 0x183   : > { %v8218_v15 = vpop.f32.mrf.mxu1  ;;  %v7518_v52 = vpop.f32.mrf.mxu0 }
 0x184   : > { %v9945_v53 = vadd.f32 %v7517_v48, %v2130_v43 }
 0x185   : > { %v2133_v59 = vpop.f32.mrf.mxu1  ;;  %v7519_v49 = vpop.f32.mrf.mxu0 }
 0x186   : > { %v7520_v34 = vadd.f32 %v7519_v49, %v7518_v52 }
 0x187   : > { %v8219_v61 = vpop.f32.mrf.mxu1  ;;  %v7521_v7 = vpop.f32.mrf.mxu0  ;;  %3425 = vmatmul.mubr.bf16.vlgmr.msra.gmra.mxu0 %v9809_v47 }
 0x188   : > { %v9948_v18 = vadd.f32 %v7520_v34, %v2133_v59  ;;  %3432 = vmatprep.mubr.bf16.mxu0 %v9812_v51 }
 0x189   : > { %v2138_v36 = vpop.f32.mrf.mxu1  ;;  %8349 = vmatmul.mubr.bf16.vlgmr.msra.gmra.mxu1 %v8833_v63  ;;  %v7522_v19 = vpop.f32.mrf.mxu0 }
 0x18a   : > { %8352 = vmatprep.mubr.msk.bf16.mxu1 %vm9256_vm0, %v9255_v0  ;;  %v7523_v21 = vadd.f32 %v7522_v19, %v7521_v7  ;;  %v8836_v19 = vld [vmem:[#allocation2 + $0x98] ss:$12 sps:$4 sm:$0xff]  }
 0x18b   : > { %v8222_v20 = vpop.f32.mrf.mxu1  ;;  %v7524_v13 = vpop.f32.mrf.mxu0 }
 0x18c   : > { %v9953_v22 = vadd.f32 %v7523_v21, %v2138_v36 }
 0x18d   : > { %v2141_v28 = vpop.f32.mrf.mxu1  ;;  %v7525_v58 = vpop.f32.mrf.mxu0 }
 0x18e   : > { %v7526_v47 = vadd.f32 %v7525_v58, %v7524_v13 }
 0x18f   : > { %v8223_v30 = vpop.f32.mrf.mxu1  ;;  %v7527_v31 = vpop.f32.mrf.mxu0  ;;  %3433 = vmatmul.mubr.bf16.gmra.mxu0 %v9819_v54 }
 0x190   : > { %v9956_v26 = vadd.f32 %v7526_v47, %v2141_v28  ;;  %3440 = vmatprep.mubr.bf16.mxu0 %v9822_v56 }
 0x191   : > { %v2146_v51 = vpop.f32.mrf.mxu1  ;;  %8353 = vmatmul.mubr.bf16.gmra.mxu1 %v8834_v29  ;;  %v7528_v33 = vpop.f32.mrf.mxu0 }
 0x192   : > { %8356 = vmatprep.mubr.msk.bf16.mxu1 %vm9256_vm0, %v9255_v0  ;;  %v7529_v35 = vadd.f32 %v7528_v33, %v7527_v31  ;;  %v8837_v33 = vld [vmem:[#allocation2 + $0xb0] ss:$12 sps:$4 sm:$0xff]  }
 0x193   : > { %v8226_v37 = vpop.f32.mrf.mxu1  ;;  %v7530_v3 = vpop.f32.mrf.mxu0 }
 0x194   : > { %v9961_v41 = vadd.f32 %v7529_v35, %v2146_v51 }
 0x195   : > { %v2149_v43 = vpop.f32.mrf.mxu1  ;;  %v7531_v15 = vpop.f32.mrf.mxu0 }
 0x196   : > { %v7532_v54 = vadd.f32 %v7531_v15, %v7530_v3 }
 0x197   : > { %v8227_v48 = vpop.f32.mrf.mxu1  ;;  %v7533_v52 = vpop.f32.mrf.mxu0  ;;  %3441 = vmatmul.mubr.bf16.gmra.mxu0 %v9828_v57 }
 0x198   : > { %v9964_v59 = vadd.f32 %v7532_v54, %v2149_v43  ;;  %3448 = vmatprep.mubr.bf16.mxu0 %v9830_v60 }
 0x199   : > { %v2154_v56 = vpop.f32.mrf.mxu1  ;;  %8357 = vmatmul.mubr.bf16.gmra.mxu1 %v8835_v55  ;;  %v7534_v63 = vpop.f32.mrf.mxu0 }
 0x19a   : > { %8360 = vmatprep.mubr.msk.bf16.mxu1 %vm9256_vm0, %v9255_v0  ;;  %v7535_v61 = vadd.f32 %v7534_v63, %v7533_v52  ;;  %v8838_v63 = vld [vmem:[#allocation2 + $0xc8] ss:$12 sps:$4 sm:$0xff]  }
 0x19b   : > { %v8230_v49 = vpop.f32.mrf.mxu1  ;;  %v7536_v34 = vpop.f32.mrf.mxu0 }
 0x19c   : > { %v9969_v7 = vadd.f32 %v7535_v61, %v2154_v56 }
 0x19d   : > { %v2157_v36 = vpop.f32.mrf.mxu1  ;;  %v7537_v20 = vpop.f32.mrf.mxu0 }
 0x19e   : > { %v7538_v57 = vadd.f32 %v7537_v20, %v7536_v34 }
 0x19f   : > { %v8231_v21 = vpop.f32.mrf.mxu1  ;;  %v7539_v13 = vpop.f32.mrf.mxu0  ;;  %3449 = vmatmul.mubr.bf16.gmra.mxu0 %v9836_v62 }
 0x1a0   : > { %v9972_v28 = vadd.f32 %v7538_v57, %v2157_v36  ;;  %3456 = vmatprep.mubr.bf16.mxu0 %v9838_v1 }
 0x1a1   : > { %v2162_v60 = vpop.f32.mrf.mxu1  ;;  %8361 = vmatmul.mubr.bf16.gmra.mxu1 %v8836_v19  ;;  %v7540_v29 = vpop.f32.mrf.mxu0 }
 0x1a2   : > { %8364 = vmatprep.mubr.msk.bf16.mxu1 %vm9256_vm0, %v9255_v0  ;;  %v7541_v30 = vadd.f32 %v7540_v29, %v7539_v13  ;;  %v8839_v29 = vld [vmem:[#allocation2 + $0xe0] ss:$12 sps:$4 sm:$0xff]  }
 0x1a3   : > { %v8234_v58 = vpop.f32.mrf.mxu1  ;;  %v7542_v47 = vpop.f32.mrf.mxu0 }
 0x1a4   : > { %v9977_v31 = vadd.f32 %v7541_v30, %v2162_v60 }
 0x1a5   : > { %v2165_v51 = vpop.f32.mrf.mxu1  ;;  %v7543_v37 = vpop.f32.mrf.mxu0 }
 0x1a6   : > { %v7544_v62 = vadd.f32 %v7543_v37, %v7542_v47 }
 0x1a7   : > { %v8235_v35 = vpop.f32.mrf.mxu1  ;;  %v7545_v3 = vpop.f32.mrf.mxu0  ;;  %3457 = vmatmul.mubr.bf16.gmra.mxu0 %v9844_v2 }
 0x1a8   : > { %v9980_v43 = vadd.f32 %v7544_v62, %v2165_v51  ;;  %3464 = vmatprep.mubr.bf16.mxu0 %v9846_v6 }
 0x1a9   : > { %v2170_v1 = vpop.f32.mrf.mxu1  ;;  %8365 = vmatmul.mubr.bf16.gmra.mxu1 %v8837_v33  ;;  %v7546_v55 = vpop.f32.mrf.mxu0 }
 0x1aa   : > { %8368 = vmatprep.mubr.msk.bf16.mxu1 %vm9256_vm0, %v9255_v0  ;;  %v7547_v48 = vadd.f32 %v7546_v55, %v7545_v3  ;;  %v8840_v55 = vld [vmem:[#allocation2 + $0xf8] ss:$12 sps:$4 sm:$0xff]  }
 0x1ab   : > { %v8238_v15 = vpop.f32.mrf.mxu1  ;;  %v7548_v54 = vpop.f32.mrf.mxu0 }
 0x1ac   : > { %v9985_v52 = vadd.f32 %v7547_v48, %v2170_v1 }
 0x1ad   : > { %v2173_v56 = vpop.f32.mrf.mxu1  ;;  %v7549_v49 = vpop.f32.mrf.mxu0 }
 0x1ae   : > { %v7550_v2 = vadd.f32 %v7549_v49, %v7548_v54  ;;  %v2937_v49 = vld [vmem:[#allocation2 + $0x12c] sm:$0xff] }
 0x1af   : > { %v8239_v61 = vpop.f32.mrf.mxu1  ;;  %v7551_v34 = vpop.f32.mrf.mxu0  ;;  %3465 = vmatmul.mubr.bf16.gmra.mxu0 %v9852_v9 }
 0x1b0   : > { %v9988_v36 = vadd.f32 %v7550_v2, %v2173_v56  ;;  %3472 = vmatprep.mubr.bf16.mxu0 %v9854_v11 }
 0x1b1   : > { %v2178_v6 = vpop.f32.mrf.mxu1  ;;  %8369 = vmatmul.mubr.bf16.gmra.mxu1 %v8838_v63  ;;  %v7552_v19 = vpop.f32.mrf.mxu0 }
 0x1b2   : > { %8372 = vmatprep.mubr.msk.bf16.mxu1 %vm9256_vm0, %v9255_v0  ;;  %v7553_v21 = vadd.f32 %v7552_v19, %v7551_v34 }
 0x1b3   : > { %v8242_v20 = vpop.f32.mrf.mxu1  ;;  %v7554_v57 = vpop.f32.mrf.mxu0 }
 0x1b4   : > { %v9993_v13 = vadd.f32 %v7553_v21, %v2178_v6  ;;  %v8841_v20 = vld [vmem:[#allocation2 + $0x110] ss:$12 sps:$4 sm:$0xff]  }
 0x1b5   : > { %v2181_v60 = vpop.f32.mrf.mxu1  ;;  %v7555_v58 = vpop.f32.mrf.mxu0 }
 0x1b6   : > { %v7556_v9 = vadd.f32 %v7555_v58, %v7554_v57 }
 0x1b7   : > { %v8243_v30 = vpop.f32.mrf.mxu1  ;;  %v7557_v47 = vpop.f32.mrf.mxu0  ;;  %3473 = vmatmul.mubr.bf16.gmra.mxu0 %v9860_v12 }
 0x1b8   : > { %v9996_v51 = vadd.f32 %v7556_v9, %v2181_v60  ;;  %3480 = vmatprep.mubr.bf16.mxu0 %v9862_v14  ;;  %v2941_v9 = vld [vmem:[#allocation2 + $0x144] sm:$0xff] }
 0x1b9   : > { %v2186_v11 = vpop.f32.mrf.mxu1  ;;  %8373 = vmatmul.mubr.bf16.gmra.mxu1 %v8839_v29  ;;  %v7558_v33 = vpop.f32.mrf.mxu0 }
 0x1ba   : > { %8376 = vmatprep.mubr.msk.bf16.mxu1 %vm9256_vm0, %v9255_v0  ;;  %v7559_v35 = vadd.f32 %v7558_v33, %v7557_v47 }
 0x1bb   : > { %v8246_v37 = vpop.f32.mrf.mxu1  ;;  %v7560_v62 = vpop.f32.mrf.mxu0 }
 0x1bc   : > { %v10001_v3 = vadd.f32 %v7559_v35, %v2186_v11  ;;  %v7142_v37 = vcombine.low %v9880_v44, %v2937_v49 }
 0x1bd   : > { %v2189_v1 = vpop.f32.mrf.mxu1  ;;  %v7561_v15 = vpop.f32.mrf.mxu0 }
 0x1be   : > { %v7562_v12 = vadd.f32 %v7561_v15, %v7560_v62 }
 0x1bf   : > { %v8247_v48 = vpop.f32.mrf.mxu1  ;;  %v7563_v54 = vpop.f32.mrf.mxu0  ;;  %3481 = vmatmul.mubr.bf16.gmra.mxu0 %v9869_v23  ;;  %v7143_v23 = vcombine.high %v9880_v44, %v2937_v49 }
 0x1c0   : > { %v10004_v56 = vadd.f32 %v7562_v12, %v2189_v1  ;;  %3488 = vmatprep.mubr.bf16.mxu0 %v9873_v27  ;;  %v8844_v1 = vld [vmem:[#allocation2 + $0x128] ss:$12 sps:$4 sm:$0xff]  }
 0x1c1   : > { %v2194_v14 = vpop.f32.mrf.mxu1  ;;  %8377 = vmatmul.mubr.bf16.gmra.mxu1 %v8840_v55  ;;  %v7564_v63 = vpop.f32.mrf.mxu0 }
 0x1c2   : > { %8380 = vmatprep.mubr.msk.bf16.mxu1 %vm9256_vm0, %v9255_v0  ;;  %v7565_v2 = vadd.f32 %v7564_v63, %v7563_v54 }
 0x1c3   : > { %v8250_v61 = vpop.f32.mrf.mxu1  ;;  %v7566_v34 = vpop.f32.mrf.mxu0 }
 0x1c4   : > { %v10009_v6 = vadd.f32 %v7565_v2, %v2194_v14  ;;  %v7145_v2 = vcombine.low %v9901_v45, %v2941_v9 }
 0x1c5   : > { %v2197_v19 = vpop.f32.mrf.mxu1  ;;  %v7567_v21 = vpop.f32.mrf.mxu0 }
 0x1c6   : > { %v7568_v60 = vadd.f32 %v7567_v21, %v7566_v34 }
 0x1c7   : > { %v8251_v57 = vpop.f32.mrf.mxu1  ;;  %v7569_v29 = vpop.f32.mrf.mxu0  ;;  %3489 = vmatmul.mubr.bf16.gmra.mxu0 %v9887_v10  ;;  %v7146_v10 = vcombine.high %v9901_v45, %v2941_v9 }
 0x1c8   : > { %v10013_v27 = vadd.f32 %v7568_v60, %v2197_v19  ;;  %3496 = vmatprep.mubr.bf16.mxu0 %v7143_v23  ;;  %v8850_v23 = vld [vmem:[#allocation2 + $0x154] ss:$12 sps:$4 sm:$0xff]  }
 0x1c9   : > { %v2202_v58 = vpop.f32.mrf.mxu1  ;;  %8381 = vmatmul.mubr.bf16.gmra.mxu1 %v8841_v20  ;;  %v7570_v30 = vpop.f32.mrf.mxu0  ;;  %v8847_v20 = vld [vmem:[#allocation2 + $0x140] ss:$12 sps:$4 sm:$0xff]  }
 0x1ca   : > { %8384 = vmatprep.mubr.msk.bf16.mxu1 %vm9256_vm0, %v9255_v0  ;;  %v7571_v11 = vadd.f32 %v7570_v30, %v7569_v29 }
 0x1cb   : > { %v8254_v47 = vpop.f32.mrf.mxu1  ;;  %v7572_v33 = vpop.f32.mrf.mxu0 }
 0x1cc   : > { %v10018_v35 = vadd.f32 %v7571_v11, %v2202_v58 }
 0x1cd   : > { %v2205_v62 = vpop.f32.mrf.mxu1  ;;  %v7573_v55 = vpop.f32.mrf.mxu0 }
 0x1ce   : > { %v7574_v48 = vadd.f32 %v7573_v55, %v7572_v33  ;;  %v8854_v55 = vld [vmem:[#allocation2 + $0x16c] ss:$12 sps:$4 sm:$0xff]  }
 0x1cf   : > { %v8255_v15 = vpop.f32.mrf.mxu1  ;;  %v7614_v12 = vpop.f32.mrf.mxu0  ;;  %3497 = vmatmul.mubr.bf16.gmra.mxu0 %v7142_v37  ;;  %v8848_v37 = vld [vmem:[#allocation2 + $0x150] ss:$12 sps:$4 sm:$0xff]  }
 0x1d0   : > { %v10021_v54 = vadd.f32 %v7574_v48, %v2205_v62  ;;  %3504 = vmatprep.mubr.bf16.mxu0 %v7146_v10  ;;  %v8851_v10 = vld [vmem:[#allocation2 + $0x158] ss:$12 sps:$4 sm:$0xff]  }
 0x1d1   : > { %v2780_v14 = vpop.f32.mrf.mxu1  ;;  %8385 = vmatmul.mubr.bf16.gmra.mxu1 %v8844_v1  ;;  %v7615_v63 = vpop.f32.mrf.mxu0 }
 0x1d2   : > { %8388 = vmatprep.mubr.msk.bf16.mxu1 %vm9256_vm0, %v9255_v0  ;;  %v7616_v49 = vadd.f32 %v7615_v63, %v7614_v12 }
 0x1d3   : > { %v8274_v44 = vpop.f32.mrf.mxu1  ;;  %v7617_v61 = vpop.f32.mrf.mxu0 }
 0x1d4   : > { %v2628_v34 = vadd.f32 %v7616_v49, %v9871_v24 }
 0x1d5   : > { %v2783_v19 = vpop.f32.mrf.mxu1  ;;  %v7618_v21 = vpop.f32.mrf.mxu0 }
 0x1d6   : > { %v10027_v57 = vadd.f32 %v2780_v14, %v2628_v34  ;;  %v7619_v29 = vadd.f32 %v7618_v21, %v7617_v61  ;;  %v8855_v21 = vld [vmem:[#allocation2 + $0x170] ss:$12 sps:$4 sm:$0xff]  }
 0x1d7   : > { %v8275_v60 = vpop.f32.mrf.mxu1  ;;  %v7620_v58 = vpop.f32.mrf.mxu0  ;;  %3505 = vmatmul.mubr.bf16.gmra.mxu0 %v7145_v2 }
 0x1d8   : > { %v2631_v30 = vadd.f32 %v7619_v29, %v9877_v42  ;;  %3512 = vmatprep.mubr.bf16.mxu0 %v8850_v23  ;;  %v8858_v60 = vld [vmem:[#allocation2 + $0x184] ss:$12 sps:$4 sm:$0xff]  }
 0x1d9   : > { %v2788_v47 = vpop.f32.mrf.mxu1  ;;  %8389 = vmatmul.mubr.bf16.gmra.mxu1 %v8847_v20  ;;  %v7621_v11 = vpop.f32.mrf.mxu0 }
 0x1da   : > { %8392 = vmatprep.mubr.msk.bf16.mxu1 %vm9256_vm0, %v9255_v0  ;;  %v10032_v24 = vadd.f32 %v2783_v19, %v2631_v30  ;;  %v7622_v9 = vadd.f32 %v7621_v11, %v7620_v58  ;;  %v8852_v19 = vld [vmem:[#allocation2 + $0x168] ss:$12 sps:$4 sm:$0xff]  }
 0x1db   : > { %v8278_v45 = vpop.f32.mrf.mxu1  ;;  %v7623_v33 = vpop.f32.mrf.mxu0 }
 0x1dc   : > { %v2636_v62 = vadd.f32 %v7622_v9, %v9891_v17 }
 0x1dd   : > { %v2791_v1 = vpop.f32.mrf.mxu1  ;;  %v7624_v15 = vpop.f32.mrf.mxu0 }
 0x1de   : > { %v10035_v42 = vadd.f32 %v2788_v47, %v2636_v62  ;;  %v7625_v12 = vadd.f32 %v7624_v15, %v7623_v33  ;;  %v8859_v15 = vld [vmem:[#allocation2 + $0x188] ss:$12 sps:$4 sm:$0xff]  }
 0x1df   : > { %v8279_v48 = vpop.f32.mrf.mxu1  ;;  %v7626_v14 = vpop.f32.mrf.mxu0  ;;  %3513 = vmatmul.mubr.bf16.gmra.mxu0 %v8848_v37 }
 0x1e0   : > { %v2639_v63 = vadd.f32 %v7625_v12, %v9899_v39  ;;  %3520 = vmatprep.mubr.bf16.mxu0 %v8854_v55  ;;  %v8862_v48 = vld [vmem:[#allocation2 + $0x19c] ss:$12 sps:$4 sm:$0xff]  }
 0x1e1   : > { %v2796_v44 = vpop.f32.mrf.mxu1  ;;  %8393 = vmatmul.mubr.bf16.gmra.mxu1 %v8851_v10  ;;  %v7627_v49 = vpop.f32.mrf.mxu0 }
 0x1e2   : > { %8396 = vmatprep.mubr.msk.bf16.mxu1 %vm9256_vm0, %v9255_v0  ;;  %v10040_v17 = vadd.f32 %v2791_v1, %v2639_v63  ;;  %v7628_v2 = vadd.f32 %v7627_v49, %v7626_v14  ;;  %v8856_v1 = vld [vmem:[#allocation2 + $0x180] ss:$12 sps:$4 sm:$0xff]  }
 0x1e3   : > { %v8282_v61 = vpop.f32.mrf.mxu1  ;;  %v7629_v34 = vpop.f32.mrf.mxu0 }
 0x1e4   : > { %v2644_v20 = vadd.f32 %v7628_v2, %v9909_v8 }
 0x1e5   : > { %v2799_v23 = vpop.f32.mrf.mxu1  ;;  %v7630_v29 = vpop.f32.mrf.mxu0 }
 0x1e6   : > { %v10043_v39 = vadd.f32 %v2796_v44, %v2644_v20  ;;  %v7631_v30 = vadd.f32 %v7630_v29, %v7629_v34  ;;  %v8863_v29 = vld [vmem:[#allocation2 + $0x1a0] ss:$12 sps:$4 sm:$0xff]  }
 0x1e7   : > { %v8283_v58 = vpop.f32.mrf.mxu1  ;;  %v7632_v47 = vpop.f32.mrf.mxu0  ;;  %3521 = vmatmul.mubr.bf16.gmra.mxu0 %v8852_v19 }
 0x1e8   : > { %v2647_v11 = vadd.f32 %v7631_v30, %v9920_v38  ;;  %3528 = vmatprep.mubr.bf16.mxu0 %v8858_v60 }
 0x1e9   : > { %v2804_v45 = vpop.f32.mrf.mxu1  ;;  %8397 = vmatmul.mubr.bf16.gmra.mxu1 %v8855_v21  ;;  %v7633_v9 = vpop.f32.mrf.mxu0 }
 0x1ea   : > { %8400 = vmatprep.mubr.msk.bf16.mxu1 %vm9256_vm0, %v9255_v0  ;;  %v10048_v8 = vadd.f32 %v2799_v23, %v2647_v11  ;;  %v7634_v37 = vadd.f32 %v7633_v9, %v7632_v47  ;;  %v8860_v23 = vld [vmem:[#allocation2 + $0x198] ss:$12 sps:$4 sm:$0xff]  }
 0x1eb   : > { %v8286_v33 = vpop.f32.mrf.mxu1  ;;  %v7635_v62 = vpop.f32.mrf.mxu0 }
 0x1ec   : > { %v2652_v10 = vadd.f32 %v7634_v37, %v9926_v4 }
 0x1ed   : > { %v2807_v55 = vpop.f32.mrf.mxu1  ;;  %v7636_v12 = vpop.f32.mrf.mxu0 }
 0x1ee   : > { %v10051_v38 = vadd.f32 %v2804_v45, %v2652_v10  ;;  %v7637_v63 = vadd.f32 %v7636_v12, %v7635_v62 }
 0x1ef   : > { %v8287_v14 = vpop.f32.mrf.mxu1  ;;  %v7638_v44 = vpop.f32.mrf.mxu0  ;;  %3529 = vmatmul.mubr.bf16.gmra.mxu0 %v8856_v1 }
 0x1f0   : > { %v2655_v49 = vadd.f32 %v7637_v63, %v9928_v25  ;;  %3536 = vmatprep.mubr.bf16.mxu0 %v8862_v48 }
 0x1f1   : > { %v2812_v61 = vpop.f32.mrf.mxu1  ;;  %8401 = vmatmul.mubr.bf16.gmra.mxu1 %v8859_v15  ;;  %v7639_v2 = vpop.f32.mrf.mxu0 }
 0x1f2   : > { %8404 = vmatprep.mubr.msk.bf16.mxu1 %vm9256_vm0, %v9255_v0  ;;  %v10056_v4 = vadd.f32 %v2807_v55, %v2655_v49  ;;  %v7640_v19 = vadd.f32 %v7639_v2, %v7638_v44 }
 0x1f3   : > { %v8290_v34 = vpop.f32.mrf.mxu1  ;;  %v7641_v20 = vpop.f32.mrf.mxu0 }
 0x1f4   : > { %v2660_v21 = vadd.f32 %v7640_v19, %v9935_v32 }
 0x1f5   : > { %v2815_v60 = vpop.f32.mrf.mxu1  ;;  %v7642_v58 = vpop.f32.mrf.mxu0 }
 0x1f6   : > { %v10059_v30 = vadd.f32 %v2812_v61, %v2660_v21  ;;  %v7643_v47 = vadd.f32 %v7642_v58, %v7641_v20 }
 0x1f7   : > { %v8291_v25 = vpop.f32.mrf.mxu1  ;;  %v7644_v11 = vpop.f32.mrf.mxu0  ;;  %3537 = vmatmul.mubr.bf16.gmra.mxu0 %v8860_v23 }
 0x1f8   : > { %v2663_v45 = vadd.f32 %v7643_v47, %v9940_v5 }
 0x1f9   : > { %v2820_v0 = vpop.f32.mrf.mxu1  ;;  %8405 = vmatmul.mubr.bf16.gmra.mxu1 %v8863_v29  ;;  %v7645_v9 = vpop.f32.mrf.mxu0 }
 0x1fa   : > { %v10062_v33 = vadd.f32 %v2815_v60, %v2663_v45  ;;  %v7646_v62 = vadd.f32 %v7645_v9, %v7644_v11 }
 0x1fb   : > { %v8294_v37 = vpop.f32.mrf.mxu1  ;;  %v7647_v1 = vpop.f32.mrf.mxu0 }
 0x1fc   : > { %v2668_v32 = vadd.f32 %v7646_v62, %v9945_v53 }
 0x1fd   : > { %v2823_v10 = vpop.f32.mrf.mxu1  ;;  %v7648_v55 = vpop.f32.mrf.mxu0 }
 0x1fe   : > { %v10065_v15 = vadd.f32 %v2820_v0, %v2668_v32  ;;  %v7649_v12 = vadd.f32 %v7648_v55, %v7647_v1 }
 0x1ff   : > { %v8295_v48 = vpop.f32.mrf.mxu1  ;;  %v7650_v14 = vpop.f32.mrf.mxu0 }
 0x200   : > { %v2671_v63 = vadd.f32 %v7649_v12, %v9948_v18 }
 0x201   : > { %v2828_v5 = vpop.f32.mrf.mxu1  ;;  %v7651_v44 = vpop.f32.mrf.mxu0 }
 0x202   : > { %v10068_v49 = vadd.f32 %v2823_v10, %v2671_v63  ;;  %v7652_v2 = vadd.f32 %v7651_v44, %v7650_v14 }
 0x203   : > { %v8298_v61 = vpop.f32.mrf.mxu1  ;;  %v7653_v34 = vpop.f32.mrf.mxu0 }
 0x204   : > { %v2676_v19 = vadd.f32 %v7652_v2, %v9953_v22 }
 0x205   : > { %v2831_v20 = vpop.f32.mrf.mxu1  ;;  %v7654_v53 = vpop.f32.mrf.mxu0 }
 0x206   : > { %v10071_v23 = vadd.f32 %v2828_v5, %v2676_v19  ;;  %v7655_v60 = vadd.f32 %v7654_v53, %v7653_v34 }
 0x207   : > { %v8299_v21 = vpop.f32.mrf.mxu1  ;;  %v7656_v29 = vpop.f32.mrf.mxu0 }
 0x208   : > { %v2679_v58 = vadd.f32 %v7655_v60, %v9956_v26 }
 0x209   : > { %v2836_v25 = vpop.f32.mrf.mxu1  ;;  %v7657_v18 = vpop.f32.mrf.mxu0 }
 0x20a   : > { %v10074_v47 = vadd.f32 %v2831_v20, %v2679_v58  ;;  %v7658_v45 = vadd.f32 %v7657_v18, %v7656_v29 }
 0x20b   : > { %v8302_v11 = vpop.f32.mrf.mxu1  ;;  %v7659_v0 = vpop.f32.mrf.mxu0 }
 0x20c   : > { %v2684_v9 = vadd.f32 %v7658_v45, %v9961_v41 }
 0x20d   : > { %v2839_v37 = vpop.f32.mrf.mxu1  ;;  %v7660_v22 = vpop.f32.mrf.mxu0 }
 0x20e   : > { %v10077_v62 = vadd.f32 %v2836_v25, %v2684_v9  ;;  %v7661_v32 = vadd.f32 %v7660_v22, %v7659_v0 }
 0x20f   : > { %v8303_v1 = vpop.f32.mrf.mxu1  ;;  %v7662_v10 = vpop.f32.mrf.mxu0 }
 0x210   : > { %v2687_v55 = vadd.f32 %v7661_v32, %v9964_v59 }
 0x211   : > { %v2844_v48 = vpop.f32.mrf.mxu1  ;;  %v7663_v26 = vpop.f32.mrf.mxu0 }
 0x212   : > { %v10080_v12 = vadd.f32 %v2839_v37, %v2687_v55  ;;  %v7664_v63 = vadd.f32 %v7663_v26, %v7662_v10 }
 0x213   : > { %v8306_v14 = vpop.f32.mrf.mxu1  ;;  %v7665_v5 = vpop.f32.mrf.mxu0 }
 0x214   : > { %v2692_v44 = vadd.f32 %v7664_v63, %v9969_v7 }
 0x215   : > { %v2847_v61 = vpop.f32.mrf.mxu1  ;;  %v7666_v41 = vpop.f32.mrf.mxu0 }
 0x216   : > { %v10083_v2 = vadd.f32 %v2844_v48, %v2692_v44  ;;  %v7667_v19 = vadd.f32 %v7666_v41, %v7665_v5 }
 0x217   : > { %v8307_v34 = vpop.f32.mrf.mxu1  ;;  %v7668_v20 = vpop.f32.mrf.mxu0 }
 0x218   : > { %v2695_v53 = vadd.f32 %v7667_v19, %v9972_v28 }
 0x219   : > { %v2852_v21 = vpop.f32.mrf.mxu1  ;;  %v7669_v59 = vpop.f32.mrf.mxu0 }
 0x21a   : > { %v10086_v60 = vadd.f32 %v2847_v61, %v2695_v53  ;;  %v7670_v58 = vadd.f32 %v7669_v59, %v7668_v20 }
 0x21b   : > { %v8310_v29 = vpop.f32.mrf.mxu1  ;;  %v7671_v25 = vpop.f32.mrf.mxu0 }
 0x21c   : > { %v2700_v18 = vadd.f32 %v7670_v58, %v9977_v31 }
 0x21d   : > { %v2855_v11 = vpop.f32.mrf.mxu1  ;;  %v7672_v7 = vpop.f32.mrf.mxu0 }
 0x21e   : > { %v10089_v45 = vadd.f32 %v2852_v21, %v2700_v18  ;;  %v7673_v9 = vadd.f32 %v7672_v7, %v7671_v25 }
 0x21f   : > { %v8311_v0 = vpop.f32.mrf.mxu1  ;;  %v7674_v37 = vpop.f32.mrf.mxu0 }
 0x220   : > { %v2703_v22 = vadd.f32 %v7673_v9, %v9980_v43 }
 0x221   : > { %v2860_v1 = vpop.f32.mrf.mxu1  ;;  %v7675_v28 = vpop.f32.mrf.mxu0 }
 0x222   : > { %v10092_v32 = vadd.f32 %v2855_v11, %v2703_v22  ;;  %v7676_v55 = vadd.f32 %v7675_v28, %v7674_v37 }
 0x223   : > { %v8314_v10 = vpop.f32.mrf.mxu1  ;;  %v7677_v48 = vpop.f32.mrf.mxu0 }
 0x224   : > { %v2708_v26 = vadd.f32 %v7676_v55, %v9985_v52 }
 0x225   : > { %v2863_v14 = vpop.f32.mrf.mxu1  ;;  %v7678_v31 = vpop.f32.mrf.mxu0 }
 0x226   : > { %v10095_v63 = vadd.f32 %v2860_v1, %v2708_v26  ;;  %v7679_v44 = vadd.f32 %v7678_v31, %v7677_v48 }
 0x227   : > { %v8315_v5 = vpop.f32.mrf.mxu1  ;;  %v7680_v61 = vpop.f32.mrf.mxu0 }
 0x228   : > { %v2711_v41 = vadd.f32 %v7679_v44, %v9988_v36 }
 0x229   : > { %v2868_v34 = vpop.f32.mrf.mxu1  ;;  %v7681_v43 = vpop.f32.mrf.mxu0 }
 0x22a   : > { %v10098_v19 = vadd.f32 %v2863_v14, %v2711_v41  ;;  %v7682_v53 = vadd.f32 %v7681_v43, %v7680_v61 }
 0x22b   : > { %v8318_v20 = vpop.f32.mrf.mxu1  ;;  %v7683_v21 = vpop.f32.mrf.mxu0 }
 0x22c   : > { %v2716_v59 = vadd.f32 %v7682_v53, %v9993_v13 }
 0x22d   : > { %v2871_v29 = vpop.f32.mrf.mxu1  ;;  %v7684_v52 = vpop.f32.mrf.mxu0 }
 0x22e   : > { %v10101_v58 = vadd.f32 %v2868_v34, %v2716_v59  ;;  %v7685_v18 = vadd.f32 %v7684_v52, %v7683_v21 }
 0x22f   : > { %v8319_v25 = vpop.f32.mrf.mxu1  ;;  %v7686_v11 = vpop.f32.mrf.mxu0 }
 0x230   : > { %v2719_v7 = vadd.f32 %v7685_v18, %v9996_v51 }
 0x231   : > { %v2876_v0 = vpop.f32.mrf.mxu1  ;;  %v7687_v36 = vpop.f32.mrf.mxu0 }
 0x232   : > { %v10104_v9 = vadd.f32 %v2871_v29, %v2719_v7  ;;  %v7688_v22 = vadd.f32 %v7687_v36, %v7686_v11 }
 0x233   : > { %v8322_v37 = vpop.f32.mrf.mxu1  ;;  %v7689_v1 = vpop.f32.mrf.mxu0 }
 0x234   : > { %v2724_v28 = vadd.f32 %v7688_v22, %v10001_v3 }
 0x235   : > { %v2879_v10 = vpop.f32.mrf.mxu1  ;;  %v7690_v13 = vpop.f32.mrf.mxu0 }
 0x236   : > { %v10107_v55 = vadd.f32 %v2876_v0, %v2724_v28  ;;  %v7691_v26 = vadd.f32 %v7690_v13, %v7689_v1 }
 0x237   : > { %v8323_v48 = vpop.f32.mrf.mxu1  ;;  %v7692_v14 = vpop.f32.mrf.mxu0 }
 0x238   : > { %v2727_v31 = vadd.f32 %v7691_v26, %v10004_v56  ;;  %v3765_v26 = vlaneseq }
 0x239   : > { %v2884_v5 = vpop.f32.mrf.mxu1  ;;  %v7693_v51 = vpop.f32.mrf.mxu0 }
 0x23a   : > { %v10110_v44 = vadd.f32 %v2879_v10, %v2727_v31  ;;  %v7694_v41 = vadd.f32 %v7693_v51, %v7692_v14 }
 0x23b   : > { %v8326_v61 = vpop.f32.mrf.mxu1  ;;  %v7695_v34 = vpop.f32.mrf.mxu0 }
 0x23c   : > { %v2732_v43 = vadd.f32 %v7694_v41, %v10009_v6 }
 0x23d   : > { %v2887_v20 = vpop.f32.mrf.mxu1  ;;  %v7696_v3 = vpop.f32.mrf.mxu0 }
 0x23e   : > { %v10113_v53 = vadd.f32 %v2884_v5, %v2732_v43  ;;  %v7697_v59 = vadd.f32 %v7696_v3, %v7695_v34  ;;  %v10129_v34 = vshrl.u32 %v3765_v26, 7 }
 0x23f   : > { %v8327_v21 = vpop.f32.mrf.mxu1  ;;  %v7698_v29 = vpop.f32.mrf.mxu0 }
 0x240   : > { %v2735_v52 = vadd.f32 %v7697_v59, %v10013_v27  ;;  %vm3769_vm11 = vcmp.ge.s32.totalorder %v10129_v34, 1 }
 0x241   : > { %v2892_v25 = vpop.f32.mrf.mxu1  ;;  %v7699_v56 = vpop.f32.mrf.mxu0 }
 0x242   : > { %v10116_v18 = vadd.f32 %v2887_v20, %v2735_v52  ;;  %v7700_v7 = vadd.f32 %v7699_v56, %v7698_v29 }
 0x243   : > { %v8330_v11 = vpop.f32.mrf.mxu1  ;;  %v7701_v0 = vpop.f32.mrf.mxu0 }
 0x244   : > { %v2740_v36 = vadd.f32 %v7700_v7, %v10018_v35  ;;  %v10127_v35 = vld [vmem:[%s11066_s3] ss:$0 sm:$0xff] }
 0x245   : > { %v2895_v37 = vpop.f32.mrf.mxu1  ;;  %v7702_v6 = vpop.f32.mrf.mxu0 }
 0x246   : > { %v10119_v22 = vadd.f32 %v2892_v25, %v2740_v36  ;;  %v7703_v28 = vadd.f32 %v7702_v6, %v7701_v0 }
 0x247   : > { %v8331_v1 = vpop.f32.mrf.mxu1  ;;  %v7743_v10 = vpop.f32.mrf.mxu0 }
 0x248   : > { %v2743_v13 = vadd.f32 %v7703_v28, %v10021_v54 }
 0x249   : > { %v3579_v48 = vpop.f32.mrf.mxu1  ;;  %v7744_v27 = vpop.f32.mrf.mxu0 }
 0x24a   : > { %v10122_v14 = vadd.f32 %v2895_v37, %v2743_v13  ;;  %v7745_v5 = vadd.f32 %v7744_v27, %v7743_v10  ;;  %v10139_v10 = vadd.s32 16, %v10129_v34 }
 0x24b   : > { %v8350_v31 = vpop.f32.mrf.mxu1  ;;  %v7746_v51 = vpop.f32.mrf.mxu0 }
 0x24c   : > { %v3580_v61 = vadd.f32 %v7745_v5, %v3579_v48  ;;  %vm3774_vm12 = vcmp.le.s32.totalorder %v10139_v10, 16 }
 0x24d   : > { %v3582_v41 = vpop.f32.mrf.mxu1  ;;  %v7747_v43 = vpop.f32.mrf.mxu0 }
 0x24e   : > { %v3698_v54 = vadd.f32 %v3580_v61, %v10027_v57  ;;  %v7748_v3 = vadd.f32 %v7747_v43, %v7746_v51 }
 0x24f   : > { %v8351_v20 = vpop.f32.mrf.mxu1  ;;  %v7749_v21 = vpop.f32.mrf.mxu0 }
 0x250   : > { %v3735_v59 = vadd.f32 %v10127_v35, %v3698_v54  ;;  %v3583_v29 = vadd.f32 %v7748_v3, %v3582_v41 }
 0x251   : > { %v3587_v52 = vpop.f32.mrf.mxu1  ;;  %v7750_v25 = vpop.f32.mrf.mxu0 }
 0x252   : > { %v3778_v56 = vmax.f32 %v3735_v59, 0.0  ;;  %v3699_v11 = vadd.f32 %v3583_v29, %v10032_v24  ;;  %v7751_v0 = vadd.f32 %v7750_v25, %v7749_v21  ;;  %v4224_v29 = vld [vmem:[#allocation3] sm:$0xf] }
 0x253   : > { %v8354_v7 = vpop.f32.mrf.mxu1  ;;  %v7752_v36 = vpop.f32.mrf.mxu0 }
 0x254   : > { %v3814_v37 = vsel %vm3769_vm11, %v3778_v56, 0.0  ;;  %v3736_v57 = vadd.f32 %v10127_v35, %v3699_v11  ;;  %v3588_v6 = vadd.f32 %v7751_v0, %v3587_v52 }
 0x255   : > { %v3590_v1 = vpop.f32.mrf.mxu1  ;;  %v7439_v28 = vpack.c.bf16 %v3814_v37, %v3814_v37  ;;  %v7753_v13 = vpop.f32.mrf.mxu0 }
 0x256   : > { %v3779_v48 = vmax.f32 %v3736_v57, 0.0  ;;  %v3700_v27 = vadd.f32 %v3588_v6, %v10035_v42  ;;  %v7754_v24 = vadd.f32 %v7753_v13, %v7752_v36 }
 0x257   : > { %v8355_v26 = vpop.f32.mrf.mxu1  ;;  %v3945_v31 = vshrl.u32 %v7439_v28, 16  ;;  %v3948_v5 = vshll.u32 %v7439_v28, 16  ;;  %4304 = vst [vmem:[#allocation3 + $0x4] sm:$0xf] %v7439_v28  ;;  %v7755_v51 = vpop.f32.mrf.mxu0 }
 0x258   : > { %v7440_v61 = vpack.c.bf16 %v3779_v48, %v3779_v48  ;;  %v3737_v41 = vadd.f32 %v10127_v35, %v3700_v27  ;;  %v3591_v43 = vadd.f32 %v7754_v24, %v3590_v1 }
 0x259   : > { %v3595_v54 = vpop.f32.mrf.mxu1  ;;  %v3947_v20 = vrot.slane %v3945_v31, 7  ;;  %v4334_v3 = vrot.slane %v3945_v31, 4  ;;  %v4335_v21 = vrot.slane %v3948_v5, 5  ;;  %v7756_v59 = vpop.f32.mrf.mxu0 }
 0x25a   : > { %v3953_v52 = vshrl.u32 %v7440_v61, 16  ;;  %v3956_v42 = vshll.u32 %v7440_v61, 16  ;;  %4305 = vst [vmem:[#allocation3 + $0x10] sm:$0xf] %v7440_v61  ;;  %v3780_v25 = vmax.f32 %v3737_v41, 0.0  ;;  %v3701_v56 = vadd.f32 %v3591_v43, %v10040_v17 }
 0x25b   : > { %v8358_v11 = vpop.f32.mrf.mxu1  ;;  %v3950_v7 = vor.u32 %v3948_v5, %v3947_v20  ;;  %v4336_v0 = vor.u32 %v4335_v21, %v4334_v3  ;;  %v7757_v36 = vadd.f32 %v7756_v59, %v7755_v51  ;;  %v7758_v37 = vpop.f32.mrf.mxu0  ;;  %v3951_v31 = vrot.slane %v3947_v20, 4 }
 0x25c   : > { %v3955_v57 = vrot.slane %v3953_v52, 7  ;;  %v4338_v6 = vrot.slane %v3956_v42, 5  ;;  %v4340_v1 = vrot.slane %v3953_v52, 4  ;;  %v3816_v28 = vsel %vm3774_vm12, %v3780_v25, 0.0 }
 0x25d   : > { %v3598_v13 = vpop.f32.mrf.mxu1  ;;  %v4225_v48 = vsel %vm9510_vm8, %v3950_v7, %v4224_v29  ;;  %v4337_v27 = vrot.slane %v4336_v0, 4  ;;  %v7441_v26 = vpack.c.bf16 %v3816_v28, %v3816_v28  ;;  %v3738_v24 = vadd.f32 %v10127_v35, %v3701_v56  ;;  %v7759_v17 = vpop.f32.mrf.mxu0 }
 0x25e   : > { %4226 = vst [vmem:[#allocation3] sm:$0xf] %v4225_v48  ;;  %v3958_v5 = vor.u32 %v3956_v42, %v3955_v57  ;;  %v4341_v51 = vor.u32 %v4340_v1, %v4338_v6  ;;  %v3596_v61 = vadd.f32 %v7757_v36, %v3595_v54  ;;  %v7760_v56 = vadd.f32 %v7759_v17, %v7758_v37 }
 0x25f   : > { %v8359_v41 = vpop.f32.mrf.mxu1  ;;  %v4339_v43 = vsel %vm9516_vm9, %v4337_v27, %v4338_v6  ;;  %v3962_v3 = vshrl.u32 %v7441_v26, 16  ;;  %v3965_v21 = vshll.u32 %v7441_v26, 16  ;;  %4306 = vst [vmem:[#allocation3 + $0x1c] sm:$0xf] %v7441_v26  ;;  %v3781_v59 = vmax.f32 %v3738_v24, 0.0  ;;  %v7761_v52 = vpop.f32.mrf.mxu0 }
 0x260   : > { %v3959_v29 = vsel %vm9504_vm7, %v3951_v31, %v3958_v5  ;;  %v4342_v25 = vrot.slane %v4341_v51, 4  ;;  %4504 = vst [vmem:[#allocation3 + $0x8] sm:$0xf] %v4339_v43  ;;  %v3702_v20 = vadd.f32 %v3596_v61, %v10043_v39  ;;  %v3599_v28 = vadd.f32 %v7760_v56, %v3598_v13  ;;  %v4506_v31 = vld [vmem:[#allocation3 + $0x20] sm:$0xf] }
 0x261   : > { %v3603_v42 = vpop.f32.mrf.mxu1  ;;  %4227 = vst [vmem:[#allocation3 + $0xc] sm:$0xf] %v3959_v29  ;;  %v3964_v54 = vrot.slane %v3962_v3, 7  ;;  %v4343_v11 = vrot.slane %v3965_v21, 5  ;;  %v4345_v7 = vrot.slane %v3962_v3, 4  ;;  %v3817_v0 = vsel %vm3769_vm11, %v3781_v59, 0.0  ;;  %v7762_v36 = vpop.f32.mrf.mxu0 }
 0x262   : > { %v7442_v6 = vpack.c.bf16 %v3817_v0, %v3817_v0  ;;  %v3739_v1 = vadd.f32 %v10127_v35, %v3702_v20  ;;  %v7763_v27 = vadd.f32 %v7762_v36, %v7761_v52  ;;  %v3960_v26 = vrot.slane %v3955_v57, 4 }
 0x263   : > { %v8362_v48 = vpop.f32.mrf.mxu1  ;;  %v3967_v24 = vor.u32 %v3965_v21, %v3964_v54  ;;  %v4344_v39 = vsel %vm9516_vm9, %v4342_v25, %v4343_v11  ;;  %v4346_v37 = vor.u32 %v4345_v7, %v4343_v11  ;;  %v7764_v17 = vpop.f32.mrf.mxu0  ;;  %v3703_v41 = vadd.f32 %v3599_v28, %v10048_v8  ;;  %v4229_v54 = vld [vmem:[#allocation3 + $0x24] sm:$0xf] }
 0x264   : > { %4505 = vst [vmem:[#allocation3 + $0x14] sm:$0xf] %v4344_v39  ;;  %v3970_v5 = vshrl.u32 %v7442_v6, 16  ;;  %v3973_v51 = vshll.u32 %v7442_v6, 16  ;;  %4307 = vst [vmem:[#allocation3 + $0x28] sm:$0xf] %v7442_v6  ;;  %v3604_v57 = vadd.f32 %v7763_v27, %v3603_v42 }
 0x265   : > { %v3782_v61 = vmax.f32 %v3739_v1, 0.0  ;;  %v3606_v43 = vpop.f32.mrf.mxu1  ;;  %v3968_v13 = vsel %vm9504_vm7, %v3960_v26, %v3967_v24  ;;  %v4347_v3 = vrot.slane %v4346_v37, 4  ;;  %v7765_v21 = vpop.f32.mrf.mxu0  ;;  %v3740_v11 = vadd.f32 %v10127_v35, %v3703_v41 }
 0x266   : > { %4228 = vst [vmem:[#allocation3 + $0x18] sm:$0xf] %v3968_v13  ;;  %v3972_v59 = vrot.slane %v3970_v5, 7  ;;  %v4348_v52 = vrot.slane %v3970_v5, 4  ;;  %v4349_v29 = vrot.slane %v3973_v51, 5  ;;  %v3704_v8 = vadd.f32 %v3604_v57, %v10051_v38 }
 0x267   : > { %v7443_v25 = vpack.c.bf16 %v3782_v61, %v3782_v61  ;;  %v8363_v20 = vpop.f32.mrf.mxu1  ;;  %v4507_v56 = vsel %vm9535_vm10, %v4347_v3, %v4506_v31  ;;  %v7766_v7 = vadd.f32 %v7765_v21, %v7764_v17  ;;  %v7767_v0 = vpop.f32.mrf.mxu0  ;;  %v3783_v27 = vmax.f32 %v3740_v11, 0.0 }
 0x268   : > { %4508 = vst [vmem:[#allocation3 + $0x20] sm:$0xf] %v4507_v56  ;;  %v3975_v36 = vor.u32 %v3973_v51, %v3972_v59  ;;  %v3976_v42 = vrot.slane %v3972_v59, 4  ;;  %v4350_v6 = vor.u32 %v4349_v29, %v4348_v52  ;;  %v3741_v26 = vadd.f32 %v10127_v35, %v3704_v8 }
 0x269   : > { %v3978_v1 = vshrl.u32 %v7443_v25, 16  ;;  %4308 = vst [vmem:[#allocation3 + $0x34] sm:$0xf] %v7443_v25  ;;  %v3611_v28 = vpop.f32.mrf.mxu1  ;;  %v3981_v48 = vshll.u32 %v7443_v25, 16  ;;  %v3607_v24 = vadd.f32 %v7766_v7, %v3606_v43  ;;  %v7768_v39 = vpop.f32.mrf.mxu0  ;;  %v3819_v61 = vsel %vm3774_vm12, %v3783_v27, 0.0 }
 0x26a   : > { %v4230_v37 = vsel %vm9510_vm8, %v3975_v36, %v4229_v54  ;;  %v4351_v31 = vrot.slane %v4350_v6, 4  ;;  %v3784_v41 = vmax.f32 %v3741_v26, 0.0  ;;  %v7444_v43 = vpack.c.bf16 %v3819_v61, %v3819_v61 }
 0x26b   : > { %v3980_v38 = vrot.slane %v3978_v1, 7  ;;  %v4354_v17 = vrot.slane %v3978_v1, 4  ;;  %v8366_v5 = vpop.f32.mrf.mxu1  ;;  %4231 = vst [vmem:[#allocation3 + $0x24] sm:$0xf] %v4230_v37  ;;  %v4352_v51 = vrot.slane %v3981_v48, 5  ;;  %v3705_v13 = vadd.f32 %v3607_v24, %v10056_v4  ;;  %v7770_v3 = vpop.f32.mrf.mxu0 }
 0x26c   : > { %v7769_v59 = vadd.f32 %v7768_v39, %v7767_v0  ;;  %v3820_v20 = vsel %vm3769_vm11, %v3784_v41, 0.0  ;;  %v3987_v4 = vshrl.u32 %v7444_v43, 16  ;;  %v3990_v8 = vshll.u32 %v7444_v43, 16  ;;  %4309 = vst [vmem:[#allocation3 + $0x40] sm:$0xf] %v7444_v43 }
 0x26d   : > { %v3983_v57 = vor.u32 %v3981_v48, %v3980_v38  ;;  %v3985_v21 = vrot.slane %v3980_v38, 4  ;;  %v3614_v52 = vpop.f32.mrf.mxu1  ;;  %v4353_v29 = vsel %vm9516_vm9, %v4351_v31, %v4352_v51  ;;  %v4355_v25 = vor.u32 %v4354_v17, %v4352_v51  ;;  %v7771_v54 = vpop.f32.mrf.mxu0  ;;  %v4234_v43 = vld [vmem:[#allocation3 + $0x48] sm:$0xf] }
 0x26e   : > { %v3742_v56 = vadd.f32 %v10127_v35, %v3705_v13  ;;  %4509 = vst [vmem:[#allocation3 + $0x2c] sm:$0xf] %v4353_v29  ;;  %v7445_v7 = vpack.c.bf16 %v3820_v20, %v3820_v20  ;;  %v3612_v1 = vadd.f32 %v7769_v59, %v3611_v28  ;;  %v7772_v48 = vadd.f32 %v7771_v54, %v7770_v3  ;;  %v4511_v28 = vld [vmem:[#allocation3 + $0x44] sm:$0xf] }
 0x26f   : > { %v3984_v11 = vsel %vm9504_vm7, %v3976_v42, %v3983_v57  ;;  %v8367_v0 = vpop.f32.mrf.mxu1  ;;  %v4356_v36 = vrot.slane %v4355_v25, 4  ;;  %v7773_v27 = vpop.f32.mrf.mxu0  ;;  %v3989_v26 = vrot.slane %v3987_v4, 7  ;;  %v4357_v24 = vrot.slane %v3990_v8, 5 }
 0x270   : > { %4232 = vst [vmem:[#allocation3 + $0x30] sm:$0xf] %v3984_v11  ;;  %v3785_v6 = vmax.f32 %v3742_v56, 0.0  ;;  %v4359_v39 = vrot.slane %v3987_v4, 4  ;;  %v3995_v37 = vshrl.u32 %v7445_v7, 16  ;;  %v3998_v38 = vshll.u32 %v7445_v7, 16 }
 0x271   : > { %4310 = vst [vmem:[#allocation3 + $0x4c] sm:$0xf] %v7445_v7  ;;  %v3619_v31 = vpop.f32.mrf.mxu1  ;;  %v3706_v17 = vadd.f32 %v3612_v1, %v10059_v30  ;;  %v3615_v5 = vadd.f32 %v7772_v48, %v3614_v52  ;;  %v7774_v51 = vpop.f32.mrf.mxu0  ;;  %v3992_v61 = vor.u32 %v3990_v8, %v3989_v26  ;;  %v4358_v41 = vsel %vm9516_vm9, %v4356_v36, %v4357_v24 }
 0x272   : > { %v7446_v42 = vpack.c.bf16 %v3785_v6, %v3785_v6  ;;  %v4360_v13 = vor.u32 %v4359_v39, %v4357_v24  ;;  %v3997_v3 = vrot.slane %v3995_v37, 7  ;;  %4510 = vst [vmem:[#allocation3 + $0x38] sm:$0xf] %v4358_v41  ;;  %v4362_v59 = vrot.slane %v3995_v37, 4 }
 0x273   : > { %v8370_v57 = vpop.f32.mrf.mxu1  ;;  %v4363_v29 = vrot.slane %v3998_v38, 5  ;;  %v7776_v56 = vpop.f32.mrf.mxu0  ;;  %v3993_v30 = vsel %vm9504_vm7, %v3985_v21, %v3992_v61  ;;  %v3743_v48 = vadd.f32 %v10127_v35, %v3706_v17  ;;  %v3707_v21 = vadd.f32 %v3615_v5, %v10062_v33 }
 0x274   : > { %v4003_v25 = vshrl.u32 %v7446_v42, 16  ;;  %v4006_v20 = vshll.u32 %v7446_v42, 16  ;;  %4311 = vst [vmem:[#allocation3 + $0x58] sm:$0xf] %v7446_v42  ;;  %v4361_v52 = vrot.slane %v4360_v13, 4  ;;  %v4000_v54 = vor.u32 %v3998_v38, %v3997_v3 }
 0x275   : > { %v3622_v11 = vpop.f32.mrf.mxu1  ;;  %4233 = vst [vmem:[#allocation3 + $0x3c] sm:$0xf] %v3993_v30  ;;  %v4364_v4 = vor.u32 %v4363_v29, %v4362_v59  ;;  %v7777_v36 = vpop.f32.mrf.mxu0  ;;  %v4001_v24 = vrot.slane %v3997_v3, 4  ;;  %v3786_v61 = vmax.f32 %v3743_v48, 0.0  ;;  %v3744_v41 = vadd.f32 %v10127_v35, %v3707_v21 }
 0x276   : > { %v10185_v8 = vrot.slane %v4003_v25, 7  ;;  %v4366_v7 = vrot.slane %v4006_v20, 5  ;;  %v4368_v0 = vrot.slane %v4003_v25, 4  ;;  %v4512_v6 = vsel %vm9535_vm10, %v4361_v52, %v4511_v28 }
 0x277   : > { %v4235_v1 = vsel %vm9510_vm8, %v4000_v54, %v4234_v43  ;;  %v8371_v26 = vpop.f32.mrf.mxu1  ;;  %4513 = vst [vmem:[#allocation3 + $0x44] sm:$0xf] %v4512_v6  ;;  %v4365_v39 = vrot.slane %v4364_v4, 4  ;;  %v7779_v42 = vpop.f32.mrf.mxu0  ;;  %v7775_v13 = vadd.f32 %v7774_v51, %v7773_v27  ;;  %v7778_v28 = vadd.f32 %v7777_v36, %v7776_v56 }
 0x278   : > { %4236 = vst [vmem:[#allocation3 + $0x48] sm:$0xf] %v4235_v1  ;;  %v4008_v37 = vor.u32 %v4006_v20, %v10185_v8  ;;  %v4369_v38 = vor.u32 %v4368_v0, %v4366_v7  ;;  %v3822_v3 = vsel %vm3774_vm12, %v3786_v61, 0.0  ;;  %v3787_v43 = vmax.f32 %v3744_v41, 0.0 }
 0x279   : > { %v3627_v57 = vpop.f32.mrf.mxu1  ;;  %v4367_v33 = vsel %vm9516_vm9, %v4365_v39, %v4366_v7  ;;  %v7780_v5 = vpop.f32.mrf.mxu0  ;;  %v3620_v59 = vadd.f32 %v7775_v13, %v3619_v31  ;;  %v3623_v29 = vadd.f32 %v7778_v28, %v3622_v11  ;;  %v7447_v20 = vpack.c.bf16 %v3822_v3, %v3822_v3  ;;  %v4239_v3 = vld [vmem:[#allocation3 + $0x6c] sm:$0xf] }
 0x27a   : > { %v4009_v17 = vsel %vm9504_vm7, %v4001_v24, %v4008_v37  ;;  %4514 = vst [vmem:[#allocation3 + $0x50] sm:$0xf] %v4367_v33  ;;  %v7781_v27 = vadd.f32 %v7780_v5, %v7779_v42  ;;  %v4370_v56 = vrot.slane %v4369_v38, 4  ;;  %v3823_v30 = vsel %vm3769_vm11, %v3787_v43, 0.0 }
 0x27b   : > { %4237 = vst [vmem:[#allocation3 + $0x54] sm:$0xf] %v4009_v17  ;;  %v8374_v25 = vpop.f32.mrf.mxu1  ;;  %v7782_v51 = vpop.f32.mrf.mxu0  ;;  %v3708_v52 = vadd.f32 %v3620_v59, %v10065_v15  ;;  %v3709_v54 = vadd.f32 %v3623_v29, %v10068_v49  ;;  %v4012_v7 = vshrl.u32 %v7447_v20, 16  ;;  %v4015_v0 = vshll.u32 %v7447_v20, 16  ;;  %4312 = vst [vmem:[#allocation3 + $0x64] sm:$0xf] %v7447_v20 }
 0x27c   : > { %v7448_v36 = vpack.c.bf16 %v3823_v30, %v3823_v30  ;;  %v3628_v6 = vadd.f32 %v7781_v27, %v3627_v57  ;;  %v4010_v11 = vrot.slane %v10185_v8, 4  ;;  %v4516_v17 = vld [vmem:[#allocation3 + $0x68] sm:$0xf] }
 0x27d   : > { %v3630_v4 = vpop.f32.mrf.mxu1  ;;  %v7783_v31 = vpop.f32.mrf.mxu0  ;;  %v3745_v1 = vadd.f32 %v10127_v35, %v3708_v52  ;;  %v3746_v48 = vadd.f32 %v10127_v35, %v3709_v54  ;;  %v4014_v24 = vrot.slane %v4012_v7, 7  ;;  %v4371_v39 = vrot.slane %v4015_v0, 5 }
 0x27e   : > { %v7784_v26 = vadd.f32 %v7783_v31, %v7782_v51  ;;  %v4373_v15 = vrot.slane %v4012_v7, 4  ;;  %v4020_v37 = vshrl.u32 %v7448_v36, 16  ;;  %4313 = vst [vmem:[#allocation3 + $0x70] sm:$0xf] %v7448_v36  ;;  %v4023_v38 = vshll.u32 %v7448_v36, 16 }
 0x27f   : > { %v8375_v21 = vpop.f32.mrf.mxu1  ;;  %v10208_v49 = vpop.f32.mrf.mxu0  ;;  %v3788_v42 = vmax.f32 %v3745_v1, 0.0  ;;  %v3789_v61 = vmax.f32 %v3746_v48, 0.0  ;;  %v3710_v41 = vadd.f32 %v3628_v6, %v10071_v23  ;;  %v4017_v8 = vor.u32 %v4015_v0, %v4014_v24 }
 0x280   : > { %v4372_v28 = vsel %vm9516_vm9, %v4370_v56, %v4371_v39  ;;  %v4374_v57 = vor.u32 %v4373_v15, %v4371_v39  ;;  %v4022_v33 = vrot.slane %v4020_v37, 7  ;;  %v4376_v43 = vrot.slane %v4020_v37, 4 }
 0x281   : > { %v10211_v13 = vpop.f32.mrf.mxu1  ;;  %v7786_v5 = vpop.f32.mrf.mxu0  ;;  %4515 = vst [vmem:[#allocation3 + $0x5c] sm:$0xf] %v4372_v28  ;;  %v4377_v59 = vrot.slane %v4023_v38, 5  ;;  %v7449_v29 = vpack.c.bf16 %v3788_v42, %v3788_v42  ;;  %v3825_v25 = vsel %vm3774_vm12, %v3789_v61, 0.0  ;;  %v4018_v23 = vsel %vm9504_vm7, %v4010_v11, %v4017_v8 }
 0x282   : > { %v4375_v27 = vrot.slane %v4374_v57, 4  ;;  %v4025_v51 = vor.u32 %v4023_v38, %v4022_v33  ;;  %v4026_v30 = vrot.slane %v4022_v33, 4  ;;  %4238 = vst [vmem:[#allocation3 + $0x60] sm:$0xf] %v4018_v23  ;;  %v7450_v0 = vpack.c.bf16 %v3825_v25, %v3825_v25 }
 0x283   : > { %v8378_v20 = vpop.f32.mrf.mxu1  ;;  %v7788_v56 = vpop.f32.mrf.mxu0  ;;  %v4378_v52 = vor.u32 %v4377_v59, %v4376_v43  ;;  %v4028_v54 = vshrl.u32 %v7449_v29, 16  ;;  %v4031_v7 = vshll.u32 %v7449_v29, 16  ;;  %4314 = vst [vmem:[#allocation3 + $0x7c] sm:$0xf] %v7449_v29  ;;  %v3747_v1 = vadd.f32 %v10127_v35, %v3710_v41 }
 0x284   : > { %v4517_v6 = vsel %vm9535_vm10, %v4375_v27, %v4516_v17  ;;  %v4240_v31 = vsel %vm9510_vm8, %v4025_v51, %v4239_v3  ;;  %v3631_v11 = vadd.f32 %v7784_v26, %v3630_v4  ;;  %4315 = vst [vmem:[#allocation3 + $0x88] sm:$0xf] %v7450_v0  ;;  %v4037_v38 = vshrl.u32 %v7450_v0, 16 }
 0x285   : > { %v3638_v36 = vpop.f32.mrf.mxu1  ;;  %v7789_v48 = vpop.f32.mrf.mxu0  ;;  %4518 = vst [vmem:[#allocation3 + $0x68] sm:$0xf] %v4517_v6  ;;  %4241 = vst [vmem:[#allocation3 + $0x6c] sm:$0xf] %v4240_v31  ;;  %v4379_v21 = vrot.slane %v4378_v52, 4  ;;  %v4030_v24 = vrot.slane %v4028_v54, 7 }
 0x286   : > { %v4380_v39 = vrot.slane %v4031_v7, 5  ;;  %v4382_v15 = vrot.slane %v4028_v54, 4  ;;  %v4040_v42 = vshll.u32 %v7450_v0, 16  ;;  %v3790_v61 = vmax.f32 %v3747_v1, 0.0  ;;  %v4521_v31 = vld [vmem:[#allocation3 + $0x8c] sm:$0xf] }
 0x287   : > { %v8379_v37 = vpop.f32.mrf.mxu1  ;;  %v3711_v8 = vadd.f32 %v3631_v11, %v10074_v47  ;;  %v7791_v28 = vpop.f32.mrf.mxu0  ;;  %v4033_v57 = vor.u32 %v4031_v7, %v4030_v24  ;;  %v4035_v17 = vrot.slane %v4030_v24, 4  ;;  %v4039_v33 = vrot.slane %v4037_v38, 7 }
 0x288   : > { %v4381_v4 = vsel %vm9516_vm9, %v4379_v21, %v4380_v39  ;;  %v4383_v26 = vor.u32 %v4382_v15, %v4380_v39  ;;  %v4385_v3 = vrot.slane %v4040_v42, 5  ;;  %v4387_v43 = vrot.slane %v4037_v38, 4 }
 0x289   : > { %v3643_v41 = vpop.f32.mrf.mxu1  ;;  %4519 = vst [vmem:[#allocation3 + $0x74] sm:$0xf] %v4381_v4  ;;  %v3826_v59 = vsel %vm3769_vm11, %v3790_v61, 0.0  ;;  %v7792_v29 = vpop.f32.mrf.mxu0  ;;  %v4034_v25 = vsel %vm9504_vm7, %v4026_v30, %v4033_v57  ;;  %v3748_v23 = vadd.f32 %v10127_v35, %v3711_v8  ;;  %v4042_v51 = vor.u32 %v4040_v42, %v4039_v33  ;;  %v4244_v8 = vld [vmem:[#allocation3 + $0x90] sm:$0xf] }
 0x28a   : > { %v4384_v47 = vrot.slane %v4383_v26, 4  ;;  %v7451_v20 = vpack.c.bf16 %v3826_v59, %v3826_v59  ;;  %4242 = vst [vmem:[#allocation3 + $0x78] sm:$0xf] %v4034_v25  ;;  %v4388_v52 = vor.u32 %v4387_v43, %v4385_v3  ;;  %v7787_v54 = vadd.f32 %v7786_v5, %v10208_v49 }
 0x28b   : > { %v8382_v27 = vpop.f32.mrf.mxu1  ;;  %v7790_v7 = vadd.f32 %v7789_v48, %v7788_v56  ;;  %v7794_v0 = vpop.f32.mrf.mxu0  ;;  %v3791_v30 = vmax.f32 %v3748_v23, 0.0  ;;  %v4043_v24 = vsel %vm9504_vm7, %v4035_v17, %v4042_v51  ;;  %v7793_v4 = vadd.f32 %v7792_v29, %v7791_v28 }
 0x28c   : > { %v4386_v6 = vsel %vm9516_vm9, %v4384_v47, %v4385_v3  ;;  %v4045_v1 = vshrl.u32 %v7451_v20, 16  ;;  %v4048_v11 = vshll.u32 %v7451_v20, 16  ;;  %4316 = vst [vmem:[#allocation3 + $0x94] sm:$0xf] %v7451_v20  ;;  %v4389_v39 = vrot.slane %v4388_v52, 4 }
 0x28d   : > { %v3646_v21 = vpop.f32.mrf.mxu1  ;;  %4520 = vst [vmem:[#allocation3 + $0x80] sm:$0xf] %v4386_v6  ;;  %v3636_v15 = vadd.f32 %v7787_v54, %v10211_v13  ;;  %v3639_v37 = vadd.f32 %v7790_v7, %v3638_v36  ;;  %v7795_v49 = vpop.f32.mrf.mxu0  ;;  %4243 = vst [vmem:[#allocation3 + $0x84] sm:$0xf] %v4043_v24  ;;  %v7452_v38 = vpack.c.bf16 %v3791_v30, %v3791_v30 }
 0x28e   : > { %v4047_v5 = vrot.slane %v4045_v1, 7  ;;  %v4390_v56 = vrot.slane %v4045_v1, 4  ;;  %v4391_v48 = vrot.slane %v4048_v11, 5  ;;  %v4522_v61 = vsel %vm9535_vm10, %v4389_v39, %v4521_v31 }
 0x28f   : > { %v8383_v42 = vpop.f32.mrf.mxu1  ;;  %v3712_v57 = vadd.f32 %v3636_v15, %v10077_v62  ;;  %v3713_v17 = vadd.f32 %v3639_v37, %v10080_v12  ;;  %v7797_v26 = vpop.f32.mrf.mxu0  ;;  %4523 = vst [vmem:[#allocation3 + $0x8c] sm:$0xf] %v4522_v61  ;;  %v4053_v3 = vshrl.u32 %v7452_v38, 16  ;;  %4317 = vst [vmem:[#allocation3 + $0xa0] sm:$0xf] %v7452_v38  ;;  %v4056_v59 = vshll.u32 %v7452_v38, 16 }
 0x290   : > { %v4050_v13 = vor.u32 %v4048_v11, %v4047_v5  ;;  %v4051_v36 = vrot.slane %v4047_v5, 4  ;;  %v4392_v33 = vor.u32 %v4391_v48, %v4390_v56  ;;  %v3644_v20 = vadd.f32 %v7793_v4, %v3643_v41 }
 0x291   : > { %v3651_v43 = vpop.f32.mrf.mxu1  ;;  %v3749_v25 = vadd.f32 %v10127_v35, %v3712_v57  ;;  %v3750_v47 = vadd.f32 %v10127_v35, %v3713_v17  ;;  %v7798_v23 = vpop.f32.mrf.mxu0  ;;  %v10246_v28 = vrot.slane %v4053_v3, 7  ;;  %v4396_v29 = vrot.slane %v4053_v3, 4 }
 0x292   : > { %v4245_v62 = vsel %vm9510_vm8, %v4050_v13, %v4244_v8  ;;  %v4393_v12 = vrot.slane %v4392_v33, 4  ;;  %v4394_v51 = vrot.slane %v4056_v59, 5  ;;  %v3714_v7 = vadd.f32 %v3644_v20, %v10083_v2 }
 0x293   : > { %v8386_v27 = vpop.f32.mrf.mxu1  ;;  %4246 = vst [vmem:[#allocation3 + $0x90] sm:$0xf] %v4245_v62  ;;  %v3792_v52 = vmax.f32 %v3749_v25, 0.0  ;;  %v3793_v54 = vmax.f32 %v3750_v47, 0.0  ;;  %v7800_v6 = vpop.f32.mrf.mxu0  ;;  %v4058_v31 = vor.u32 %v4056_v59, %v10246_v28  ;;  %v4060_v41 = vrot.slane %v10246_v28, 4 }
 0x294   : > { %v7796_v1 = vadd.f32 %v7795_v49, %v7794_v0  ;;  %v7799_v11 = vadd.f32 %v7798_v23, %v7797_v26  ;;  %v4395_v24 = vsel %vm9516_vm9, %v4393_v12, %v4394_v51  ;;  %v4397_v39 = vor.u32 %v4396_v29, %v4394_v51  ;;  %v4249_v12 = vld [vmem:[#allocation3 + $0xb4] sm:$0xf] }
 0x295   : > { %v3654_v30 = vpop.f32.mrf.mxu1  ;;  %v3828_v15 = vsel %vm3774_vm12, %v3792_v52, 0.0  ;;  %v3829_v37 = vsel %vm3769_vm11, %v3793_v54, 0.0  ;;  %v7801_v5 = vpop.f32.mrf.mxu0  ;;  %v4059_v2 = vsel %vm9504_vm7, %v4051_v36, %v4058_v31  ;;  %4524 = vst [vmem:[#allocation3 + $0x98] sm:$0xf] %v4395_v24  ;;  %v3751_v0 = vadd.f32 %v10127_v35, %v3714_v7  ;;  %v4526_v31 = vld [vmem:[#allocation3 + $0xb0] sm:$0xf] }
 0x296   : > { %v7453_v56 = vpack.c.bf16 %v3828_v15, %v3828_v15  ;;  %v7454_v48 = vpack.c.bf16 %v3829_v37, %v3829_v37  ;;  %4247 = vst [vmem:[#allocation3 + $0x9c] sm:$0xf] %v4059_v2  ;;  %v4398_v38 = vrot.slane %v4397_v39, 4  ;;  %v3647_v42 = vadd.f32 %v7796_v1, %v3646_v21 }
 0x297   : > { %v8387_v49 = vpop.f32.mrf.mxu1  ;;  %v3652_v61 = vadd.f32 %v7799_v11, %v3651_v43  ;;  %v7802_v8 = vadd.f32 %v7801_v5, %v7800_v6  ;;  %v10260_v57 = vpop.f32.mrf.mxu0  ;;  %v3794_v33 = vmax.f32 %v3751_v0, 0.0 }
 0x298   : > { %v4062_v17 = vshrl.u32 %v7453_v56, 16  ;;  %v4065_v4 = vshll.u32 %v7453_v56, 16  ;;  %4318 = vst [vmem:[#allocation3 + $0xac] sm:$0xf] %v7453_v56  ;;  %v4070_v26 = vshrl.u32 %v7454_v48, 16  ;;  %v4073_v13 = vshll.u32 %v7454_v48, 16 }
 0x299   : > { %4319 = vst [vmem:[#allocation3 + $0xb8] sm:$0xf] %v7454_v48  ;;  %v10262_v36 = vpop.f32.mrf.mxu1  ;;  %v3715_v3 = vadd.f32 %v3647_v42, %v10086_v60  ;;  %v3716_v59 = vadd.f32 %v3652_v61, %v10089_v45  ;;  %v3655_v25 = vadd.f32 %v7802_v8, %v3654_v30  ;;  %v7804_v47 = vpop.f32.mrf.mxu0  ;;  %v7455_v27 = vpack.c.bf16 %v3794_v33, %v3794_v33 }
 0x29a   : > { %v4064_v21 = vrot.slane %v4062_v17, 7  ;;  %v4399_v43 = vrot.slane %v4065_v4, 5  ;;  %v4401_v20 = vrot.slane %v4062_v17, 4  ;;  %v4072_v23 = vrot.slane %v4070_v26, 7 }
 0x29b   : > { %v8390_v62 = vpop.f32.mrf.mxu1  ;;  %v4404_v28 = vrot.slane %v4070_v26, 4  ;;  %v4405_v29 = vrot.slane %v4073_v13, 5  ;;  %v3752_v51 = vadd.f32 %v10127_v35, %v3715_v3  ;;  %v7806_v52 = vpop.f32.mrf.mxu0  ;;  %v4078_v30 = vshrl.u32 %v7455_v27, 16  ;;  %4320 = vst [vmem:[#allocation3 + $0xc4] sm:$0xf] %v7455_v27 }
 0x29c   : > { %v4067_v54 = vor.u32 %v4065_v4, %v4064_v21  ;;  %v4400_v60 = vsel %vm9516_vm9, %v4398_v38, %v4399_v43  ;;  %v4402_v7 = vor.u32 %v4401_v20, %v4399_v43  ;;  %v4075_v45 = vor.u32 %v4073_v13, %v4072_v23 }
 0x29d   : > { %v3662_v6 = vpop.f32.mrf.mxu1  ;;  %4525 = vst [vmem:[#allocation3 + $0xa4] sm:$0xf] %v4400_v60  ;;  %v4076_v1 = vrot.slane %v4072_v23, 4  ;;  %v4406_v11 = vor.u32 %v4405_v29, %v4404_v28  ;;  %v4081_v24 = vshll.u32 %v7455_v27, 16  ;;  %v7807_v39 = vpop.f32.mrf.mxu0  ;;  %v3795_v2 = vmax.f32 %v3752_v51, 0.0 }
 0x29e   : > { %v4068_v15 = vsel %vm9504_vm7, %v4060_v41, %v4067_v54  ;;  %v4403_v37 = vrot.slane %v4402_v7, 4  ;;  %v4250_v5 = vsel %vm9510_vm8, %v4075_v45, %v4249_v12  ;;  %v10273_v0 = vrot.slane %v4078_v30, 7 }
 0x29f   : > { %v8391_v56 = vpop.f32.mrf.mxu1  ;;  %4248 = vst [vmem:[#allocation3 + $0xa8] sm:$0xf] %v4068_v15  ;;  %4251 = vst [vmem:[#allocation3 + $0xb4] sm:$0xf] %v4250_v5  ;;  %v4407_v48 = vrot.slane %v4406_v11, 4  ;;  %v4408_v49 = vrot.slane %v4081_v24, 5  ;;  %v7809_v42 = vpop.f32.mrf.mxu0  ;;  %v3753_v8 = vadd.f32 %v10127_v35, %v3716_v59  ;;  %v3717_v17 = vadd.f32 %v3655_v25, %v10092_v32 }
 0x2a0   : > { %v4410_v38 = vrot.slane %v4078_v30, 4  ;;  %v4527_v61 = vsel %vm9535_vm10, %v4403_v37, %v4526_v31  ;;  %v3831_v41 = vsel %vm3774_vm12, %v3795_v2, 0.0  ;;  %v4083_v26 = vor.u32 %v4081_v24, %v10273_v0 }
 0x2a1   : > { %v3667_v4 = vpop.f32.mrf.mxu1  ;;  %4528 = vst [vmem:[#allocation3 + $0xb0] sm:$0xf] %v4527_v61  ;;  %v4085_v13 = vrot.slane %v10273_v0, 4  ;;  %v4409_v33 = vsel %vm9516_vm9, %v4407_v48, %v4408_v49  ;;  %v7810_v21 = vpop.f32.mrf.mxu0  ;;  %v7456_v43 = vpack.c.bf16 %v3831_v41, %v3831_v41  ;;  %v3796_v20 = vmax.f32 %v3753_v8, 0.0 }
 0x2a2   : > { %v4411_v3 = vor.u32 %v4410_v38, %v4408_v49  ;;  %4529 = vst [vmem:[#allocation3 + $0xbc] sm:$0xf] %v4409_v33  ;;  %v3754_v23 = vadd.f32 %v10127_v35, %v3717_v17  ;;  %v7805_v59 = vadd.f32 %v7804_v47, %v10260_v57  ;;  %v4084_v32 = vsel %vm9504_vm7, %v4076_v1, %v4083_v26  ;;  %v4531_v49 = vld [vmem:[#allocation3 + $0xd4] sm:$0xf]  ;;  %v4254_v17 = vld [vmem:[#allocation3 + $0xd8] sm:$0xf] }
 0x2a3   : > { %v8394_v62 = vpop.f32.mrf.mxu1  ;;  %v7808_v12 = vadd.f32 %v7807_v39, %v7806_v52  ;;  %v7811_v28 = vadd.f32 %v7810_v21, %v7809_v42  ;;  %v10289_v29 = vpop.f32.mrf.mxu0  ;;  %4252 = vst [vmem:[#allocation3 + $0xc0] sm:$0xf] %v4084_v32  ;;  %v4087_v27 = vshrl.u32 %v7456_v43, 16  ;;  %v4090_v51 = vshll.u32 %v7456_v43, 16  ;;  %4321 = vst [vmem:[#allocation3 + $0xd0] sm:$0xf] %v7456_v43 }
 0x2a4   : > { %v4412_v25 = vrot.slane %v4411_v3, 4  ;;  %v3832_v54 = vsel %vm3769_vm11, %v3796_v20, 0.0  ;;  %v3797_v60 = vmax.f32 %v3754_v23, 0.0  ;;  %v3660_v47 = vadd.f32 %v7805_v59, %v10262_v36 }
 0x2a5   : > { %v10293_v35 = vpop.f32.mrf.mxu1  ;;  %v7457_v57 = vpack.c.bf16 %v3832_v54, %v3832_v54  ;;  %v3663_v7 = vadd.f32 %v7808_v12, %v3662_v6  ;;  %v3668_v45 = vadd.f32 %v7811_v28, %v3667_v4  ;;  %v7813_v31 = vpop.f32.mrf.mxu0  ;;  %v4089_v52 = vrot.slane %v4087_v27, 7 }
 0x2a6   : > { %v4413_v1 = vrot.slane %v4090_v51, 5  ;;  %v4415_v11 = vrot.slane %v4087_v27, 4  ;;  %v7458_v30 = vpack.c.bf16 %v3797_v60, %v3797_v60  ;;  %v3718_v37 = vadd.f32 %v3660_v47, %v10095_v63 }
 0x2a7   : > { %v8395_v24 = vpop.f32.mrf.mxu1  ;;  %v4095_v39 = vshrl.u32 %v7457_v57, 16  ;;  %v4098_v15 = vshll.u32 %v7457_v57, 16  ;;  %4322 = vst [vmem:[#allocation3 + $0xdc] sm:$0xf] %v7457_v57  ;;  %v3719_v5 = vadd.f32 %v3663_v7, %v10098_v19  ;;  %v7815_v2 = vpop.f32.mrf.mxu0  ;;  %v4092_v56 = vor.u32 %v4090_v51, %v4089_v52 }
 0x2a8   : > { %v4414_v36 = vsel %vm9516_vm9, %v4412_v25, %v4413_v1  ;;  %v4416_v6 = vor.u32 %v4415_v11, %v4413_v1  ;;  %v4103_v48 = vshrl.u32 %v7458_v30, 16  ;;  %4323 = vst [vmem:[#allocation3 + $0xe8] sm:$0xf] %v7458_v30  ;;  %v4106_v41 = vshll.u32 %v7458_v30, 16 }
 0x2a9   : > { %v3675_v0 = vpop.f32.mrf.mxu1  ;;  %4530 = vst [vmem:[#allocation3 + $0xc8] sm:$0xf] %v4414_v36  ;;  %v4097_v38 = vrot.slane %v4095_v39, 7  ;;  %v4418_v42 = vrot.slane %v4095_v39, 4  ;;  %v4419_v61 = vrot.slane %v4098_v15, 5  ;;  %v7816_v8 = vpop.f32.mrf.mxu0  ;;  %v4093_v63 = vsel %vm9504_vm7, %v4085_v13, %v4092_v56 }
 0x2aa   : > { %v4417_v19 = vrot.slane %v4416_v6, 4  ;;  %v10302_v4 = vrot.slane %v4103_v48, 7  ;;  %v4424_v26 = vrot.slane %v4103_v48, 4  ;;  %4253 = vst [vmem:[#allocation3 + $0xcc] sm:$0xf] %v4093_v63  ;;  %v4422_v43 = vrot.slane %v4106_v41, 5 }
 0x2ab   : > { %v8398_v33 = vpop.f32.mrf.mxu1  ;;  %v4100_v3 = vor.u32 %v4098_v15, %v4097_v38  ;;  %v4420_v21 = vor.u32 %v4419_v61, %v4418_v42  ;;  %v7818_v20 = vpop.f32.mrf.mxu0  ;;  %v4101_v59 = vrot.slane %v4097_v38, 4  ;;  %v10310_v13 = vld [vmem:[%s11066_s3] ss:$0 sm:$0xff]  ;;  %v3720_v47 = vadd.f32 %v3668_v45, %v10101_v58 }
 0x2ac   : > { %v4532_v23 = vsel %vm9535_vm10, %v4417_v19, %v4531_v49  ;;  %v4108_v62 = vor.u32 %v4106_v41, %v10302_v4  ;;  %v3755_v32 = vadd.f32 %v10310_v13, %v3718_v37  ;;  %v4425_v27 = vor.u32 %v4424_v26, %v4422_v43 }
 0x2ad   : > { %v3678_v25 = vpop.f32.mrf.mxu1  ;;  %4533 = vst [vmem:[#allocation3 + $0xd4] sm:$0xf] %v4532_v23  ;;  %v4255_v12 = vsel %vm9510_vm8, %v4100_v3, %v4254_v17  ;;  %v4421_v28 = vrot.slane %v4420_v21, 4  ;;  %v3756_v51 = vadd.f32 %v10310_v13, %v3719_v5  ;;  %v7819_v54 = vpop.f32.mrf.mxu0  ;;  %v7814_v7 = vadd.f32 %v7813_v31, %v10289_v29 }
 0x2ae   : > { %4256 = vst [vmem:[#allocation3 + $0xd8] sm:$0xf] %v4255_v12  ;;  %v4109_v60 = vsel %vm9504_vm7, %v4101_v59, %v4108_v62  ;;  %v3798_v57 = vmax.f32 %v3755_v32, 0.0  ;;  %v7817_v30 = vadd.f32 %v7816_v8, %v7815_v2  ;;  %v3757_v15 = vadd.f32 %v10310_v13, %v3720_v47  ;;  %v4259_v12 = vld [vmem:[#allocation3 + $0xfc] sm:$0xf] }
 0x2af   : > { %v8399_v52 = vpop.f32.mrf.mxu1  ;;  %4257 = vst [vmem:[#allocation3 + $0xe4] sm:$0xf] %v4109_v60  ;;  %v4423_v1 = vsel %vm9516_vm9, %v4421_v28, %v4422_v43  ;;  %v3799_v11 = vmax.f32 %v3756_v51, 0.0  ;;  %v7821_v24 = vpop.f32.mrf.mxu0  ;;  %v3671_v37 = vadd.f32 %v7814_v7, %v10293_v35  ;;  %v7820_v5 = vadd.f32 %v7819_v54, %v7818_v20  ;;  %v4536_v51 = vld [vmem:[#allocation3 + $0xf8] sm:$0xf] }
 0x2b0   : > { %4534 = vst [vmem:[#allocation3 + $0xe0] sm:$0xf] %v4423_v1  ;;  %v3834_v39 = vsel %vm3774_vm12, %v3798_v57, 0.0  ;;  %v4110_v29 = vrot.slane %v10302_v4, 4  ;;  %v3676_v56 = vadd.f32 %v7817_v30, %v3675_v0  ;;  %v4426_v36 = vrot.slane %v4425_v27, 4 }
 0x2b1   : > { %v10326_v58 = vpop.f32.mrf.mxu1  ;;  %v7459_v45 = vpack.c.bf16 %v3834_v39, %v3834_v39  ;;  %v3835_v31 = vsel %vm3769_vm11, %v3799_v11, 0.0  ;;  %v7822_v2 = vpop.f32.mrf.mxu0  ;;  %v3800_v48 = vmax.f32 %v3757_v15, 0.0  ;;  %v3721_v49 = vadd.f32 %v3671_v37, %v10104_v9 }
 0x2b2   : > { %v7460_v6 = vpack.c.bf16 %v3835_v31, %v3835_v31  ;;  %v3722_v35 = vadd.f32 %v3676_v56, %v10107_v55  ;;  %v3679_v41 = vadd.f32 %v7820_v5, %v3678_v25  ;;  %v7823_v47 = vadd.f32 %v7822_v2, %v7821_v24 }
 0x2b3   : > { %v8402_v38 = vpop.f32.mrf.mxu1  ;;  %v4112_v42 = vshrl.u32 %v7459_v45, 16  ;;  %v4115_v61 = vshll.u32 %v7459_v45, 16  ;;  %4324 = vst [vmem:[#allocation3 + $0xf4] sm:$0xf] %v7459_v45  ;;  %v7824_v8 = vpop.f32.mrf.mxu0  ;;  %v7461_v17 = vpack.c.bf16 %v3800_v48, %v3800_v48  ;;  %v3758_v0 = vadd.f32 %v10310_v13, %v3721_v49 }
 0x2b4   : > { %v4120_v63 = vshrl.u32 %v7460_v6, 16  ;;  %v4123_v19 = vshll.u32 %v7460_v6, 16  ;;  %4325 = vst [vmem:[#allocation3 + $0x100] sm:$0xf] %v7460_v6  ;;  %v3759_v9 = vadd.f32 %v10310_v13, %v3722_v35  ;;  %v3723_v48 = vadd.f32 %v3679_v41, %v10110_v44 }
 0x2b5   : > { %v3686_v4 = vpop.f32.mrf.mxu1  ;;  %v4114_v26 = vrot.slane %v4112_v42, 7  ;;  %v4427_v33 = vrot.slane %v4115_v61, 5  ;;  %v4429_v3 = vrot.slane %v4112_v42, 4  ;;  %v7825_v21 = vpop.f32.mrf.mxu0  ;;  %v4128_v59 = vshrl.u32 %v7461_v17, 16  ;;  %4326 = vst [vmem:[#allocation3 + $0x10c] sm:$0xf] %v7461_v17 }
 0x2b6   : > { %v4122_v43 = vrot.slane %v4120_v63, 7  ;;  %v4432_v20 = vrot.slane %v4120_v63, 4  ;;  %v4433_v23 = vrot.slane %v4123_v19, 5  ;;  %v4131_v28 = vshll.u32 %v7461_v17, 16 }
 0x2b7   : > { %v8403_v55 = vpop.f32.mrf.mxu1  ;;  %v4117_v62 = vor.u32 %v4115_v61, %v4114_v26  ;;  %v4428_v32 = vsel %vm9516_vm9, %v4426_v36, %v4427_v33  ;;  %v4430_v25 = vor.u32 %v4429_v3, %v4427_v33  ;;  %v7827_v27 = vpop.f32.mrf.mxu0  ;;  %v10337_v57 = vrot.slane %v4128_v59, 7 }
 0x2b8   : > { %4535 = vst [vmem:[#allocation3 + $0xec] sm:$0xf] %v4428_v32  ;;  %v4125_v54 = vor.u32 %v4123_v19, %v4122_v43  ;;  %v4434_v60 = vor.u32 %v4433_v23, %v4432_v20  ;;  %v4436_v11 = vrot.slane %v4131_v28, 5  ;;  %v4438_v30 = vrot.slane %v4128_v59, 4 }
 0x2b9   : > { %v3691_v7 = vpop.f32.mrf.mxu1  ;;  %v4118_v52 = vsel %vm9504_vm7, %v4110_v29, %v4117_v62  ;;  %v4431_v1 = vrot.slane %v4430_v25, 4  ;;  %v4126_v39 = vrot.slane %v4122_v43, 4  ;;  %v4133_v5 = vor.u32 %v4131_v28, %v10337_v57  ;;  %v7828_v31 = vpop.f32.mrf.mxu0  ;;  %v4264_v28 = vld [vmem:[#allocation3 + $0x120] sm:$0xf] }
 0x2ba   : > { %4258 = vst [vmem:[#allocation3 + $0xf0] sm:$0xf] %v4118_v52  ;;  %v4260_v15 = vsel %vm9510_vm8, %v4125_v54, %v4259_v12  ;;  %v4435_v37 = vrot.slane %v4434_v60, 4  ;;  %v4439_v56 = vor.u32 %v4438_v30, %v4436_v11  ;;  %v3801_v2 = vmax.f32 %v3758_v0, 0.0 }
 0x2bb   : > { %v8406_v45 = vpop.f32.mrf.mxu1  ;;  %v4537_v24 = vsel %vm9535_vm10, %v4431_v1, %v4536_v51  ;;  %4261 = vst [vmem:[#allocation3 + $0xfc] sm:$0xf] %v4260_v15  ;;  %v3802_v29 = vmax.f32 %v3759_v9, 0.0  ;;  %v4134_v36 = vsel %vm9504_vm7, %v4126_v39, %v4133_v5  ;;  %v3684_v49 = vadd.f32 %v7823_v47, %v10326_v58  ;;  %v7830_v44 = vpop.f32.mrf.mxu0  ;;  %v4541_v1 = vld [vmem:[#allocation3 + $0x11c] sm:$0xf] }
 0x2bc   : > { %4538 = vst [vmem:[#allocation3 + $0xf8] sm:$0xf] %v4537_v24  ;;  %v4437_v6 = vsel %vm9516_vm9, %v4435_v37, %v4436_v11  ;;  %4262 = vst [vmem:[#allocation3 + $0x108] sm:$0xf] %v4134_v36  ;;  %v3837_v42 = vsel %vm3774_vm12, %v3801_v2, 0.0  ;;  %v7826_v35 = vadd.f32 %v7825_v21, %v7824_v8  ;;  %v3760_v17 = vadd.f32 %v10310_v13, %v3723_v48 }
 0x2bd   : > { %v10352_v38 = vpop.f32.mrf.mxu1  ;;  %4539 = vst [vmem:[#allocation3 + $0x104] sm:$0xf] %v4437_v6  ;;  %v3838_v61 = vsel %vm3769_vm11, %v3802_v29, 0.0  ;;  %v7462_v63 = vpack.c.bf16 %v3837_v42, %v3837_v42  ;;  %v3724_v0 = vadd.f32 %v3684_v49, %v10113_v53  ;;  %v4135_v58 = vrot.slane %v10337_v57, 4  ;;  %v7831_v12 = vpop.f32.mrf.mxu0 }
 0x2be   : > { %v7463_v19 = vpack.c.bf16 %v3838_v61, %v3838_v61  ;;  %v4440_v26 = vrot.slane %v4439_v56, 4  ;;  %v3687_v33 = vadd.f32 %v7826_v35, %v3686_v4  ;;  %v7829_v3 = vadd.f32 %v7828_v31, %v7827_v27 }
 0x2bf   : > { %v8407_v41 = vpop.f32.mrf.mxu1  ;;  %v4137_v9 = vshrl.u32 %v7462_v63, 16  ;;  %v4140_v43 = vshll.u32 %v7462_v63, 16  ;;  %4327 = vst [vmem:[#allocation3 + $0x118] sm:$0xf] %v7462_v63  ;;  %v3803_v8 = vmax.f32 %v3760_v17, 0.0  ;;  %v3761_v21 = vadd.f32 %v10310_v13, %v3724_v0 }
 0x2c0   : > { %v4145_v20 = vshrl.u32 %v7463_v19, 16  ;;  %v4148_v23 = vshll.u32 %v7463_v19, 16  ;;  %4328 = vst [vmem:[#allocation3 + $0x124] sm:$0xf] %v7463_v19  ;;  %v3725_v59 = vadd.f32 %v3687_v33, %v10116_v18  ;;  %v3692_v55 = vadd.f32 %v7829_v3, %v3691_v7 }
 0x2c1   : > { %v4139_v53 = vrot.slane %v4137_v9, 7  ;;  %v4441_v62 = vrot.slane %v4140_v43, 5  ;;  %v4443_v32 = vrot.slane %v4137_v9, 4  ;;  %v7464_v51 = vpack.c.bf16 %v3803_v8, %v3803_v8 }
 0x2c2   : > { %v4147_v25 = vrot.slane %v4145_v20, 7  ;;  %v4446_v4 = vrot.slane %v4145_v20, 4  ;;  %v4447_v27 = vrot.slane %v4148_v23, 5  ;;  %v3804_v54 = vmax.f32 %v3761_v21, 0.0 }
 0x2c3   : > { %v4142_v60 = vor.u32 %v4140_v43, %v4139_v53  ;;  %v4442_v57 = vsel %vm9516_vm9, %v4440_v26, %v4441_v62  ;;  %v4444_v47 = vor.u32 %v4443_v32, %v4441_v62  ;;  %v4153_v7 = vshrl.u32 %v7464_v51, 16  ;;  %4329 = vst [vmem:[#allocation3 + $0x130] sm:$0xf] %v7464_v51 }
 0x2c4   : > { %v4150_v52 = vor.u32 %v4148_v23, %v4147_v25  ;;  %4540 = vst [vmem:[#allocation3 + $0x110] sm:$0xf] %v4442_v57  ;;  %v4448_v18 = vor.u32 %v4447_v27, %v4446_v4  ;;  %v4156_v11 = vshll.u32 %v7464_v51, 16  ;;  %v7832_v30 = vadd.f32 %v7831_v12, %v7830_v44  ;;  %v4269_v27 = vld [vmem:[#allocation3 + $0x144] sm:$0xf] }
 0x2c5   : > { %v4143_v39 = vsel %vm9504_vm7, %v4135_v58, %v4142_v60  ;;  %v4445_v15 = vrot.slane %v4444_v47, 4  ;;  %v3840_v5 = vsel %vm3774_vm12, %v3804_v54, 0.0  ;;  %v4155_v31 = vrot.slane %v4153_v7, 7 }
 0x2c6   : > { %v4265_v37 = vsel %vm9510_vm8, %v4150_v52, %v4264_v28  ;;  %4263 = vst [vmem:[#allocation3 + $0x114] sm:$0xf] %v4143_v39  ;;  %v4449_v45 = vrot.slane %v4448_v18, 4  ;;  %v4450_v24 = vrot.slane %v4156_v11, 5  ;;  %v4452_v56 = vrot.slane %v4153_v7, 4 }
 0x2c7   : > { %4266 = vst [vmem:[#allocation3 + $0x120] sm:$0xf] %v4265_v37  ;;  %v4542_v2 = vsel %vm9535_vm10, %v4445_v15, %v4541_v1  ;;  %v7465_v29 = vpack.c.bf16 %v3840_v5, %v3840_v5  ;;  %v3762_v36 = vadd.f32 %v10310_v13, %v3725_v59  ;;  %v3726_v6 = vadd.f32 %v3692_v55, %v10119_v22  ;;  %v4546_v59 = vld [vmem:[#allocation3 + $0x140] sm:$0xf] }
 0x2c8   : > { %4543 = vst [vmem:[#allocation3 + $0x11c] sm:$0xf] %v4542_v2  ;;  %v4151_v48 = vrot.slane %v4147_v25, 4  ;;  %v4158_v49 = vor.u32 %v4156_v11, %v4155_v31  ;;  %v4451_v42 = vsel %vm9516_vm9, %v4449_v45, %v4450_v24  ;;  %v4453_v61 = vor.u32 %v4452_v56, %v4450_v24 }
 0x2c9   : > { %4544 = vst [vmem:[#allocation3 + $0x128] sm:$0xf] %v4451_v42  ;;  %v4162_v35 = vshrl.u32 %v7465_v29, 16  ;;  %v4165_v63 = vshll.u32 %v7465_v29, 16  ;;  %4330 = vst [vmem:[#allocation3 + $0x13c] sm:$0xf] %v7465_v29  ;;  %v3763_v17 = vadd.f32 %v10310_v13, %v3726_v6  ;;  %v3695_v22 = vadd.f32 %v7832_v30, %v10352_v38 }
 0x2ca   : > { %v3805_v19 = vmax.f32 %v3762_v36, 0.0  ;;  %v4159_v0 = vsel %vm9504_vm7, %v4151_v48, %v4158_v49  ;;  %v4454_v44 = vrot.slane %v4453_v61, 4  ;;  %v4160_v20 = vrot.slane %v4155_v31, 4  ;;  %v4551_v48 = vld [vmem:[#allocation3 + $0x164] sm:$0xf] }
 0x2cb   : > { %4267 = vst [vmem:[#allocation3 + $0x12c] sm:$0xf] %v4159_v0  ;;  %v4164_v41 = vrot.slane %v4162_v35, 7  ;;  %v4455_v58 = vrot.slane %v4165_v63, 5  ;;  %v4457_v26 = vrot.slane %v4162_v35, 4  ;;  %v3806_v9 = vmax.f32 %v3763_v17, 0.0 }
 0x2cc   : > { %v3841_v33 = vsel %vm3769_vm11, %v3805_v19, 0.0  ;;  %v3727_v43 = vadd.f32 %v3695_v22, %v10122_v14 }
 0x2cd   : > { %v7466_v3 = vpack.c.bf16 %v3841_v33, %v3841_v33  ;;  %v4167_v23 = vor.u32 %v4165_v63, %v4164_v41  ;;  %v4456_v8 = vsel %vm9516_vm9, %v4454_v44, %v4455_v58  ;;  %v4458_v21 = vor.u32 %v4457_v26, %v4455_v58 }
 0x2ce   : > { %4545 = vst [vmem:[#allocation3 + $0x134] sm:$0xf] %v4456_v8  ;;  %v7467_v53 = vpack.c.bf16 %v3806_v9, %v3806_v9  ;;  %v3764_v62 = vadd.f32 %v10310_v13, %v3727_v43 }
 0x2cf   : > { %v4170_v38 = vshrl.u32 %v7466_v3, 16  ;;  %v4173_v55 = vshll.u32 %v7466_v3, 16  ;;  %4331 = vst [vmem:[#allocation3 + $0x148] sm:$0xf] %v7466_v3  ;;  %v4168_v34 = vsel %vm9504_vm7, %v4160_v20, %v4167_v23  ;;  %v4459_v32 = vrot.slane %v4458_v21, 4 }
 0x2d0   : > { %4268 = vst [vmem:[#allocation3 + $0x138] sm:$0xf] %v4168_v34  ;;  %v4178_v28 = vshrl.u32 %v7467_v53, 16  ;;  %4332 = vst [vmem:[#allocation3 + $0x154] sm:$0xf] %v7467_v53  ;;  %v4181_v51 = vshll.u32 %v7467_v53, 16 }
 0x2d1   : > { %v4172_v14 = vrot.slane %v4170_v38, 7  ;;  %v4460_v25 = vrot.slane %v4170_v38, 4  ;;  %v4461_v12 = vrot.slane %v4173_v55, 5  ;;  %v4547_v4 = vsel %vm9535_vm10, %v4459_v32, %v4546_v59 }
 0x2d2   : > { %v3807_v54 = vmax.f32 %v3764_v62, 0.0  ;;  %4548 = vst [vmem:[#allocation3 + $0x140] sm:$0xf] %v4547_v4  ;;  %v4180_v13 = vrot.slane %v4178_v28, 7  ;;  %v4464_v47 = vrot.slane %v4181_v51, 5  ;;  %v4466_v52 = vrot.slane %v4178_v28, 4 }
 0x2d3   : > { %v4175_v60 = vor.u32 %v4173_v55, %v4172_v14  ;;  %v4462_v57 = vor.u32 %v4461_v12, %v4460_v25  ;;  %v4176_v18 = vrot.slane %v4172_v14, 4 }
 0x2d4   : > { %v3843_v1 = vsel %vm3774_vm12, %v3807_v54, 0.0  ;;  %v4183_v30 = vor.u32 %v4181_v51, %v4180_v13  ;;  %v4467_v39 = vor.u32 %v4466_v52, %v4464_v47  ;;  %v4185_v2 = vrot.slane %v4180_v13, 4 }
 0x2d5   : > { %v4270_v7 = vsel %vm9510_vm8, %v4175_v60, %v4269_v27  ;;  %v4463_v11 = vrot.slane %v4462_v57, 4  ;;  %v7468_v15 = vpack.c.bf16 %v3843_v1, %v3843_v1 }
 0x2d6   : > { %4271 = vst [vmem:[#allocation3 + $0x144] sm:$0xf] %v4270_v7  ;;  %v4184_v37 = vsel %vm9504_vm7, %v4176_v18, %v4183_v30  ;;  %v4468_v45 = vrot.slane %v4467_v39, 4 }
 0x2d7   : > { %v4465_v5 = vsel %vm9516_vm9, %v4463_v11, %v4464_v47  ;;  %4272 = vst [vmem:[#allocation3 + $0x150] sm:$0xf] %v4184_v37  ;;  %v4187_v10 = vshrl.u32 %v7468_v15, 16  ;;  %v4190_v31 = vshll.u32 %v7468_v15, 16  ;;  %4333 = vst [vmem:[#allocation3 + $0x160] sm:$0xf] %v7468_v15 }
 0x2d8   : > { %4549 = vst [vmem:[#allocation3 + $0x14c] sm:$0xf] %v4465_v5 }
 0x2d9   : > { %v4189_v46 = vrot.slane %v4187_v10, 7  ;;  %v4469_v24 = vrot.slane %v4190_v31, 5  ;;  %v4471_v56 = vrot.slane %v4187_v10, 4 }
 0x2db   : > { %v4192_v29 = vor.u32 %v4190_v31, %v4189_v46  ;;  %v4470_v36 = vsel %vm9516_vm9, %v4468_v45, %v4469_v24  ;;  %v4472_v6 = vor.u32 %v4471_v56, %v4469_v24 }
 0x2dc   : > { %4550 = vst [vmem:[#allocation3 + $0x158] sm:$0xf] %v4470_v36  ;;  %4557 = sbr.rel (%p7215_p4) target bundleno = 741 (0x2e5), region = 64 }
 0x2dd   : > { %v4193_v49 = vsel %vm9504_vm7, %v4185_v2, %v4192_v29  ;;  %v4473_v42 = vrot.slane %v4472_v6, 4 }
 0x2de   : > { %4273 = vst [vmem:[#allocation3 + $0x15c] sm:$0xf] %v4193_v49 }
 0x2df   : > { %v4552_v61 = vsel %vm9535_vm10, %v4473_v42, %v4551_v48 }
 0x2e0   : > { %4553 = vst [vmem:[#allocation3 + $0x164] sm:$0xf] %v4552_v61 }
 0x2e1   : > { %v9257_v50 = vmov 0  }
 0x2e2   : > { %4558 = vst [vmem:[#allocation3] sm:$0xff] %v9257_v50  ;;  %4559 = vst [vmem:[#allocation3 + $0x8] sm:$0xf] %v9257_v50 }
 0x2e3   : > { %4560 = vst [vmem:[#allocation3 + $0xc] sm:$0xff] %v9257_v50  ;;  %4561 = vst [vmem:[#allocation3 + $0x14] sm:$0xf] %v9257_v50 }
 0x2e4   : > { %4562 = vst [vmem:[#allocation3 + $0x18] sm:$0xff] %v9257_v50  ;;  %4563 = vst [vmem:[#allocation3 + $0x20] sm:$0xf] %v9257_v50 }
 0x2e5 PF: > { %p7216_p5 = scmp.ne.s32.totalorder %s9229_s24, 1 }
 0x2e7   : > { %4567 = sbr.rel (%p7216_p5) target bundleno = 752 (0x2f0), region = 68 }
 0x2ec   : > { %v9258_v40 = vmov 0  }
 0x2ed   : > { %4569 = vst [vmem:[#allocation3 + $0x144] sm:$0xff] %v9258_v40  ;;  %4570 = vst [vmem:[#allocation3 + $0x14c] sm:$0xf] %v9258_v40 }
 0x2ee   : > { %4571 = vst [vmem:[#allocation3 + $0x150] sm:$0xff] %v9258_v40  ;;  %4572 = vst [vmem:[#allocation3 + $0x158] sm:$0xf] %v9258_v40 }
 0x2ef   : > { %4573 = vst [vmem:[#allocation3 + $0x15c] sm:$0xff] %v9258_v40  ;;  %4574 = vst [vmem:[#allocation3 + $0x164] sm:$0xf] %v9258_v40 }
 0x2f0 PF: > { %v8865_v16 = vld [vmem:[#allocation10 + $0x138] sm:$0xff]   ;;  %v8868_v19 = vld [vmem:[#allocation10 + $0x130] sm:$0xff]   ;;  %v8871_v44 = vld [vmem:[#allocation10 + $0x128] sm:$0xff]   ;;  %s11121_s10 = sld [smem:[#allocation20_spill]]  ;;  %s8552_s2 = smul.u32 24, %s9229_s24 }
 0x2f1   : > { %v8866_v35 = vld [vmem:[#allocation10 + $0x178] sm:$0xff]   ;;  %7856 = vmatprep.subr.bf16.mxu0 %v8865_v16  ;;  %v8869_v17 = vld [vmem:[#allocation10 + $0x170] sm:$0xff]   ;;  %v8872_v22 = vld [vmem:[#allocation10 + $0x168] sm:$0xff]   ;;  %s6793_s4 = sshll.u32 %s10407_s14, 4  ;;  %s11130_s25 = sld [smem:[#allocation36_spill]]  ;;  %s11008_s4 = int_to_ptr.vmem [resolvable:$true] %s6793_s4 }
 0x2f2   : > { %v8867_v63 = vld [vmem:[#allocation10 + $0xf8] sm:$0xff]   ;;  %8408 = vmatprep.subr.bf16.mxu1 %v8866_v35  ;;  %v8870_v0 = vld [vmem:[#allocation10 + $0xf0] sm:$0xff]   ;;  %v8873_v41 = vld [vmem:[#allocation10 + $0xe8] sm:$0xff]   ;;  %s6777_s8 = scalar_lea.sflag [#allocation6], %s9460_s0  ;;  %s9137_s9 = scalar_lea.vmem %s11008_s4, 3072 }
 0x2f3   : > { %7857 = vmatpush3.bf16.msra.mxu0 %v8867_v63  ;;  %8409 = vmatpush3.bf16.msra.mxu1 %v8866_v35  ;;  %v8874_v58 = vld [vmem:[#allocation10 + $0x120] sm:$0xff]   ;;  %v8877_v3 = vld [vmem:[#allocation10 + $0x118] sm:$0xff]   ;;  %v8880_v20 = vld [vmem:[#allocation10 + $0x110] sm:$0xff]   ;;  %p9138_p9 = scmp.ne.s32.totalorder %s11008_s4, %s9137_s9 }
 0x2f4   : > { %7858 = vmatprep.subr.bf16.mxu0 %v8868_v19  ;;  %8410 = vmatprep.subr.bf16.mxu1 %v8869_v17  ;;  %v8875_v26 = vld [vmem:[#allocation10 + $0x160] sm:$0xff]   ;;  %v8878_v9 = vld [vmem:[#allocation10 + $0x158] sm:$0xff]   ;;  %v8881_v23 = vld [vmem:[#allocation10 + $0x150] sm:$0xff]  }
 0x2f5   : > { %v8876_v33 = vld [vmem:[#allocation10 + $0xe0] sm:$0xff]   ;;  %v8879_v43 = vld [vmem:[#allocation10 + $0xd8] sm:$0xff]   ;;  %v8882_v8 = vld [vmem:[#allocation10 + $0xd0] sm:$0xff]   ;;  %p9139_p12 = pnand %p9138_p9, %p9404_p7 }
 0x2f6   : > { %v8883_v21 = vld [vmem:[#allocation10 + $0x108] sm:$0xff]   ;;  %v8886_v55 = vld [vmem:[#allocation10 + $0x100] sm:$0xff]   ;;  %v10417_v12 = vld [vmem:[#allocation10 + $0xb8] sm:$0xff]   ;;  %s8553_s18 = smul.u32 48, %s11121_s10 }
 0x2f7   : > { %7859 = vmatpush3.bf16.msra.mxu0 %v8870_v0  ;;  %8411 = vmatpush3.bf16.msra.mxu1 %v8869_v17  ;;  %v8884_v59 = vld [vmem:[#allocation10 + $0x148] sm:$0xff]   ;;  %v8887_v53 = vld [vmem:[#allocation10 + $0x140] sm:$0xff]   ;;  %v8894_v28 = vld [vmem:[#allocation10 + $0x78] sm:$0xff]   ;;  %s11131_s19 = smov %s11130_s25  ;;  %p9140_p0 = pneg %p9139_p12 }
 0x2f8   : > { %7860 = vmatprep.subr.bf16.mxu0 %v8871_v44  ;;  %8412 = vmatprep.subr.bf16.mxu1 %v8872_v22  ;;  %v8885_v38 = vld [vmem:[#allocation10 + $0xc8] sm:$0xff]   ;;  %v10411_v62 = vld [vmem:[#allocation3 + $0x24] sm:$0xff]  ;;  %v8891_v14 = vld [vmem:[#allocation3 + $0x2c] ss:$12 sps:$4 sm:$0xff]   ;;  %s6790_s24 = sadd.s32 %s8553_s18, %s8552_s2 }
 0x2f9   : > { %v10413_v34 = vld [vmem:[#allocation3 + $0x30] sm:$0xff]  ;;  %v8888_v25 = vld [vmem:[#allocation10 + $0xc0] sm:$0xff]   ;;  %8424 = vmatprep.mubr.bf16.mxu1 %v8891_v14  ;;  %v10419_v4 = vld [vmem:[#allocation3 + $0x3c] sm:$0xff]  ;;  %s7400_s12 = sshll.u32 %s6790_s24, 7 }
 0x2fa   : > { %v7218_v32 = vcombine.high %v10411_v62, %v10413_v34  ;;  %v10421_v27 = vld [vmem:[#allocation3 + $0x48] sm:$0xff]  ;;  %v7217_v51 = vcombine.low %v10411_v62, %v10413_v34  ;;  %v8892_v54 = vld [vmem:[#allocation3 + $0x44] ss:$12 sps:$4 sm:$0xff]   ;;  %v8900_v47 = vld [vmem:[#allocation10 + $0x70] sm:$0xff]   ;;  %s11006_s23 = scalar_lea.hbm %s11130_s25, %s7400_s12 }
 0x2fb   : > { %7861 = vmatpush3.bf16.msra.mxu0 %v8873_v41  ;;  %8413 = vmatpush3.bf16.msra.mxu1 %v8872_v22  ;;  %v8895_v60 = vld [vmem:[#allocation10 + $0x38] sm:$0xff]   ;;  %v7221_v57 = vcombine.high %v10419_v4, %v10421_v27  ;;  %v8897_v13 = vld [vmem:[#allocation3 + $0x5c] ss:$12 sps:$4 sm:$0xff]   ;;  %v10430_v18 = vld [vmem:[#allocation3 + $0x54] sm:$0xff]  ;;  %v7220_v30 = vcombine.low %v10419_v4, %v10421_v27 }
 0x2fc   : > { %7862 = vmatprep.subr.bf16.mxu0 %v8874_v58  ;;  %8414 = vmatprep.subr.bf16.mxu1 %v8875_v26  ;;  %v8901_v52 = vld [vmem:[#allocation10 + $0x30] sm:$0xff]   ;;  %v10433_v7 = vld [vmem:[#allocation3 + $0x60] sm:$0xff]  ;;  %v8905_v11 = vld [vmem:[#allocation10 + $0x68] sm:$0xff]  }
 0x2fd   : > { %5137 = vmatprep.mubr.bf16.mxu0 %v7218_v32  ;;  %v10428_v1 = vld [vmem:[#allocation10 + $0xb0] sm:$0xff]   ;;  %v8899_v39 = vld [vmem:[#allocation3 + $0x74] ss:$12 sps:$4 sm:$0xff]   ;;  %v7224_v15 = vcombine.high %v10430_v18, %v10433_v7  ;;  %v8909_v45 = vld [vmem:[#allocation10 + $0x60] sm:$0xff]   ;;  %v7223_v2 = vcombine.low %v10430_v18, %v10433_v7 }
 0x2fe   : > { %v8904_v37 = vld [vmem:[#allocation3 + $0x8c] ss:$12 sps:$4 sm:$0xff]   ;;  %v8908_v5 = vld [vmem:[#allocation10 + $0x28] sm:$0xff]   ;;  %v8916_v56 = vld [vmem:[#allocation10 + $0x58] sm:$0xff]  }
 0x2ff   : > { %7863 = vmatpush3.bf16.msra.mxu0 %v8876_v33  ;;  %8415 = vmatpush3.bf16.msra.mxu1 %v8875_v26  ;;  %v8910_v10 = vld [vmem:[#allocation10 + $0x20] sm:$0xff]   ;;  %v10443_v46 = vld [vmem:[#allocation3 + $0x78] sm:$0xff]  ;;  %v10445_v24 = vld [vmem:[#allocation10 + $0xa8] sm:$0xff]  }
 0x300   : > { %7864 = vmatprep.subr.bf16.mxu0 %v8877_v3  ;;  %8416 = vmatprep.subr.bf16.mxu1 %v8878_v9  ;;  %v10441_v31 = vld [vmem:[#allocation3 + $0x6c] sm:$0xff]  ;;  %v8912_v6 = vld [vmem:[#allocation3 + $0xbc] ss:$12 sps:$4 sm:$0xff]   ;;  %v8917_v48 = vld [vmem:[#allocation10 + $0x18] sm:$0xff]  }
 0x301   : > { %v8907_v29 = vld [vmem:[#allocation3 + $0xa4] ss:$12 sps:$4 sm:$0xff]   ;;  %v7227_v36 = vcombine.high %v10441_v31, %v10443_v46  ;;  %v8922_v49 = vld [vmem:[#allocation10 + $0x50] sm:$0xff]   ;;  %v10457_v40 = vld [vmem:[#allocation10 + $0xa0] sm:$0xff]   ;;  %v7226_v35 = vcombine.low %v10441_v31, %v10443_v46 }
 0x302   : > { %v10453_v42 = vld [vmem:[#allocation3 + $0x84] sm:$0xff]  ;;  %v10455_v61 = vld [vmem:[#allocation3 + $0x90] sm:$0xff]  ;;  %v8923_v50 = vld [vmem:[#allocation10 + $0x10] sm:$0xff]  }
 0x303   : > { %7865 = vmatpush3.bf16.msra.mxu0 %v8879_v43  ;;  %8417 = vmatpush3.bf16.msra.mxu1 %v8878_v9  ;;  %v8914_v16 = vld [vmem:[#allocation3 + $0xd4] ss:$12 sps:$4 sm:$0xff]   ;;  %v7230_v19 = vcombine.high %v10453_v42, %v10455_v61  ;;  %v8919_v17 = vld [vmem:[#allocation3 + $0xec] ss:$12 sps:$4 sm:$0xff]   ;;  %v7229_v33 = vcombine.low %v10453_v42, %v10455_v61  ;;  %v8921_v3 = vld [vmem:[#allocation3 + $0x104] ss:$12 sps:$4 sm:$0xff]  }
 0x304   : > { %7866 = vmatprep.subr.bf16.mxu0 %v8880_v20  ;;  %8418 = vmatprep.subr.bf16.mxu1 %v8881_v23  ;;  %v8927_v63 = vld [vmem:[#allocation10 + $0x48] sm:$0xff]   ;;  %v8931_v44 = vld [vmem:[#allocation10 + $0x40] sm:$0xff]   ;;  %v10465_v22 = vld [vmem:[#allocation3 + $0x9c] sm:$0xff] }
 0x305   : > { %v8930_v0 = vld [vmem:[#allocation10 + $0x8] sm:$0xff]   ;;  %v10467_v41 = vld [vmem:[#allocation3 + $0xa8] sm:$0xff]  ;;  %v10469_v26 = vld [vmem:[#allocation10 + $0x98] sm:$0xff]  }
 0x306   : > { %v8932_v58 = vld [vmem:[#allocation10] sm:$0xff]   ;;  %v7233_v43 = vcombine.high %v10465_v22, %v10467_v41  ;;  %v10476_v20 = vld [vmem:[#allocation10 + $0x90] sm:$0xff]   ;;  %v8936_v32 = vld [vmem:[#allocation3 + $0x4] ss:$12 sps:$4 sm:$0xff]  }
 0x307   : > { %7867 = vmatpush3.bf16.msra.mxu0 %v8882_v8  ;;  %8419 = vmatpush3.bf16.msra.mxu1 %v8881_v23  ;;  %v8926_v9 = vld [vmem:[#allocation3 + $0x11c] ss:$12 sps:$4 sm:$0xff]   ;;  %v10481_v23 = vld [vmem:[#allocation10 + $0x88] sm:$0xff]   ;;  %v8966_v14 = vld [vmem:[#allocation10 + $0x1f8] sm:$0xff]  }
 0x308   : > { %7868 = vmatprep.subr.bf16.mxu0 %v8883_v21  ;;  %8420 = vmatprep.subr.bf16.mxu1 %v8884_v59  ;;  %v10483_v8 = vld [vmem:[#allocation3 + $0xb4] sm:$0xff]  ;;  %v10485_v21 = vld [vmem:[#allocation3 + $0xc0] sm:$0xff] }
 0x30b   : > { %7869 = vmatpush3.bf16.msra.mxu0 %v8885_v38  ;;  %8421 = vmatpush3.bf16.msra.mxu1 %v8884_v59  ;;  %v10489_v59 = vld [vmem:[#allocation10 + $0x80] sm:$0xff]   ;;  %v7232_v38 = vcombine.low %v10465_v22, %v10467_v41 }
 0x30c   : > { %7870 = vmatprep.subr.bf16.mxu0 %v8886_v55  ;;  %8422 = vmatprep.subr.bf16.mxu1 %v8887_v53  ;;  %v8929_v55 = vld [vmem:[#allocation3 + $0x134] ss:$12 sps:$4 sm:$0xff]  }
 0x30f   : > { %7871 = vmatpush3.bf16.msra.mxu0 %v8888_v25  ;;  %8423 = vmatpush3.bf16.msra.mxu1 %v8887_v53  ;;  %v7236_v53 = vcombine.high %v10483_v8, %v10485_v21  ;;  %v10497_v25 = vld [vmem:[#allocation3 + $0xcc] sm:$0xff] }
 0x310   : > { %8448 = vmatprep.subr.bf16.mxu0 %v10417_v12  ;;  %7964 = vmatprep.subr.bf16.mxu1 %v8894_v28  ;;  %v10499_v28 = vld [vmem:[#allocation3 + $0xd8] sm:$0xff] }
 0x312   : > { %5138 = vmatmul.mubr.bf16.vlgmr.msra.gmra.mxu0 %v7217_v51  ;;  %8425 = vmatmul.mubr.bf16.vlgmr.msra.gmra.mxu1 %v8892_v54  ;;  %v4579_v51 = vld [vmem:[#allocation3 + $0x18] sm:$0xff]  ;;  %v8934_v54 = vld [vmem:[#allocation3] ss:$12 sps:$4 sm:$0xff]  }
 0x313   : > { %8449 = vmatpush3.bf16.msra.mxu0 %v10417_v12  ;;  %7965 = vmatpush3.bf16.msra.mxu1 %v8895_v60  ;;  %v7235_v60 = vcombine.low %v10483_v8, %v10485_v21 }
 0x314   : > { %5145 = vmatprep.mubr.bf16.mxu0 %v7221_v57  ;;  %8428 = vmatprep.mubr.bf16.mxu1 %v8897_v13  ;;  %v7239_v57 = vcombine.high %v10497_v25, %v10499_v28  ;;  %v7281_v13 = vcombine.high %v4579_v51, %v10411_v62 }
 0x315   : > { %7966 = vmatprep.subr.bf16.mxu1 %v8900_v47  ;;  %8450 = vmatprep.subr.bf16.mxu0 %v10428_v1  ;;  %v10508_v47 = vld [vmem:[#allocation3 + $0xe4] sm:$0xff] }
 0x317   : > { %7967 = vmatpush3.bf16.msra.mxu1 %v8901_v52  ;;  %8451 = vmatpush3.bf16.msra.mxu0 %v10428_v1  ;;  %v10510_v52 = vld [vmem:[#allocation3 + $0xf0] sm:$0xff] }
 0x318   : > { %7968 = vmatprep.subr.bf16.mxu1 %v8905_v11  ;;  %8452 = vmatprep.subr.bf16.mxu0 %v10445_v24  ;;  %v7238_v11 = vcombine.low %v10497_v25, %v10499_v28 }
 0x31a   : > { %5146 = vmatmul.mubr.bf16.gmra.mxu0 %v7220_v30  ;;  %8429 = vmatmul.mubr.bf16.gmra.mxu1 %v8899_v39  ;;  %v7280_v30 = vcombine.low %v4579_v51, %v10411_v62  ;;  %v7242_v39 = vcombine.high %v10508_v47, %v10510_v52  ;;  %v7241_v62 = vcombine.low %v10508_v47, %v10510_v52 }
 0x31b   : > { %5153 = vmatprep.mubr.bf16.mxu0 %v7224_v15  ;;  %8432 = vmatprep.mubr.bf16.mxu1 %v8904_v37  ;;  %v7284_v15 = vcombine.high %v10413_v34, %v10419_v4  ;;  %v10524_v37 = vld [vmem:[#allocation3 + $0x108] sm:$0xff] }
 0x31c   : > { %7969 = vmatpush3.bf16.msra.mxu1 %v8908_v5  ;;  %8453 = vmatpush3.bf16.msra.mxu0 %v10445_v24 }
 0x31d   : > { %7970 = vmatprep.subr.bf16.mxu1 %v8909_v45  ;;  %8454 = vmatprep.subr.bf16.mxu0 %v10457_v40  ;;  %v10536_v45 = vcombine.high %v10421_v27, %v10430_v18 }
 0x320   : > { %7971 = vmatpush3.bf16.msra.mxu1 %v8910_v10  ;;  %8455 = vmatpush3.bf16.msra.mxu0 %v10457_v40  ;;  %v10541_v10 = vld [vmem:[#allocation3 + $0x114] sm:$0xff] }
 0x321   : > { %7972 = vmatprep.subr.bf16.mxu1 %v8916_v56  ;;  %8456 = vmatprep.subr.bf16.mxu0 %v10469_v26 }
 0x322   : > { %5154 = vmatmul.mubr.bf16.gmra.mxu0 %v7223_v2  ;;  %8433 = vmatmul.mubr.bf16.gmra.mxu1 %v8907_v29  ;;  %v10557_v2 = vcombine.high %v10433_v7, %v10441_v31  ;;  %v10559_v29 = vld [vmem:[#allocation3 + $0x12c] sm:$0xff] }
 0x323   : > { %5161 = vmatprep.mubr.bf16.mxu0 %v7227_v36  ;;  %8436 = vmatprep.mubr.bf16.mxu1 %v8912_v6  ;;  %v10573_v6 = vld [vmem:[#allocation10 + $0x238] sm:$0xff]  }
 0x324   : > { %7973 = vmatpush3.bf16.msra.mxu1 %v8917_v48  ;;  %8457 = vmatpush3.bf16.msra.mxu0 %v10469_v26 }
 0x325   : > { %7974 = vmatprep.subr.bf16.mxu1 %v8922_v49  ;;  %8458 = vmatprep.subr.bf16.mxu0 %v10476_v20  ;;  %v10579_v49 = vcombine.low %v10433_v7, %v10441_v31  ;;  %v10595_v31 = vcombine.low %v10443_v46, %v10453_v42 }
 0x328   : > { %7975 = vmatpush3.bf16.msra.mxu1 %v8923_v50  ;;  %8459 = vmatpush3.bf16.msra.mxu0 %v10476_v20 }
 0x329   : > { %7976 = vmatprep.subr.bf16.mxu1 %v8927_v63  ;;  %8460 = vmatprep.subr.bf16.mxu0 %v10481_v23  ;;  %v10605_v63 = vcombine.low %v10455_v61, %v10465_v22 }
 0x32a   : > { %5162 = vmatmul.mubr.bf16.gmra.mxu0 %v7226_v35  ;;  %8437 = vmatmul.mubr.bf16.gmra.mxu1 %v8914_v16  ;;  %v10599_v16 = vcombine.high %v10455_v61, %v10465_v22  ;;  %v8963_v35 = vld [vmem:[#allocation3 + $0x8] ss:$12 sps:$4 sm:$0xff]   ;;  %v10615_v61 = vcombine.low %v10467_v41, %v10483_v8  ;;  %v8973_v22 = vld [vmem:[#allocation3 + $0x50] ss:$12 sps:$4 sm:$0xff]  }
 0x32b   : > { %5169 = vmatprep.mubr.bf16.mxu0 %v7230_v19  ;;  %8440 = vmatprep.mubr.bf16.mxu1 %v8919_v17  ;;  %v8965_v19 = vld [vmem:[#allocation3 + $0x20] ss:$12 sps:$4 sm:$0xff]  }
 0x32c   : > { %7977 = vmatpush3.bf16.msra.mxu1 %v8930_v0  ;;  %8461 = vmatpush3.bf16.msra.mxu0 %v10481_v23  ;;  %v8967_v17 = vld [vmem:[#allocation10 + $0x1b8] sm:$0xff]  }
 0x32d   : > { %7978 = vmatprep.subr.bf16.mxu1 %v8931_v44  ;;  %8462 = vmatprep.subr.bf16.mxu0 %v10489_v59  ;;  %v8971_v0 = vld [vmem:[#allocation3 + $0x38] ss:$12 sps:$4 sm:$0xff]  }
 0x32e   : > { %v8969_v44 = vld [vmem:[#allocation10 + $0x1b0] sm:$0xff]  }
 0x330   : > { %7979 = vmatpush3.bf16.msra.mxu1 %v8932_v58  ;;  %8463 = vmatpush3.bf16.msra.mxu0 %v10489_v59  ;;  %v8974_v58 = vld [vmem:[#allocation10 + $0x1e8] sm:$0xff]  }
 0x331   : > { %8528 = vmatprep.subr.bf16.mxu1 %v10417_v12  ;;  %8072 = vmatprep.subr.bf16.mxu0 %v8966_v14  ;;  %v8989_v14 = vld [vmem:[#allocation3 + $0xb0] ss:$12 sps:$4 sm:$0xff]  }
 0x332   : > { %5170 = vmatmul.mubr.bf16.gmra.mxu0 %v7229_v33  ;;  %8441 = vmatmul.mubr.bf16.gmra.mxu1 %v8921_v3  ;;  %v10619_v33 = vcombine.high %v10485_v21, %v10497_v25  ;;  %v8976_v3 = vld [vmem:[#allocation10 + $0x1e0] sm:$0xff]  }
 0x333   : > { %5177 = vmatprep.mubr.bf16.mxu0 %v7233_v43  ;;  %8444 = vmatprep.mubr.bf16.mxu1 %v8926_v9  ;;  %v8979_v9 = vld [vmem:[#allocation3 + $0x68] ss:$12 sps:$4 sm:$0xff]  }
 0x334   : > { %v8977_v43 = vld [vmem:[#allocation10 + $0x1a0] sm:$0xff]  }
 0x33a   : > { %5178 = vmatmul.mubr.bf16.gmra.mxu0 %v7232_v38  ;;  %8445 = vmatmul.mubr.bf16.gmra.mxu1 %v8929_v55  ;;  %v8984_v38 = vld [vmem:[#allocation10 + $0x1d0] sm:$0xff]  }
 0x33b   : > { %5185 = vmatprep.mubr.bf16.mxu0 %v7236_v53  ;;  %5731 = vmatprep.mubr.bf16.mxu1 %v8936_v32  ;;  %v8987_v55 = vld [vmem:[#allocation3 + $0x98] ss:$12 sps:$4 sm:$0xff]   ;;  %v10635_v32 = vcombine.low %v10499_v28, %v10508_v47 }
 0x33c   : > { %v8985_v53 = vld [vmem:[#allocation10 + $0x190] sm:$0xff]  }
 0x342   : > { %5186 = vmatmul.mubr.bf16.gmra.mxu0 %v7235_v60  ;;  %5732 = vmatmul.mubr.bf16.vlgmr.msra.gmra.mxu1 %v8934_v54  ;;  %v8992_v54 = vld [vmem:[#allocation10 + $0x1c0] sm:$0xff]  }
 0x343   : > { %8536 = vmatpush3.bf16.msra.mxu1 %v10417_v12  ;;  %5193 = vmatprep.mubr.bf16.mxu0 %v7239_v57  ;;  %v10522_v12 = vld [vmem:[#allocation3 + $0xfc] sm:$0xff]  ;;  %v8993_v60 = vld [vmem:[#allocation10 + $0x180] sm:$0xff]   ;;  %v7311_v57 = vcombine.high %v10524_v37, %v10541_v10 }
 0x344   : > { %5739 = vmatprep.mubr.bf16.mxu1 %v7281_v13  ;;  %8529 = vmatprep.subr.bf16.mxu1 %v10428_v1  ;;  %v7245_v5 = vcombine.high %v10522_v12, %v10524_v37  ;;  %v10639_v51 = vcombine.high %v10510_v52, %v10522_v12  ;;  %v7310_v13 = vcombine.low %v10524_v37, %v10541_v10 }
 0x347   : > { %8537 = vmatpush3.bf16.msra.mxu1 %v10428_v1  ;;  %v7283_v1 = vcombine.low %v10413_v34, %v10419_v4  ;;  %v7244_v34 = vcombine.low %v10522_v12, %v10524_v37  ;;  %v10551_v4 = vcombine.low %v10421_v27, %v10430_v18  ;;  %v10569_v18 = vld [vmem:[#allocation3 + $0x138] sm:$0xff] }
 0x348   : > { %8530 = vmatprep.subr.bf16.mxu1 %v10445_v24  ;;  %v7251_v50 = vcombine.high %v10559_v29, %v10569_v18  ;;  %v7250_v7 = vcombine.low %v10559_v29, %v10569_v18  ;;  %v9010_v37 = vld [vmem:[#allocation3 + $0x50] ss:$12 sps:$4 sm:$0xff]  }
 0x34a   : > { %5194 = vmatmul.mubr.bf16.gmra.mxu0 %v7238_v11  ;;  %5740 = vmatmul.mubr.bf16.gmra.mxu1 %v7280_v30  ;;  %v9002_v11 = vld [vmem:[#allocation3 + $0xf8] ss:$12 sps:$4 sm:$0xff]  }
 0x34b   : > { %5201 = vmatprep.mubr.bf16.mxu0 %v7242_v39  ;;  %5747 = vmatprep.mubr.bf16.mxu1 %v7284_v15  ;;  %v9001_v30 = vld [vmem:[#allocation10 + $0x230] sm:$0xff]   ;;  %v9003_v39 = vld [vmem:[#allocation10 + $0x228] sm:$0xff]  }
 0x34c   : > { %8538 = vmatpush3.bf16.msra.mxu1 %v10445_v24  ;;  %v10543_v24 = vld [vmem:[#allocation3 + $0x120] sm:$0xff]  ;;  %v9004_v15 = vld [vmem:[#allocation3 + $0x110] ss:$12 sps:$4 sm:$0xff]  }
 0x34d   : > { %8531 = vmatprep.subr.bf16.mxu1 %v10457_v40  ;;  %v7248_v56 = vcombine.high %v10541_v10, %v10543_v24  ;;  %v7365_v36 = vcombine.high %v10543_v24, %v10559_v29  ;;  %v7364_v27 = vcombine.low %v10543_v24, %v10559_v29  ;;  %v7247_v48 = vcombine.low %v10541_v10, %v10543_v24  ;;  %v9011_v10 = vld [vmem:[#allocation3 + $0x68] ss:$12 sps:$4 sm:$0xff]  }
 0x350   : > { %8539 = vmatpush3.bf16.msra.mxu1 %v10457_v40  ;;  %v10585_v40 = vcombine.high %v10443_v46, %v10453_v42  ;;  %v10609_v46 = vcombine.high %v10467_v41, %v10483_v8  ;;  %v8968_v42 = vld [vmem:[#allocation10 + $0x1f0] sm:$0xff]   ;;  %v8982_v41 = vld [vmem:[#allocation10 + $0x1d8] sm:$0xff]  }
 0x351   : > { %8532 = vmatprep.subr.bf16.mxu1 %v10469_v26  ;;  %v8983_v8 = vld [vmem:[#allocation10 + $0x198] sm:$0xff]  }
 0x352   : > { %5202 = vmatmul.mubr.bf16.gmra.mxu0 %v7241_v62  ;;  %5748 = vmatmul.mubr.bf16.gmra.mxu1 %v7283_v1  ;;  %v9006_v62 = vld [vmem:[#allocation10 + $0x218] sm:$0xff]   ;;  %v9007_v1 = vld [vmem:[#allocation10 + $0x210] sm:$0xff]  }
 0x353   : > { %5209 = vmatprep.mubr.bf16.mxu0 %v7245_v5  ;;  %5755 = vmatprep.mubr.bf16.mxu1 %v10536_v45  ;;  %v9008_v5 = vld [vmem:[#allocation10 + $0x208] sm:$0xff]  }
 0x354   : > { %8540 = vmatpush3.bf16.msra.mxu1 %v10469_v26  ;;  %v8975_v26 = vld [vmem:[#allocation10 + $0x1a8] sm:$0xff]  }
 0x355   : > { %8533 = vmatprep.subr.bf16.mxu1 %v10476_v20 }
 0x358   : > { %8541 = vmatpush3.bf16.msra.mxu1 %v10476_v20  ;;  %v10625_v20 = vcombine.low %v10485_v21, %v10497_v25  ;;  %v8990_v21 = vld [vmem:[#allocation10 + $0x1c8] sm:$0xff]  }
 0x359   : > { %8534 = vmatprep.subr.bf16.mxu1 %v10481_v23  ;;  %v8991_v25 = vld [vmem:[#allocation10 + $0x188] sm:$0xff]  }
 0x35a   : > { %5210 = vmatmul.mubr.bf16.gmra.mxu0 %v7244_v34  ;;  %5756 = vmatmul.mubr.bf16.gmra.mxu1 %v10551_v4  ;;  %v9012_v34 = vld [vmem:[#allocation3 + $0x80] ss:$12 sps:$4 sm:$0xff]  }
 0x35b   : > { %5217 = vmatprep.mubr.bf16.mxu0 %v7248_v56  ;;  %5763 = vmatprep.mubr.bf16.mxu1 %v10557_v2  ;;  %v9014_v56 = vld [vmem:[#allocation3 + $0xb0] ss:$12 sps:$4 sm:$0xff]  }
 0x35c   : > { %8542 = vmatpush3.bf16.msra.mxu1 %v10481_v23  ;;  %v8981_v23 = vld [vmem:[#allocation3 + $0x80] ss:$12 sps:$4 sm:$0xff]  }
 0x35d   : > { %8535 = vmatprep.subr.bf16.mxu1 %v10489_v59 }
 0x360   : > { %8543 = vmatpush3.bf16.msra.mxu1 %v10489_v59  ;;  %v10629_v59 = vcombine.high %v10499_v28, %v10508_v47  ;;  %v7307_v28 = vcombine.low %v10510_v52, %v10522_v12  ;;  %v8998_v47 = vld [vmem:[#allocation3 + $0xc8] ss:$12 sps:$4 sm:$0xff]   ;;  %v9000_v52 = vld [vmem:[#allocation3 + $0xe0] ss:$12 sps:$4 sm:$0xff]  }
 0x361   : > { %8488 = vmatprep.subr.bf16.mxu1 %v10573_v6  ;;  %v9005_v12 = vld [vmem:[#allocation10 + $0x220] sm:$0xff]  }
 0x362   : > { %5218 = vmatmul.mubr.bf16.gmra.mxu0 %v7247_v48  ;;  %5764 = vmatmul.mubr.bf16.gmra.mxu1 %v10579_v49 }
 0x363   : > { %5225 = vmatprep.mubr.bf16.mxu0 %v7251_v50  ;;  %5771 = vmatprep.mubr.bf16.mxu1 %v10585_v40 }
 0x36a   : > { %5226 = vmatmul.mubr.bf16.gmra.mxu0 %v7250_v7  ;;  %5772 = vmatmul.mubr.bf16.gmra.mxu1 %v10595_v31  ;;  %v6000_v7 = vld [vmem:[#allocation3 + $0x144] sm:$0xff] }
 0x36b   : > { %5779 = vmatprep.mubr.bf16.mxu1 %v10599_v16  ;;  %8464 = vmatprep.mubr.bf16.mxu0 %v8963_v35 }
 0x372   : > { %5780 = vmatmul.mubr.bf16.gmra.mxu1 %v10605_v63  ;;  %8465 = vmatmul.mubr.bf16.vlgmr.msra.gmra.mxu0 %v8965_v19 }
 0x373   : > { %8073 = vmatpush3.bf16.msra.mxu0 %v8967_v17  ;;  %5787 = vmatprep.mubr.bf16.mxu1 %v10609_v46  ;;  %v9020_v17 = vld [vmem:[#allocation3 + $0x110] ss:$12 sps:$4 sm:$0xff]  }
 0x374   : > { %8074 = vmatprep.subr.bf16.mxu0 %v8968_v42  ;;  %8468 = vmatprep.mubr.bf16.mxu0 %v8971_v0 }
 0x377   : > { %8075 = vmatpush3.bf16.msra.mxu0 %v8969_v44 }
 0x378   : > { %8076 = vmatprep.subr.bf16.mxu0 %v8974_v58 }
 0x37a   : > { %5788 = vmatmul.mubr.bf16.gmra.mxu1 %v10615_v61  ;;  %8469 = vmatmul.mubr.bf16.gmra.mxu0 %v8973_v22 }
 0x37b   : > { %8077 = vmatpush3.bf16.msra.mxu0 %v8975_v26  ;;  %5795 = vmatprep.mubr.bf16.mxu1 %v10619_v33 }
 0x37c   : > { %8078 = vmatprep.subr.bf16.mxu0 %v8976_v3  ;;  %8472 = vmatprep.mubr.bf16.mxu0 %v8979_v9 }
 0x37f   : > { %8079 = vmatpush3.bf16.msra.mxu0 %v8977_v43  ;;  %v9022_v43 = vld [vmem:[#allocation3 + $0x128] ss:$12 sps:$4 sm:$0xff]  }
 0x380   : > { %8080 = vmatprep.subr.bf16.mxu0 %v8982_v41  ;;  %v7367_v41 = vcombine.low %v10569_v18, %v6000_v7 }
 0x382   : > { %5796 = vmatmul.mubr.bf16.gmra.mxu1 %v10625_v20  ;;  %8473 = vmatmul.mubr.bf16.gmra.mxu0 %v8981_v23  ;;  %v9024_v23 = vld [vmem:[#allocation3 + $0x140] ss:$12 sps:$4 sm:$0xff]  }
 0x383   : > { %8081 = vmatpush3.bf16.msra.mxu0 %v8983_v8  ;;  %5803 = vmatprep.mubr.bf16.mxu1 %v10629_v59  ;;  %v9025_v8 = vld [vmem:[#allocation3 + $0x154] ss:$12 sps:$4 sm:$0xff]  }
 0x384   : > { %8082 = vmatprep.subr.bf16.mxu0 %v8984_v38  ;;  %8476 = vmatprep.mubr.bf16.mxu0 %v8987_v55 }
 0x387   : > { %8083 = vmatpush3.bf16.msra.mxu0 %v8985_v53 }
 0x388   : > { %8084 = vmatprep.subr.bf16.mxu0 %v8990_v21 }
 0x38a   : > { %5804 = vmatmul.mubr.bf16.gmra.mxu1 %v10635_v32  ;;  %8477 = vmatmul.mubr.bf16.gmra.mxu0 %v8989_v14 }
 0x38b   : > { %8085 = vmatpush3.bf16.msra.mxu0 %v8991_v25  ;;  %5811 = vmatprep.mubr.bf16.mxu1 %v10639_v51  ;;  %v9027_v25 = vld [vmem:[#allocation3 + $0x158] ss:$12 sps:$4 sm:$0xff]  }
 0x38c   : > { %8086 = vmatprep.subr.bf16.mxu0 %v8992_v54  ;;  %6423 = vmatprep.mubr.bf16.mxu0 %v10536_v45  ;;  %v9009_v45 = vld [vmem:[#allocation10 + $0x200] sm:$0xff]  }
 0x38f   : > { %8087 = vmatpush3.bf16.msra.mxu0 %v8993_v60 }
 0x392   : > { %5812 = vmatmul.mubr.bf16.gmra.mxu1 %v7307_v28  ;;  %6424 = vmatmul.mubr.bf16.vlgmr.msra.gmra.mxu0 %v10551_v4  ;;  %v9013_v4 = vld [vmem:[#allocation3 + $0x98] ss:$12 sps:$4 sm:$0xff]  }
 0x393   : > { %5819 = vmatprep.mubr.bf16.mxu1 %v7311_v57  ;;  %6431 = vmatprep.mubr.bf16.mxu0 %v10557_v2  ;;  %v9015_v2 = vld [vmem:[#allocation3 + $0xc8] ss:$12 sps:$4 sm:$0xff]  }
 0x39a   : > { %5820 = vmatmul.mubr.bf16.gmra.mxu1 %v7310_v13  ;;  %6432 = vmatmul.mubr.bf16.gmra.mxu0 %v10579_v49 }
 0x39b   : > { %8480 = vmatprep.mubr.bf16.mxu1 %v8998_v47  ;;  %6439 = vmatprep.mubr.bf16.mxu0 %v10585_v40 }
 0x3a2   : > { %8481 = vmatmul.mubr.bf16.vlgmr.msra.gmra.mxu1 %v9000_v52  ;;  %6440 = vmatmul.mubr.bf16.gmra.mxu0 %v10595_v31 }
 0x3a3   : > { %8489 = vmatpush3.bf16.msra.mxu1 %v10573_v6  ;;  %8484 = vmatprep.mubr.bf16.mxu1 %v9002_v11  ;;  %v9016_v6 = vld [vmem:[#allocation3 + $0xe0] ss:$12 sps:$4 sm:$0xff]  }
 0x3a4   : > { %8490 = vmatprep.subr.bf16.mxu1 %v9001_v30  ;;  %6447 = vmatprep.mubr.bf16.mxu0 %v10599_v16 }
 0x3a7   : > { %8491 = vmatpush3.bf16.msra.mxu1 %v9001_v30 }
 0x3a8   : > { %8492 = vmatprep.subr.bf16.mxu1 %v9003_v39 }
 0x3aa   : > { %8485 = vmatmul.mubr.bf16.gmra.mxu1 %v9004_v15  ;;  %6448 = vmatmul.mubr.bf16.gmra.mxu0 %v10605_v63  ;;  %v9018_v63 = vld [vmem:[#allocation3 + $0xf8] ss:$12 sps:$4 sm:$0xff]  }
 0x3ab   : > { %8493 = vmatpush3.bf16.msra.mxu1 %v9003_v39  ;;  %6455 = vmatprep.mubr.bf16.mxu0 %v10609_v46  ;;  %v7368_v46 = vcombine.high %v10569_v18, %v6000_v7 }
 0x3ac   : > { %8494 = vmatprep.subr.bf16.mxu1 %v9005_v12  ;;  %8504 = vmatprep.mubr.bf16.mxu1 %v9010_v37 }
 0x3af   : > { %8495 = vmatpush3.bf16.msra.mxu1 %v9005_v12 }
 0x3b0   : > { %8496 = vmatprep.subr.bf16.mxu1 %v9006_v62 }
 0x3b2   : > { %6456 = vmatmul.mubr.bf16.gmra.mxu0 %v10615_v61 }
 0x3b3   : > { %8497 = vmatpush3.bf16.msra.mxu1 %v9006_v62  ;;  %6463 = vmatprep.mubr.bf16.mxu0 %v10619_v33 }
 0x3b4   : > { %8498 = vmatprep.subr.bf16.mxu1 %v9007_v1 }
 0x3b7   : > { %8499 = vmatpush3.bf16.msra.mxu1 %v9007_v1 }
 0x3b8   : > { %8500 = vmatprep.subr.bf16.mxu1 %v9008_v5 }
 0x3ba   : > { %6464 = vmatmul.mubr.bf16.gmra.mxu0 %v10625_v20 }
 0x3bb   : > { %8501 = vmatpush3.bf16.msra.mxu1 %v9008_v5  ;;  %6471 = vmatprep.mubr.bf16.mxu0 %v10629_v59 }
 0x3bc   : > { %8502 = vmatprep.subr.bf16.mxu1 %v9009_v45 }
 0x3bf   : > { %8503 = vmatpush3.bf16.msra.mxu1 %v9009_v45 }
 0x3c2   : > { %8505 = vmatmul.mubr.bf16.vlgmr.msra.gmra.mxu1 %v9011_v10  ;;  %6472 = vmatmul.mubr.bf16.gmra.mxu0 %v10635_v32 }
 0x3c3   : > { %8508 = vmatprep.mubr.bf16.mxu1 %v9012_v34  ;;  %6479 = vmatprep.mubr.bf16.mxu0 %v10639_v51  ;;  %v9028_v51 = vld [vmem:[#allocation3 + $0x150] ss:$12 sps:$4 sm:$0xff]  }
 0x3ca   : > { %8509 = vmatmul.mubr.bf16.gmra.mxu1 %v9013_v4  ;;  %6480 = vmatmul.mubr.bf16.gmra.mxu0 %v7307_v28 }
 0x3cb   : > { %8512 = vmatprep.mubr.bf16.mxu1 %v9014_v56  ;;  %6487 = vmatprep.mubr.bf16.mxu0 %v7311_v57 }
 0x3d2   : > { %8513 = vmatmul.mubr.bf16.gmra.mxu1 %v9015_v2  ;;  %v7872_v48 = vpop.f32.mrf.mxu0  ;;  %v8426_v49 = vpop.f32.mrf.mxu1  ;;  %6488 = vmatmul.mubr.bf16.gmra.mxu0 %v7310_v13 }
 0x3d3   : > { %8516 = vmatprep.mubr.bf16.mxu1 %v9016_v6  ;;  %6495 = vmatprep.mubr.bf16.mxu0 %v7365_v36 }
 0x3d4   : > { %v7873_v50 = vpop.f32.mrf.mxu0  ;;  %v5268_v40 = vpop.f32.mrf.mxu1 }
 0x3d5   : > { %v7874_v31 = vadd.f32 %v7873_v50, %v7872_v48 }
 0x3d6   : > { %v7875_v16 = vpop.f32.mrf.mxu0  ;;  %v8427_v35 = vpop.f32.mrf.mxu1 }
 0x3d7   : > { %v10668_v19 = vadd.f32 %v7874_v31, %v5268_v40 }
 0x3d8   : > { %v7876_v42 = vpop.f32.mrf.mxu0  ;;  %v5271_v0 = vpop.f32.mrf.mxu1 }
 0x3d9   : > { %v7877_v44 = vadd.f32 %v7876_v42, %v7875_v16 }
 0x3da   : > { %8517 = vmatmul.mubr.bf16.gmra.mxu1 %v9018_v63  ;;  %v7878_v58 = vpop.f32.mrf.mxu0  ;;  %v8430_v61 = vpop.f32.mrf.mxu1  ;;  %6496 = vmatmul.mubr.bf16.gmra.mxu0 %v7364_v27 }
 0x3db   : > { %v10674_v36 = vadd.f32 %v7877_v44, %v5271_v0  ;;  %8520 = vmatprep.mubr.bf16.mxu1 %v9020_v17  ;;  %6503 = vmatprep.mubr.bf16.mxu0 %v7368_v46 }
 0x3dc   : > { %v7879_v22 = vpop.f32.mrf.mxu0  ;;  %v5284_v26 = vpop.f32.mrf.mxu1 }
 0x3dd   : > { %v7880_v33 = vadd.f32 %v7879_v22, %v7878_v58 }
 0x3de   : > { %v7881_v3 = vpop.f32.mrf.mxu0  ;;  %v8431_v9 = vpop.f32.mrf.mxu1 }
 0x3df   : > { %v10677_v20 = vadd.f32 %v8426_v49, %v7880_v33 }
 0x3e0   : > { %v7882_v59 = vpop.f32.mrf.mxu0  ;;  %v5287_v38 = vpop.f32.mrf.mxu1 }
 0x3e1   : > { %v7883_v24 = vadd.f32 %v7882_v59, %v7881_v3 }
 0x3e2   : > { %8521 = vmatmul.mubr.bf16.gmra.mxu1 %v9022_v43  ;;  %v7884_v29 = vpop.f32.mrf.mxu0  ;;  %v8434_v27 = vpop.f32.mrf.mxu1  ;;  %6504 = vmatmul.mubr.bf16.gmra.mxu0 %v7367_v41 }
 0x3e3   : > { %v10679_v55 = vadd.f32 %v8427_v35, %v7883_v24  ;;  %8524 = vmatprep.mubr.bf16.mxu1 %v9024_v23  ;;  %6511 = vmatprep.mubr.bf16.mxu0 %v9025_v8 }
 0x3e4   : > { %v7885_v53 = vpop.f32.mrf.mxu0  ;;  %v5300_v21 = vpop.f32.mrf.mxu1 }
 0x3e5   : > { %v7886_v32 = vadd.f32 %v7885_v53, %v7884_v29 }
 0x3e6   : > { %v7887_v14 = vpop.f32.mrf.mxu0  ;;  %v8435_v18 = vpop.f32.mrf.mxu1 }
 0x3e7   : > { %v10681_v54 = vadd.f32 %v7886_v32, %v5284_v26 }
 0x3e8   : > { %v7888_v60 = vpop.f32.mrf.mxu0  ;;  %v5303_v28 = vpop.f32.mrf.mxu1 }
 0x3e9   : > { %v7889_v57 = vadd.f32 %v7888_v60, %v7887_v14 }
 0x3ea   : > { %8525 = vmatmul.mubr.bf16.gmra.mxu1 %v9027_v25  ;;  %v7890_v13 = vpop.f32.mrf.mxu0  ;;  %v8438_v47 = vpop.f32.mrf.mxu1  ;;  %6512 = vmatmul.mubr.bf16.gmra.mxu0 %v9028_v51 }
 0x3eb   : > { %v10683_v52 = vadd.f32 %v7889_v57, %v5287_v38 }
 0x3ec   : > { %v7891_v11 = vpop.f32.mrf.mxu0  ;;  %v5316_v30 = vpop.f32.mrf.mxu1 }
 0x3ed   : > { %v7892_v39 = vadd.f32 %v7891_v11, %v7890_v13 }
 0x3ee   : > { %v7893_v15 = vpop.f32.mrf.mxu0  ;;  %v8439_v12 = vpop.f32.mrf.mxu1 }
 0x3ef   : > { %v10685_v37 = vadd.f32 %v8430_v61, %v7892_v39 }
 0x3f0   : > { %v7894_v62 = vpop.f32.mrf.mxu0  ;;  %v5319_v1 = vpop.f32.mrf.mxu1 }
 0x3f1   : > { %v7895_v5 = vadd.f32 %v7894_v62, %v7893_v15 }
 0x3f2   : > { %v7896_v45 = vpop.f32.mrf.mxu0  ;;  %v10687_v10 = vpop.f32.mrf.mxu1 }
 0x3f3   : > { %v10689_v34 = vadd.f32 %v8431_v9, %v7895_v5 }
 0x3f4   : > { %v7897_v4 = vpop.f32.mrf.mxu0  ;;  %v5332_v56 = vpop.f32.mrf.mxu1 }
 0x3f5   : > { %v7898_v2 = vadd.f32 %v7897_v4, %v7896_v45 }
 0x3f6   : > { %v7899_v6 = vpop.f32.mrf.mxu0  ;;  %v10691_v48 = vpop.f32.mrf.mxu1 }
 0x3f7   : > { %v10693_v49 = vadd.f32 %v7898_v2, %v5300_v21 }
 0x3f8   : > { %v7900_v50 = vpop.f32.mrf.mxu0  ;;  %v10695_v40 = vpop.f32.mrf.mxu1 }
 0x3f9   : > { %v7901_v7 = vadd.f32 %v7900_v50, %v7899_v6 }
 0x3fa   : > { %v7902_v31 = vpop.f32.mrf.mxu0  ;;  %v10697_v16 = vpop.f32.mrf.mxu1 }
 0x3fb   : > { %v10699_v35 = vadd.f32 %v7901_v7, %v5303_v28 }
 0x3fc   : > { %v7903_v63 = vpop.f32.mrf.mxu0  ;;  %v10701_v17 = vpop.f32.mrf.mxu1 }
 0x3fd   : > { %v7904_v46 = vadd.f32 %v7903_v63, %v7902_v31 }
 0x3fe   : > { %v7905_v42 = vpop.f32.mrf.mxu0  ;;  %v10703_v0 = vpop.f32.mrf.mxu1 }
 0x3ff   : > { %v10705_v44 = vadd.f32 %v8434_v27, %v7904_v46 }
 0x400   : > { %v7906_v58 = vpop.f32.mrf.mxu0  ;;  %v10707_v61 = vpop.f32.mrf.mxu1 }
 0x401   : > { %v7907_v22 = vadd.f32 %v7906_v58, %v7905_v42 }
 0x402   : > { %v7908_v26 = vpop.f32.mrf.mxu0  ;;  %v7980_v33 = vpop.f32.mrf.mxu1 }
 0x403   : > { %v10709_v3 = vadd.f32 %v8435_v18, %v7907_v22 }
 0x404   : > { %v7909_v9 = vpop.f32.mrf.mxu0  ;;  %v7981_v43 = vpop.f32.mrf.mxu1 }
 0x405   : > { %v7910_v41 = vadd.f32 %v7909_v9, %v7908_v26  ;;  %v7982_v23 = vadd.f32 %v7981_v43, %v7980_v33 }
 0x406   : > { %v7911_v8 = vpop.f32.mrf.mxu0  ;;  %v7983_v59 = vpop.f32.mrf.mxu1 }
 0x407   : > { %v10711_v38 = vadd.f32 %v7910_v41, %v5316_v30  ;;  %v10714_v24 = vadd.f32 %v7982_v23, %v10668_v19 }
 0x408   : > { %v7912_v29 = vpop.f32.mrf.mxu0  ;;  %v7984_v27 = vpop.f32.mrf.mxu1 }
 0x409   : > { %v7913_v53 = vadd.f32 %v7912_v29, %v7911_v8  ;;  %v7985_v21 = vadd.f32 %v7984_v27, %v7983_v59 }
 0x40a   : > { %v7914_v32 = vpop.f32.mrf.mxu0  ;;  %v7986_v14 = vpop.f32.mrf.mxu1 }
 0x40b   : > { %v10716_v25 = vadd.f32 %v7913_v53, %v5319_v1  ;;  %v10719_v18 = vadd.f32 %v7985_v21, %v10674_v36 }
 0x40c   : > { %v7915_v51 = vpop.f32.mrf.mxu0  ;;  %v7987_v60 = vpop.f32.mrf.mxu1 }
 0x40d   : > { %v7916_v28 = vadd.f32 %v7915_v51, %v7914_v32  ;;  %v7988_v57 = vadd.f32 %v7987_v60, %v7986_v14 }
 0x40e   : > { %v7917_v13 = vpop.f32.mrf.mxu0  ;;  %v7989_v11 = vpop.f32.mrf.mxu1 }
 0x40f   : > { %v10721_v30 = vadd.f32 %v8438_v47, %v7916_v28  ;;  %v10724_v19 = vadd.f32 %v7988_v57, %v10677_v20 }
 0x410   : > { %v7918_v39 = vpop.f32.mrf.mxu0  ;;  %v7990_v15 = vpop.f32.mrf.mxu1 }
 0x411   : > { %v7919_v62 = vadd.f32 %v7918_v39, %v7917_v13  ;;  %v7991_v5 = vadd.f32 %v7990_v15, %v7989_v11 }
 0x412   : > { %v7920_v1 = vpop.f32.mrf.mxu0  ;;  %v7992_v45 = vpop.f32.mrf.mxu1 }
 0x413   : > { %v10726_v4 = vadd.f32 %v8439_v12, %v7919_v62  ;;  %v10729_v36 = vadd.f32 %v7991_v5, %v10679_v55 }
 0x414   : > { %v7921_v2 = vpop.f32.mrf.mxu0  ;;  %v7993_v6 = vpop.f32.mrf.mxu1 }
 0x415   : > { %v7922_v50 = vadd.f32 %v7921_v2, %v7920_v1  ;;  %v7994_v7 = vadd.f32 %v7993_v6, %v7992_v45 }
 0x416   : > { %v7923_v47 = vpop.f32.mrf.mxu0  ;;  %v7995_v31 = vpop.f32.mrf.mxu1 }
 0x417   : > { %v10731_v63 = vadd.f32 %v7922_v50, %v5332_v56  ;;  %v10734_v20 = vadd.f32 %v7994_v7, %v10681_v54 }
 0x418   : > { %v7924_v46 = vpop.f32.mrf.mxu0  ;;  %v7996_v42 = vpop.f32.mrf.mxu1 }
 0x419   : > { %v7925_v58 = vadd.f32 %v7924_v46, %v7923_v47  ;;  %v7997_v22 = vadd.f32 %v7996_v42, %v7995_v31 }
 0x41a   : > { %v7926_v12 = vpop.f32.mrf.mxu0  ;;  %v7998_v26 = vpop.f32.mrf.mxu1 }
 0x41b   : > { %v10737_v55 = vadd.f32 %v7925_v58, %v10695_v40  ;;  %v10740_v33 = vadd.f32 %v7997_v22, %v10683_v52 }
 0x41c   : > { %v7927_v9 = vpop.f32.mrf.mxu0  ;;  %v7999_v43 = vpop.f32.mrf.mxu1 }
 0x41d   : > { %v7928_v41 = vadd.f32 %v7927_v9, %v7926_v12  ;;  %v8000_v56 = vadd.f32 %v7999_v43, %v7998_v26 }
 0x41e   : > { %v7929_v23 = vpop.f32.mrf.mxu0  ;;  %v8001_v8 = vpop.f32.mrf.mxu1 }
 0x41f   : > { %v10743_v54 = vadd.f32 %v10687_v10, %v7928_v41  ;;  %v5758_v59 = vadd.f32 %v8000_v56, %v10685_v37 }
 0x420   : > { %v7930_v29 = vpop.f32.mrf.mxu0  ;;  %v8002_v27 = vpop.f32.mrf.mxu1 }
 0x421   : > { %v7931_v53 = vadd.f32 %v7930_v29, %v7929_v23  ;;  %v8003_v21 = vadd.f32 %v8002_v27, %v8001_v8 }
 0x422   : > { %v7932_v40 = vpop.f32.mrf.mxu0  ;;  %v8004_v32 = vpop.f32.mrf.mxu1 }
 0x423   : > { %v10747_v52 = vadd.f32 %v10691_v48, %v7931_v53  ;;  %v5761_v14 = vadd.f32 %v8003_v21, %v10689_v34 }
 0x424   : > { %v7933_v51 = vpop.f32.mrf.mxu0  ;;  %v8005_v60 = vpop.f32.mrf.mxu1 }
 0x425   : > { %v7934_v28 = vadd.f32 %v7933_v51, %v7932_v40  ;;  %v8006_v57 = vadd.f32 %v8005_v60, %v8004_v32 }
 0x426   : > { %v7935_v13 = vpop.f32.mrf.mxu0  ;;  %v8007_v10 = vpop.f32.mrf.mxu1 }
 0x427   : > { %v10751_v11 = vadd.f32 %v7934_v28, %v10701_v17  ;;  %v5766_v37 = vadd.f32 %v8006_v57, %v10693_v49 }
 0x428   : > { %v7936_v39 = vpop.f32.mrf.mxu0  ;;  %v8008_v15 = vpop.f32.mrf.mxu1 }
 0x429   : > { %v7937_v62 = vadd.f32 %v7936_v39, %v7935_v13  ;;  %v8009_v5 = vadd.f32 %v8008_v15, %v8007_v10 }
 0x42a   : > { %v7938_v1 = vpop.f32.mrf.mxu0  ;;  %v8010_v48 = vpop.f32.mrf.mxu1 }
 0x42b   : > { %v10755_v45 = vadd.f32 %v7937_v62, %v10707_v61  ;;  %v5769_v34 = vadd.f32 %v8009_v5, %v10699_v35 }
 0x42c   : > { %v7939_v2 = vpop.f32.mrf.mxu0  ;;  %v8011_v6 = vpop.f32.mrf.mxu1 }
 0x42d   : > { %v7940_v50 = vadd.f32 %v7939_v2, %v7938_v1  ;;  %v8012_v7 = vadd.f32 %v8011_v6, %v8010_v48 }
 0x42e   : > { %v7941_v47 = vpop.f32.mrf.mxu0  ;;  %v8013_v17 = vpop.f32.mrf.mxu1 }
 0x42f   : > { %v10759_v31 = vadd.f32 %v10697_v16, %v7940_v50  ;;  %v5774_v49 = vadd.f32 %v8012_v7, %v10705_v44 }
 0x430   : > { %v7942_v46 = vpop.f32.mrf.mxu0  ;;  %v8014_v42 = vpop.f32.mrf.mxu1 }
 0x431   : > { %v7943_v58 = vadd.f32 %v7942_v46, %v7941_v47  ;;  %v8015_v22 = vadd.f32 %v8014_v42, %v8013_v17 }
 0x432   : > { %v8016_v12 = vpop.f32.mrf.mxu1  ;;  %v8466_v61 = vpop.f32.mrf.mxu0 }
 0x433   : > { %v10763_v26 = vadd.f32 %v10703_v0, %v7943_v58  ;;  %v10766_v35 = vadd.f32 %v8466_v61, %v10724_v19  ;;  %v5777_v9 = vadd.f32 %v8015_v22, %v10709_v3 }
 0x434   : > { %v8017_v43 = vpop.f32.mrf.mxu1  ;;  %v5862_v41 = vpop.f32.mrf.mxu0 }
 0x435   : > { %v8018_v16 = vadd.f32 %v8017_v43, %v8016_v12  ;;  %v10770_v56 = vadd.f32 %v5862_v41, %v10714_v24 }
 0x436   : > { %v8019_v44 = vpop.f32.mrf.mxu1  ;;  %v8467_v23 = vpop.f32.mrf.mxu0 }
 0x437   : > { %v10773_v8 = vadd.f32 %v8467_v23, %v10729_v36  ;;  %v5782_v29 = vadd.f32 %v8018_v16, %v10711_v38 }
 0x438   : > { %v8020_v0 = vpop.f32.mrf.mxu1  ;;  %v5865_v27 = vpop.f32.mrf.mxu0 }
 0x439   : > { %v8021_v53 = vadd.f32 %v8020_v0, %v8019_v44  ;;  %v10777_v19 = vadd.f32 %v5865_v27, %v10719_v18 }
 0x43a   : > { %v8022_v3 = vpop.f32.mrf.mxu1  ;;  %v8470_v21 = vpop.f32.mrf.mxu0 }
 0x43b   : > { %v10779_v40 = vadd.f32 %v8470_v21, %v5758_v59  ;;  %v5785_v24 = vadd.f32 %v8021_v53, %v10716_v25 }
 0x43c   : > { %v8023_v32 = vpop.f32.mrf.mxu1  ;;  %v5878_v51 = vpop.f32.mrf.mxu0 }
 0x43d   : > { %v8024_v60 = vadd.f32 %v8023_v32, %v8022_v3  ;;  %v10783_v36 = vadd.f32 %v5878_v51, %v10734_v20 }
 0x43e   : > { %v8025_v28 = vpop.f32.mrf.mxu1  ;;  %v8471_v38 = vpop.f32.mrf.mxu0 }
 0x43f   : > { %v10785_v57 = vadd.f32 %v8471_v38, %v5761_v14  ;;  %v5790_v13 = vadd.f32 %v8024_v60, %v10721_v30 }
 0x440   : > { %v8026_v18 = vpop.f32.mrf.mxu1  ;;  %v5881_v10 = vpop.f32.mrf.mxu0 }
 0x441   : > { %v8027_v39 = vadd.f32 %v8026_v18, %v8025_v28  ;;  %v10789_v59 = vadd.f32 %v5881_v10, %v10740_v33 }
 0x442   : > { %v8028_v15 = vpop.f32.mrf.mxu1  ;;  %v8474_v25 = vpop.f32.mrf.mxu0 }
 0x443   : > { %v10791_v62 = vadd.f32 %v8474_v25, %v5774_v49  ;;  %v5793_v5 = vadd.f32 %v8027_v39, %v10726_v4 }
 0x444   : > { %v8029_v20 = vpop.f32.mrf.mxu1  ;;  %v5894_v1 = vpop.f32.mrf.mxu0 }
 0x445   : > { %v8030_v48 = vadd.f32 %v8029_v20, %v8028_v15  ;;  %v10794_v2 = vadd.f32 %v5894_v1, %v5766_v37 }
 0x446   : > { %v8031_v14 = vpop.f32.mrf.mxu1  ;;  %v8475_v6 = vpop.f32.mrf.mxu0 }
 0x447   : > { %v10796_v30 = vadd.f32 %v8475_v6, %v5777_v9  ;;  %v10799_v50 = vadd.f32 %v8030_v48, %v10731_v63 }
 0x448   : > { %v8032_v33 = vpop.f32.mrf.mxu1  ;;  %v5897_v7 = vpop.f32.mrf.mxu0 }
 0x449   : > { %v8033_v47 = vadd.f32 %v8032_v33, %v8031_v14  ;;  %v10801_v17 = vadd.f32 %v5897_v7, %v5769_v34 }
 0x44a   : > { %v8034_v49 = vpop.f32.mrf.mxu1  ;;  %v8478_v46 = vpop.f32.mrf.mxu0 }
 0x44b   : > { %v10803_v4 = vadd.f32 %v8478_v46, %v5790_v13  ;;  %v10806_v42 = vadd.f32 %v8033_v47, %v10737_v55 }
 0x44c   : > { %v8035_v37 = vpop.f32.mrf.mxu1  ;;  %v5910_v58 = vpop.f32.mrf.mxu0 }
 0x44d   : > { %v8036_v22 = vadd.f32 %v8035_v37, %v8034_v49  ;;  %v10808_v12 = vadd.f32 %v5910_v58, %v5782_v29 }
 0x44e   : > { %v8037_v61 = vpop.f32.mrf.mxu1  ;;  %v8479_v63 = vpop.f32.mrf.mxu0 }
 0x44f   : > { %v10810_v9 = vadd.f32 %v8479_v63, %v5793_v5  ;;  %v10813_v43 = vadd.f32 %v8036_v22, %v10743_v54 }
 0x450   : > { %v8038_v34 = vpop.f32.mrf.mxu1  ;;  %v5913_v41 = vpop.f32.mrf.mxu0 }
 0x451   : > { %v8039_v16 = vadd.f32 %v8038_v34, %v8037_v61  ;;  %v10815_v44 = vadd.f32 %v5913_v41, %v5785_v24 }
 0x452   : > { %v8040_v23 = vpop.f32.mrf.mxu1  ;;  %v8088_v55 = vpop.f32.mrf.mxu0 }
 0x453   : > { %v10818_v0 = vadd.f32 %v8039_v16, %v10747_v52 }
 0x454   : > { %v8041_v27 = vpop.f32.mrf.mxu1  ;;  %v8089_v29 = vpop.f32.mrf.mxu0 }
 0x455   : > { %v8042_v53 = vadd.f32 %v8041_v27, %v8040_v23 }
 0x456   : > { %v8043_v3 = vpop.f32.mrf.mxu1  ;;  %v8091_v21 = vpop.f32.mrf.mxu0 }
 0x457   : > { %v10821_v32 = vadd.f32 %v8042_v53, %v10751_v11 }
 0x458   : > { %v8044_v54 = vpop.f32.mrf.mxu1  ;;  %v8092_v51 = vpop.f32.mrf.mxu0 }
 0x459   : > { %v8045_v60 = vadd.f32 %v8044_v54, %v8043_v3 }
 0x45a   : > { %v8046_v28 = vpop.f32.mrf.mxu1  ;;  %v8094_v38 = vpop.f32.mrf.mxu0 }
 0x45b   : > { %v10824_v24 = vadd.f32 %v8045_v60, %v10755_v45 }
 0x45c   : > { %v8047_v13 = vpop.f32.mrf.mxu1  ;;  %v8095_v18 = vpop.f32.mrf.mxu0 }
 0x45d   : > { %11114 = vst [vmem:[#allocation26_spill] sm:$0xff] %v10824_v24  ;;  %v8048_v52 = vadd.f32 %v8047_v13, %v8046_v28  ;;  %v8096_v54 = vadd.f32 %v8095_v18, %v8094_v38  ;;  %v8090_v13 = vadd.f32 %v8089_v29, %v8088_v55  ;;  %v6706_v24 = vld [vmem:[%s9466_s13 + $0x10] sm:$0xff]  ;;  %v8093_v55 = vadd.f32 %v8092_v51, %v8091_v21  ;;  %v6707_v51 = vld [vmem:[%s9466_s13 + $0x18] sm:$0xff] }
 0x45e   : > { %v8049_v10 = vpop.f32.mrf.mxu1  ;;  %v8097_v39 = vpop.f32.mrf.mxu0 }
 0x45f   : > { %v10827_v15 = vadd.f32 %v8048_v52, %v10759_v31 }
 0x460   : > { %v8050_v25 = vpop.f32.mrf.mxu1  ;;  %v8098_v5 = vpop.f32.mrf.mxu0 }
 0x461   : > { %11115 = vst [vmem:[#allocation27_spill] sm:$0xff] %v10827_v15  ;;  %v8051_v11 = vadd.f32 %v8050_v25, %v8049_v10  ;;  %v10869_v10 = vld [vmem:[%s11068_s5] ss:$0 sm:$0xff]  ;;  %v6704_v15 = vld [vmem:[%s9466_s13] sm:$0xff] }
 0x462   : > { %v8100_v20 = vpop.f32.mrf.mxu0  ;;  %v10832_v48 = vpop.f32.mrf.mxu1 }
 0x463   : > { %v10830_v1 = vadd.f32 %v8051_v11, %v10763_v26 }
 0x464   : > { %v8101_v14 = vpop.f32.mrf.mxu0  ;;  %v10836_v6 = vpop.f32.mrf.mxu1 }
 0x465   : > { %11116 = vst [vmem:[#allocation28_spill] sm:$0xff] %v10830_v1  ;;  %v8102_v21 = vadd.f32 %v8101_v14, %v8100_v20 }
 0x466   : > { %v10834_v45 = vpop.f32.mrf.mxu0  ;;  %v10840_v47 = vpop.f32.mrf.mxu1 }
 0x468   : > { %v10838_v33 = vpop.f32.mrf.mxu0  ;;  %v10842_v46 = vpop.f32.mrf.mxu1 }
 0x46a   : > { %v8106_v7 = vpop.f32.mrf.mxu0  ;;  %v10846_v26 = vpop.f32.mrf.mxu1 }
 0x46b   : > { %11117 = vst [vmem:[#allocation29_spill] sm:$0xff] %v10846_v26 }
 0x46c   : > { %v8107_v31 = vpop.f32.mrf.mxu0  ;;  %v10852_v63 = vpop.f32.mrf.mxu1 }
 0x46d   : > { %11118 = vst [vmem:[#allocation30_spill] sm:$0xff] %v10852_v63  ;;  %v8108_v26 = vadd.f32 %v8107_v31, %v8106_v7 }
 0x46e   : > { %v8109_v49 = vpop.f32.mrf.mxu0  ;;  %v10856_v16 = vpop.f32.mrf.mxu1 }
 0x46f   : > { %11119 = vst [vmem:[#allocation31_spill] sm:$0xff] %v10856_v16  ;;  %v8099_v16 = vadd.f32 %v8098_v5, %v8097_v39 }
 0x470   : > { %v8110_v37 = vpop.f32.mrf.mxu0  ;;  %v10860_v53 = vpop.f32.mrf.mxu1 }
 0x471   : > { %11120 = vst [vmem:[#allocation32_spill] sm:$0xff] %v10860_v53 }
 0x472   : > { %v10844_v58 = vpop.f32.mrf.mxu0 }
 0x474   : > { %v10848_v22 = vpop.f32.mrf.mxu0 }
 0x476   : > { %v10850_v61 = vpop.f32.mrf.mxu0 }
 0x478   : > { %v10854_v34 = vpop.f32.mrf.mxu0 }
 0x47a   : > { %v8118_v41 = vpop.f32.mrf.mxu0 }
 0x47c   : > { %v8119_v23 = vpop.f32.mrf.mxu0 }
 0x47e   : > { %v10858_v27 = vpop.f32.mrf.mxu0 }
 0x480   : > { %v10862_v3 = vpop.f32.mrf.mxu0 }
 0x482   : > { %v8506_v60 = vpop.f32.mrf.mxu1  ;;  %v10864_v28 = vpop.f32.mrf.mxu0 }
 0x483   : > { %v6563_v52 = vadd.f32 %v8506_v60, %v8096_v54 }
 0x484   : > { %v6554_v25 = vpop.f32.mrf.mxu1  ;;  %v10871_v11 = vpop.f32.mrf.mxu0 }
 0x485   : > { %v6651_v1 = vadd.f32 %v6563_v52, %v10766_v35  ;;  %v6555_v53 = vadd.f32 %v8090_v13, %v6554_v25 }
 0x486   : > { %v8507_v38 = vpop.f32.mrf.mxu1  ;;  %v10875_v18 = vpop.f32.mrf.mxu0 }
 0x487   : > { %v6682_v29 = vadd.f32 %v10869_v10, %v6651_v1  ;;  %v6649_v54 = vadd.f32 %v6555_v53, %v10770_v56  ;;  %v6566_v60 = vadd.f32 %v8507_v38, %v8099_v16  ;;  %v6705_v53 = vld [vmem:[%s9466_s13 + $0x8] sm:$0xff] }
 0x488   : > { %v6557_v63 = vpop.f32.mrf.mxu1  ;;  %v10880_v39 = vpop.f32.mrf.mxu0 }
 0x489   : > { %v6730_v35 = vadd.f32 %v6706_v24, %v6682_v29  ;;  %v6680_v5 = vadd.f32 %v10869_v10, %v6649_v54  ;;  %v6652_v13 = vadd.f32 %v6566_v60, %v10773_v8  ;;  %v6558_v52 = vadd.f32 %v8093_v55, %v6557_v63  ;;  %v6710_v55 = vld [vmem:[%s9466_s13 + $0x30] sm:$0xff] }
 0x48a   : > { %v8510_v25 = vpop.f32.mrf.mxu1  ;;  %v8130_v1 = vpop.f32.mrf.mxu0  ;;  %v8111_v24 = vadd.f32 %v8110_v37, %v8109_v49 }
 0x48b   : > { %6754 = vst [vmem:[%s10407_s14 + $0x10] sm:$0xff] %v6730_v35  ;;  %v6728_v56 = vadd.f32 %v6704_v15, %v6680_v5  ;;  %v6683_v7 = vadd.f32 %v10869_v10, %v6652_v13  ;;  %v6650_v31 = vadd.f32 %v6558_v52, %v10777_v19  ;;  %v6579_v16 = vadd.f32 %v8510_v25, %v8108_v26  ;;  %v6708_v5 = vld [vmem:[%s9466_s13 + $0x20] sm:$0xff]  ;;  %v6711_v25 = vld [vmem:[%s9466_s13 + $0x38] sm:$0xff] }
 0x48c   : > { %v6570_v38 = vpop.f32.mrf.mxu1  ;;  %v8131_v29 = vpop.f32.mrf.mxu0  ;;  %v8105_v15 = vadd.f32 %v10838_v33, %v10834_v45  ;;  %v8120_v35 = vadd.f32 %v8119_v23, %v8118_v41 }
 0x48d   : > { %6752 = vst [vmem:[%s10407_s14] sm:$0xff] %v6728_v56  ;;  %v6731_v8 = vadd.f32 %v6707_v51, %v6683_v7  ;;  %v6681_v20 = vadd.f32 %v10869_v10, %v6650_v31  ;;  %v6655_v14 = vadd.f32 %v6579_v16, %v10779_v40  ;;  %v6571_v63 = vadd.f32 %v8102_v21, %v6570_v38  ;;  %v6709_v16 = vld [vmem:[%s9466_s13 + $0x28] sm:$0xff] }
 0x48e   : > { %v8511_v54 = vpop.f32.mrf.mxu1  ;;  %v8133_v19 = vpop.f32.mrf.mxu0  ;;  %v8114_v51 = vadd.f32 %v10848_v22, %v10844_v58 }
 0x48f   : > { %6755 = vst [vmem:[%s10407_s14 + $0x18] sm:$0xff] %v6731_v8  ;;  %v6729_v49 = vadd.f32 %v6705_v53, %v6681_v20  ;;  %v6686_v37 = vadd.f32 %v10869_v10, %v6655_v14  ;;  %v6653_v26 = vadd.f32 %v6571_v63, %v10783_v36  ;;  %v6582_v60 = vadd.f32 %v8511_v54, %v8111_v24 }
 0x490   : > { %v6573_v13 = vpop.f32.mrf.mxu1  ;;  %v8134_v40 = vpop.f32.mrf.mxu0  ;;  %v8117_v20 = vadd.f32 %v10854_v34, %v10850_v61  ;;  %v8132_v54 = vadd.f32 %v8131_v29, %v8130_v1 }
 0x491   : > { %6753 = vst [vmem:[%s10407_s14 + $0x8] sm:$0xff] %v6729_v49  ;;  %v6734_v52 = vadd.f32 %v6710_v55, %v6686_v37  ;;  %v6684_v45 = vadd.f32 %v10869_v10, %v6653_v26  ;;  %v6656_v33 = vadd.f32 %v6582_v60, %v10785_v57  ;;  %v6574_v21 = vadd.f32 %v8105_v15, %v6573_v13  ;;  %v6712_v49 = vld [vmem:[%s9466_s13 + $0x40] sm:$0xff] }
 0x492   : > { %v8514_v56 = vpop.f32.mrf.mxu1  ;;  %v10905_v36 = vpop.f32.mrf.mxu0  ;;  %v8123_v57 = vadd.f32 %v10862_v3, %v10858_v27 }
 0x493   : > { %6758 = vst [vmem:[%s10407_s14 + $0x30] sm:$0xff] %v6734_v52  ;;  %v6732_v41 = vadd.f32 %v6708_v5, %v6684_v45  ;;  %v6687_v23 = vadd.f32 %v10869_v10, %v6656_v33  ;;  %v6654_v7 = vadd.f32 %v6574_v21, %v10789_v59  ;;  %v6595_v31 = vadd.f32 %v8514_v56, %v8120_v35  ;;  %v6714_v59 = vld [vmem:[%s9466_s13 + $0x50] sm:$0xff]  ;;  %v6715_v5 = vld [vmem:[%s9466_s13 + $0x58] sm:$0xff]  ;;  %v6713_v21 = vld [vmem:[%s9466_s13 + $0x48] sm:$0xff] }
 0x494   : > { %v6586_v24 = vpop.f32.mrf.mxu1  ;;  %v8137_v53 = vpop.f32.mrf.mxu0  ;;  %v8126_v35 = vadd.f32 %v10871_v11, %v10864_v28  ;;  %v8135_v33 = vadd.f32 %v8134_v40, %v8133_v19 }
 0x495   : > { %6756 = vst [vmem:[%s10407_s14 + $0x20] sm:$0xff] %v6732_v41  ;;  %v6735_v58 = vadd.f32 %v6711_v25, %v6687_v23  ;;  %v6685_v22 = vadd.f32 %v10869_v10, %v6654_v7  ;;  %v6659_v38 = vadd.f32 %v6595_v31, %v10791_v62  ;;  %v6587_v8 = vadd.f32 %v8114_v51, %v6586_v24  ;;  %v6718_v23 = vld [vmem:[%s9466_s13 + $0x70] sm:$0xff] }
 0x496   : > { %v8515_v14 = vpop.f32.mrf.mxu1  ;;  %v10919_v63 = vpop.f32.mrf.mxu0  ;;  %v8129_v41 = vadd.f32 %v10880_v39, %v10875_v18 }
 0x497   : > { %6759 = vst [vmem:[%s10407_s14 + $0x38] sm:$0xff] %v6735_v58  ;;  %v6733_v27 = vadd.f32 %v6709_v16, %v6685_v22  ;;  %v6690_v3 = vadd.f32 %v10869_v10, %v6659_v38  ;;  %v6657_v15 = vadd.f32 %v6587_v8, %v10794_v2  ;;  %v6598_v55 = vadd.f32 %v8515_v14, %v8123_v57  ;;  %v6716_v16 = vld [vmem:[%s9466_s13 + $0x60] sm:$0xff] }
 0x498   : > { %v6589_v62 = vpop.f32.mrf.mxu1  ;;  %v10925_v37 = vpop.f32.mrf.mxu0  ;;  %v5935_v8 = vadd.f32 %v10832_v48, %v10813_v43 }
 0x499   : > { %6757 = vst [vmem:[%s10407_s14 + $0x28] sm:$0xff] %v6733_v27  ;;  %v6738_v61 = vadd.f32 %v6714_v59, %v6690_v3  ;;  %v6688_v34 = vadd.f32 %v10869_v10, %v6657_v15  ;;  %v6660_v26 = vadd.f32 %v6598_v55, %v10796_v30  ;;  %v6590_v60 = vadd.f32 %v8117_v20, %v6589_v62  ;;  %v6719_v20 = vld [vmem:[%s9466_s13 + $0x78] sm:$0xff] }
 0x49a   : > { %v8518_v2 = vpop.f32.mrf.mxu1  ;;  %v8142_v13 = vpop.f32.mrf.mxu0 }
 0x49b   : > { %6762 = vst [vmem:[%s10407_s14 + $0x50] sm:$0xff] %v6738_v61  ;;  %v6736_v1 = vadd.f32 %v6712_v49, %v6688_v34  ;;  %v6691_v29 = vadd.f32 %v10869_v10, %v6660_v26  ;;  %v6658_v52 = vadd.f32 %v6590_v60, %v10801_v17  ;;  %v6611_v45 = vadd.f32 %v8518_v2, %v8132_v54  ;;  %v6717_v54 = vld [vmem:[%s9466_s13 + $0x68] sm:$0xff]  ;;  %v6722_v26 = vld [vmem:[%s9466_s13 + $0x90] sm:$0xff] }
 0x49c   : > { %v6602_v51 = vpop.f32.mrf.mxu1  ;;  %v8143_v30 = vpop.f32.mrf.mxu0  ;;  %v8141_v34 = vadd.f32 %v10925_v37, %v10919_v63 }
 0x49d   : > { %6760 = vst [vmem:[%s10407_s14 + $0x40] sm:$0xff] %v6736_v1  ;;  %v6739_v25 = vadd.f32 %v6715_v5, %v6691_v29  ;;  %v6689_v28 = vadd.f32 %v10869_v10, %v6658_v52  ;;  %v6663_v11 = vadd.f32 %v6611_v45, %v10803_v4  ;;  %v6603_v56 = vadd.f32 %v8126_v35, %v6602_v51  ;;  %v6720_v1 = vld [vmem:[%s9466_s13 + $0x80] sm:$0xff]  ;;  %v6723_v45 = vld [vmem:[%s9466_s13 + $0x98] sm:$0xff] }
 0x49e   : > { %v8519_v7 = vpop.f32.mrf.mxu1  ;;  %v8145_v17 = vpop.f32.mrf.mxu0  ;;  %v8144_v24 = vadd.f32 %v8143_v30, %v8142_v13  ;;  %v5930_v13 = vadd.f32 %v10842_v46, %v10806_v42 }
 0x49f   : > { %6763 = vst [vmem:[%s10407_s14 + $0x58] sm:$0xff] %v6739_v25  ;;  %v6737_v19 = vadd.f32 %v6713_v21, %v6689_v28  ;;  %v6694_v40 = vadd.f32 %v10869_v10, %v6663_v11  ;;  %v6661_v31 = vadd.f32 %v6603_v56, %v10808_v12  ;;  %v6614_v57 = vadd.f32 %v8519_v7, %v8135_v33  ;;  %v11122_v25 = vld [vmem:[#allocation30_spill] sm:$0xff]  ;;  %v6721_v11 = vld [vmem:[%s9466_s13 + $0x88] sm:$0xff] }
 0x4a0   : > { %v6605_v58 = vpop.f32.mrf.mxu1  ;;  %v8146_v4 = vpop.f32.mrf.mxu0  ;;  %v8138_v12 = vadd.f32 %v8137_v53, %v10905_v36  ;;  %v5943_v28 = vadd.f32 %v11122_v25, %v10821_v32 }
 0x4a1   : > { %6761 = vst [vmem:[%s10407_s14 + $0x48] sm:$0xff] %v6737_v19  ;;  %v6742_v22 = vadd.f32 %v6718_v23, %v6694_v40  ;;  %v6692_v18 = vadd.f32 %v10869_v10, %v6661_v31  ;;  %v6664_v39 = vadd.f32 %v6614_v57, %v10810_v9  ;;  %v6606_v38 = vadd.f32 %v8129_v41, %v6605_v58  ;;  %v11123_v40 = vld [vmem:[#allocation27_spill] sm:$0xff]  ;;  %v11124_v31 = vld [vmem:[#allocation29_spill] sm:$0xff] }
 0x4a2   : > { %v8522_v59 = vpop.f32.mrf.mxu1  ;;  %v8148_v14 = vpop.f32.mrf.mxu0  ;;  %v5927_v9 = vadd.f32 %v10836_v6, %v10799_v50  ;;  %v8147_v49 = vadd.f32 %v8146_v4, %v8145_v17  ;;  %v5951_v57 = vadd.f32 %v11124_v31, %v11123_v40 }
 0x4a3   : > { %6766 = vst [vmem:[%s10407_s14 + $0x70] sm:$0xff] %v6742_v22  ;;  %v6740_v27 = vadd.f32 %v6716_v16, %v6692_v18  ;;  %v6695_v3 = vadd.f32 %v10869_v10, %v6664_v39  ;;  %v6662_v15 = vadd.f32 %v6606_v38, %v10815_v44  ;;  %v6627_v55 = vadd.f32 %v8522_v59, %v8144_v24  ;;  %v11125_v18 = vld [vmem:[#allocation26_spill] sm:$0xff]  ;;  %v11126_v39 = vld [vmem:[#allocation32_spill] sm:$0xff] }
 0x4a4   : > { %v6618_v43 = vpop.f32.mrf.mxu1  ;;  %v8149_v48 = vpop.f32.mrf.mxu0  ;;  %v5938_v44 = vadd.f32 %v10840_v47, %v10818_v0  ;;  %v5946_v38 = vadd.f32 %v11126_v39, %v11125_v18 }
 0x4a5   : > { %6764 = vst [vmem:[%s10407_s14 + $0x60] sm:$0xff] %v6740_v27  ;;  %v6743_v36 = vadd.f32 %v6719_v20, %v6695_v3  ;;  %v6693_v53 = vadd.f32 %v10869_v10, %v6662_v15  ;;  %v6667_v62 = vadd.f32 %v6627_v55, %v5935_v8  ;;  %v6619_v61 = vadd.f32 %v8138_v12, %v6618_v43  ;;  %v6724_v8 = vld [vmem:[%s9466_s13 + $0xa0] sm:$0xff]  ;;  %v11127_v15 = vld [vmem:[#allocation28_spill] sm:$0xff]  ;;  %v11128_v55 = vld [vmem:[#allocation31_spill] sm:$0xff] }
 0x4a6   : > { %v8523_v50 = vpop.f32.mrf.mxu1  ;;  %v8151_v6 = vpop.f32.mrf.mxu0  ;;  %v8150_v30 = vadd.f32 %v8149_v48, %v8148_v14 }
 0x4a7   : > { %6767 = vst [vmem:[%s10407_s14 + $0x78] sm:$0xff] %v6743_v36  ;;  %v6741_v60 = vadd.f32 %v6717_v54, %v6693_v53  ;;  %v6698_v35 = vadd.f32 %v10869_v10, %v6667_v62  ;;  %v6665_v5 = vadd.f32 %v6619_v61, %v5927_v9  ;;  %v6630_v2 = vadd.f32 %v8523_v50, %v8147_v49  ;;  %v6726_v54 = vld [vmem:[%s9466_s13 + $0xb0] sm:$0xff]  ;;  %v6725_v53 = vld [vmem:[%s9466_s13 + $0xa8] sm:$0xff] }
 0x4a8   : > { %v6621_v29 = vpop.f32.mrf.mxu1  ;;  %v8152_v0 = vpop.f32.mrf.mxu0  ;;  %v5954_v9 = vadd.f32 %v11128_v55, %v11127_v15 }
 0x4a9   : > { %6765 = vst [vmem:[%s10407_s14 + $0x68] sm:$0xff] %v6741_v60  ;;  %v6746_v47 = vadd.f32 %v6722_v26, %v6698_v35  ;;  %v6696_v63 = vadd.f32 %v10869_v10, %v6665_v5  ;;  %v6668_v37 = vadd.f32 %v6630_v2, %v5938_v44  ;;  %v6622_v52 = vadd.f32 %v8141_v34, %v6621_v29  ;;  %v6727_v34 = vld [vmem:[%s9466_s13 + $0xb8] sm:$0xff]  ;;  %s9259_s13 = smov [#allocation12]  }
 0x4aa   : > { %v8526_v33 = vpop.f32.mrf.mxu1  ;;  %v8154_v21 = vpop.f32.mrf.mxu0  ;;  %v8153_v58 = vadd.f32 %v8152_v0, %v8151_v6  ;;  %s9141_s11 = sshll.u32 %s9259_s13, 4  ;;  %s9142_s11 = int_to_ptr.vmem [resolvable:$false] %s9141_s11 }
 0x4ab   : > { %6770 = vst [vmem:[%s10407_s14 + $0x90] sm:$0xff] %v6746_v47  ;;  %v6744_v51 = vadd.f32 %v6720_v1, %v6696_v63  ;;  %v6699_v42 = vadd.f32 %v10869_v10, %v6668_v37  ;;  %v6666_v46 = vadd.f32 %v6622_v52, %v5930_v13  ;;  %s9143_s29 = scalar_lea.vmem %s9142_s11, 6144  ;;  %p9144_p1 = scmp.lt.s32.totalorder %s11008_s4, %s9142_s11 }
 0x4ac   : > { %v6634_v56 = vpop.f32.mrf.mxu1  ;;  %v8155_v41 = vpop.f32.mrf.mxu0  ;;  %p9145_p2 = scmp.lt.s32.totalorder %s9143_s29, %s9137_s9 }
 0x4ad   : > { %6768 = vst [vmem:[%s10407_s14 + $0x80] sm:$0xff] %v6744_v51  ;;  %v6747_v23 = vadd.f32 %v6723_v45, %v6699_v42  ;;  %v6697_v7 = vadd.f32 %v10869_v10, %v6666_v46  ;;  %v6635_v17 = vadd.f32 %v8150_v30, %v6634_v56  ;;  %v8156_v19 = vadd.f32 %v8155_v41, %v8154_v21 }
 0x4ae   : > { %v8527_v16 = vpop.f32.mrf.mxu1  ;;  %v8157_v24 = vpop.f32.mrf.mxu0  ;;  %p9146_p6 = por %p9145_p2, %p9144_p1 }
 0x4af   : > { %6771 = vst [vmem:[%s10407_s14 + $0x98] sm:$0xff] %v6747_v23  ;;  %v6745_v32 = vadd.f32 %v6721_v11, %v6697_v7  ;;  %v6669_v4 = vadd.f32 %v6635_v17, %v5943_v28  ;;  %v6643_v22 = vadd.f32 %v8526_v33, %v8156_v19 }
 0x4b0   : > { %v6637_v12 = vpop.f32.mrf.mxu1  ;;  %v8158_v20 = vpop.f32.mrf.mxu0  ;;  %p9147_p11 = pnand %p9146_p6, %p9140_p0 }
 0x4b1   : > { %6769 = vst [vmem:[%s10407_s14 + $0x88] sm:$0xff] %v6745_v32  ;;  %v6700_v59 = vadd.f32 %v10869_v10, %v6669_v4  ;;  %v6671_v14 = vadd.f32 %v6643_v22, %v5951_v57  ;;  %v6638_v27 = vadd.f32 %v8153_v58, %v6637_v12  ;;  %v8159_v3 = vadd.f32 %v8158_v20, %v8157_v24 }
 0x4b3   : > { %v6748_v49 = vadd.f32 %v6724_v8, %v6700_v59  ;;  %v6702_v43 = vadd.f32 %v10869_v10, %v6671_v14  ;;  %v6670_v48 = vadd.f32 %v6638_v27, %v5946_v38  ;;  %v6646_v36 = vadd.f32 %v8527_v16, %v8159_v3 }
 0x4b5   : > { %6772 = vst [vmem:[%s10407_s14 + $0xa0] sm:$0xff] %v6748_v49  ;;  %v6750_v62 = vadd.f32 %v6726_v54, %v6702_v43  ;;  %v6701_v61 = vadd.f32 %v10869_v10, %v6670_v48  ;;  %v6672_v44 = vadd.f32 %v6646_v36, %v5954_v9 }
 0x4b7   : > { %6774 = vst [vmem:[%s10407_s14 + $0xb0] sm:$0xff] %v6750_v62  ;;  %v6749_v26 = vadd.f32 %v6725_v53, %v6701_v61  ;;  %v6703_v50 = vadd.f32 %v10869_v10, %v6672_v44 }
 0x4b9   : > { %6773 = vst [vmem:[%s10407_s14 + $0xa8] sm:$0xff] %v6749_v26  ;;  %v6751_v6 = vadd.f32 %v6727_v34, %v6703_v50 }
 0x4bb   : > { %6775 = vst [vmem:[%s10407_s14 + $0xb8] sm:$0xff] %v6751_v6 }
 0x4bc   : > { %9150 = shalt.err (!%p9147_p11)
}
 0x4bd   : > { %s9151_s7 = scalar_lea.hbm %s11006_s23, 3072  ;;  %s9155_s14 = scalar_lea.hbm %s11131_s19, 12288 }
 0x4be   : > { %p9152_p8 = scmp.ne.s32.totalorder %s11006_s23, %s9151_s7  ;;  %p9156_p10 = scmp.lt.s32.totalorder %s11006_s23, %s11131_s19 }
 0x4bf   : > { %p9157_p4 = scmp.lt.s32.totalorder %s9155_s14, %s9151_s7 }
 0x4c0   : > { %p9153_p13 = pnand %p9152_p8, %p9404_p7 }
 0x4c1   : > { %p9158_p5 = por %p9157_p4, %p9156_p10 }
 0x4c2   : > { %p9154_p3 = pneg %p9153_p13 }
 0x4c4   : > { %p9159_p9 = pnand %p9158_p5, %p9154_p3 }
 0x4c6   : > { %9162 = shalt.err (!%p9159_p9)
}
 0x4c7   : > { %s9260_s10 = smov 128   ;;  %s9261_s2 = smov 8  }
 0x4c8   : > { %8566 = dma.vmem_to_hbm [thread:$0]  (%p9404_p7), %s11008_s4, 3072, %s11006_s23, %s6777_s8, %s9260_s10, %s9260_s10, %s9261_s2  }
 0x4c9 PF: > { %s11132_s18 = sld [smem:[#allocation18_spill]]  ;;  %p8591_p12 = scmp.ge.s32.totalorder %s9245_s28, 2 }
 0x4ca   : > { %s11133_s24 = sld [smem:[#allocation21_spill]] }
 0x4cf   : > { %s6808_s12 = sand.u32 1, %s11132_s18  }
 0x4d0   : > { %p11134_p0 = scmp.ne.s32.totalorder %s11133_s24, 0  ;;  %s6809_s16 = scalar_lea.sflag [#allocation6], %s6808_s12 }
 0x4d2   : > { %p8583_p1 = pnand %p8591_p12, %p11134_p0 }
 0x4d4   : > { %p8584_p2 = pneg %p8583_p1 }
 0x4d6   : > { %9212 = dma.done.wait (%p8584_p2), %s6809_s16, 3072  }
 0x4d7   : > { %9214 = vsyncadd (%p8584_p2), %s6809_s16, 4294964224  ;;  %s26_s28 = sadd.s32 1, %s9245_s28   ;;  %s11135_s15 = sld [smem:[#allocation19_spill]] }
 0x4d8   : > { %p23_p6 = scmp.ge.s32.totalorder %s26_s28, 6   ;;  %s11136_s23 = sld [smem:[#allocation25_spill]] }
 0x4d9   : > { %s11137_s0 = sld [smem:[#allocation22_spill]]  ;;  %s11139_s21 = smov %s9221_s22 }
 0x4da   : > { %s11138_s17 = sld [smem:[#allocation24_spill]]  ;;  %s11141_s24 = smov %s9237_s26 }
 0x4db   : > { %s11142_s25 = smov %s9241_s27 }
 0x4dc   :  { %25 = sbr.rel (!%p23_p6) target bundleno = 15 (0xf), region = 128 }
 0x4dd   : > { %s11140_s22 = smov %s11135_s15 }
 0x4df   : > { %s11143_s26 = smov %s11137_s0 }
 0x4e0   : > { %s11144_s27 = smov %s11138_s17 }
 0x4e1   :  { %6814 = vsyncpa [#allocation5], 1 }
 0x4e2   :  { %6816 = vsyncpa [#allocation5 + $0x1], 1 }
 0x4e3   :  { %6817 = vsyncpa [#allocation8], 1 }
 0x4e4   :  { %6819 = vsyncpa [#allocation8 + $0x1], 1 }
 0x4e5   :  { %6820 = vsyncpa [#allocation11], 1 }
 0x4e6   :  { %6821 = vsyncpa [#allocation6], 1 }
 0x4e7   :  { %6823 = vsyncpa [#allocation6 + $0x1], 1 }

</bundles_post_ra>
